<compile_context>
chip_gen: v6e
topology: v6e:2x2x1
jax: 0.10.0
libtpu: 0.0.40
codegen_flags: <defaults>
</compile_context>

<pallas_src>
import functools

import jax
import jax.numpy as jnp
from jax import lax
from jax.experimental import pallas as pl
from jax.experimental.pallas import tpu as pltpu


# ----------------------------------------------------------------------------
# Fused bottleneck kernel (one image per grid step):
#   y1  = SiLU(x @ W1' + b1)            (BN scale folded into W1')
#   x1  = SiLU(conv3x3(y1) + b2) + x    (BN scale folded into W2', 9-tap acc)
# ----------------------------------------------------------------------------
def _bottleneck_kernel(x_ref, w1_ref, b1_ref, w2_ref, b2_ref, ml_ref, mr_ref,
                       o_ref, buf_ref, *, W, pad_top, add):
    HW = x_ref.shape[0]
    x = x_ref[...]                                          # (HW, C1) f32

    # ---- cv1: 1x1 conv (BN folded) + bias + SiLU (bf16 MXU, f32 epilogue) ---
    y = jnp.dot(x.astype(jnp.bfloat16), w1_ref[...],
                preferred_element_type=jnp.float32) + b1_ref[...]
    y = y * jax.nn.sigmoid(y)                               # SiLU, f32

    # ---- write y1 into a zero-padded flat (row-major H x W) VMEM buffer ----
    buf_ref[...] = jnp.zeros_like(buf_ref)
    buf_ref[pl.ds(pad_top, HW), :] = y                      # aligned interior

    # ---- cv2: 3x3 conv as 9 shifted-slice matmuls --------------------------
    # Tap (dy, dx) of a pad-1 3x3 conv reads y1[h+dy-1, w+dx-1], i.e. flat row
    # r + (dy-1)*W + (dx-1): a contiguous slice of the padded buffer at offset
    # pad_top + (dy-1)*W + (dx-1).  W-boundary wraps are killed by 0/1 masks.
    ml = ml_ref[...]                                        # (HW, 1) f32
    mr = mr_ref[...]
    C2 = o_ref.shape[-1]
    acc = jnp.zeros((HW, C2), jnp.float32)
    for t in range(9):
        dy, dx = t // 3, t % 3
        patch = buf_ref[pl.ds(pad_top + (dy - 1) * W + (dx - 1), HW), :]
        if dx == 0:          # left column of the window is invalid at w == 0
            patch = patch * ml
        elif dx == 2:        # right column is invalid at w == W-1
            patch = patch * mr
        acc = acc + jnp.dot(patch.astype(jnp.bfloat16), w2_ref[t],
                            preferred_element_type=jnp.float32)

    z = acc + b2_ref[...]
    z = z * jax.nn.sigmoid(z)                               # SiLU
    if add:
        z = z + x                                           # shortcut (c1==c2)
    o_ref[...] = z.astype(o_ref.dtype)


def _fused_bottleneck(x2d, P, *, B, H, W, add):
    """x2d: (B*H*W, C1) NHWC-flattened input -> (B*H*W, C2) bottleneck output."""
    HW = H * W
    C1 = x2d.shape[1]
    C_ = P["w1"].shape[1]
    C2 = P["w2"].shape[3]

    # Fold BN scale into the conv weights; weights to bf16 (single-pass MXU),
    # biases stay f32 for the epilogue.
    w1f = (P["w1"] * P["bn1_scale"][None, :]).astype(jnp.bfloat16)
    b1f = P["bn1_bias"].reshape(1, C_).astype(jnp.float32)
    w2f = (P["w2"] * P["bn2_scale"][None, None, None, :]
           ).reshape(9, C_, C2).astype(jnp.bfloat16)
    b2f = P["bn2_bias"].reshape(1, C2).astype(jnp.float32)

    # Host-precomputed W-boundary masks for the shifted-slice taps.
    wpos = jnp.arange(HW, dtype=jnp.int32) % W
    mask_l = (wpos > 0).astype(jnp.float32).reshape(HW, 1)
    mask_r = (wpos < W - 1).astype(jnp.float32).reshape(HW, 1)

    pad_top = W + 8                 # sublane-aligned interior store offset
    pad_rows = HW + 2 * W + 16      # >= pad_top + HW and >= max tap off + HW

    # TODO(synk): for very large H*W, split each image into row strips with a
    # halo (manual DMA) to bound per-step VMEM (v7x: 64 MiB scoped) and give
    # the grid more steps per core; one image per step is fine at these sizes.
    kernel = functools.partial(_bottleneck_kernel, W=W, pad_top=pad_top, add=add)
    return pl.pallas_call(
        kernel,
        out_shape=jax.ShapeDtypeStruct((B * HW, C2), x2d.dtype),
        grid_spec=pltpu.PrefetchScalarGridSpec(
            num_scalar_prefetch=0,
            grid=(B,),
            in_specs=[
                pl.BlockSpec((HW, C1), lambda b: (b, 0)),       # x  (per image)
                pl.BlockSpec((C1, C_), lambda b: (0, 0)),       # w1 (bf16)
                pl.BlockSpec((1, C_), lambda b: (0, 0)),        # b1
                pl.BlockSpec((9, C_, C2), lambda b: (0, 0, 0)),  # w2 taps (bf16)
                pl.BlockSpec((1, C2), lambda b: (0, 0)),        # b2
                pl.BlockSpec((HW, 1), lambda b: (0, 0)),        # left mask
                pl.BlockSpec((HW, 1), lambda b: (0, 0)),        # right mask
            ],
            out_specs=pl.BlockSpec((HW, C2), lambda b: (b, 0)),
            scratch_shapes=[pltpu.VMEM((pad_rows, C_), jnp.float32)],
        ),
        compiler_params=pltpu.CompilerParams(
            dimension_semantics=("parallel",)),
        cost_estimate=pl.CostEstimate(
            flops=2 * B * HW * (C1 * C_ + 9 * C_ * C2),
            transcendentals=B * HW * (C_ + C2),
            bytes_accessed=4 * B * HW * (C1 + C2) + 2 * (C1 * C_ + 9 * C_ * C2)),
    )(x2d, w1f, b1f, w2f, b2f, mask_l, mask_r)


# ----------------------------------------------------------------------------
# BottleneckEMA forward (input/output NCHW, like the PyTorch module)
# ----------------------------------------------------------------------------
def bottleneck_ema_forward(x_nchw, P, *, groups=8, shortcut=True):
    B, C1, H, W = x_nchw.shape
    C2 = P["w2"].shape[3]
    HW = H * W
    assert HW % 8 == 0, "H*W must be a multiple of 8 (sublane tiling)"
    add = shortcut and (C1 == C2)

    # Single NCHW->NHWC transpose at the boundary; everything downstream stays
    # channel-last (lane-dense) until the final output transpose.
    x2d = jnp.transpose(x_nchw, (0, 2, 3, 1)).reshape(B * HW, C1)

    x1_2d = _fused_bottleneck(x2d, P, B=B, H=H, W=W, add=add)   # (B*HW, C2)

    # ---- EMA attention: tiny glue ops in plain jnp, grouped-channel NHWC ----
    g = groups
    cg = C2 // g
    x1v = x1_2d.reshape(B, H, W, g, cg)

    x_h = jnp.mean(x1v, axis=2)                       # pool over W: (B,H,g,cg)
    x_w = jnp.mean(x1v, axis=1)                       # pool over H: (B,W,g,cg)
    cat = jnp.concatenate([x_h, x_w], axis=1)         # (B, H+W, g, cg)
    hw = jnp.einsum("bsgc,cd->bsgd", cat, P["ema_w1"]) + P["ema_b1"]
    a_h = jax.nn.sigmoid(hw[:, :H])[:, :, None]       # (B, H, 1, g, cg)
    a_w = jax.nn.sigmoid(hw[:, H:])[:, None]          # (B, 1, W, g, cg)
    mod = x1v * a_h * a_w

    # GroupNorm(cg, cg): per-(sample, group, channel) normalization over (H,W)
    mu = jnp.mean(mod, axis=(1, 2), keepdims=True)
    var = jnp.var(mod, axis=(1, 2), keepdims=True)
    x1g = (mod - mu) * lax.rsqrt(var + 1e-5)
    x1g = x1g * P["gn_w"] + P["gn_b"]

    # EMA 3x3 conv (same weights for every group) as one grouped NHWC conv.
    w3 = jnp.tile(P["ema_w3"], (1, 1, 1, g))          # (3, 3, cg, C2)
    x2 = lax.conv_general_dilated(
        x1_2d.reshape(B, H, W, C2), w3, (1, 1), ((1, 1), (1, 1)),
        dimension_numbers=("NHWC", "HWIO", "NHWC"), feature_group_count=g)
    x2v = (x2 + jnp.tile(P["ema_b3"], g)).reshape(B, H, W, g, cg)

    x11 = jax.nn.softmax(jnp.mean(x1g, axis=(1, 2)), axis=-1)    # (B, g, cg)
    x21 = jax.nn.softmax(jnp.mean(x2v, axis=(1, 2)), axis=-1)
    wts = (jnp.einsum("bgc,bhwgc->bhwg", x11, x2v)
           + jnp.einsum("bgc,bhwgc->bhwg", x21, x1g))             # (B, H, W, g)
    out = x1v * jax.nn.sigmoid(wts)[..., None]                    # (B,H,W,g,cg)
    return jnp.transpose(out.reshape(B, H, W, C2), (0, 3, 1, 2)
                         ).astype(x_nchw.dtype)


# ----------------------------------------------------------------------------
# Pure-JAX reference (lax.conv / einsum, f32 HIGHEST) for correctness checking
# ----------------------------------------------------------------------------
def _reference_forward(x_nchw, P, *, groups=8):
    hi = lax.Precision.HIGHEST
    B, C1, H, W = x_nchw.shape
    x = jnp.transpose(x_nchw, (0, 2, 3, 1))
    # cv1
    y1 = jnp.einsum("bhwc,cd->bhwd", x, P["w1"], precision=hi)
    y1 = y1 * P["bn1_scale"] + P["bn1_bias"]
    y1 = y1 * jax.nn.sigmoid(y1)
    # cv2 + shortcut
    y2 = lax.conv_general_dilated(y1, P["w2"], (1, 1), ((1, 1), (1, 1)),
                                  dimension_numbers=("NHWC", "HWIO", "NHWC"),
                                  precision=hi)
    y2 = y2 * P["bn2_scale"] + P["bn2_bias"]
    y2 = y2 * jax.nn.sigmoid(y2)
    x1 = jnp.transpose(x + y2, (0, 3, 1, 2))
    # EMA
    C2 = x1.shape[1]
    g = groups
    cg = C2 // g
    BG = B * g
    gx = x1.reshape(BG, cg, H, W)
    x_h = jnp.mean(gx, axis=3, keepdims=True)
    x_w = jnp.mean(gx, axis=2, keepdims=True)
    cat = jnp.concatenate([x_h, jnp.transpose(x_w, (0, 1, 3, 2))], axis=2)
    hw = (jnp.einsum("bcso,cd->bdso", cat, P["ema_w1"], precision=hi)
          + P["ema_b1"][None, :, None, None])
    x_h2 = hw[:, :, :H, :]
    x_w2 = jnp.transpose(hw[:, :, H:, :], (0, 1, 3, 2))
    mod = gx * jax.nn.sigmoid(x_h2) * jax.nn.sigmoid(x_w2)
    mu = jnp.mean(mod, axis=(2, 3), keepdims=True)
    var = jnp.var(mod, axis=(2, 3), keepdims=True)
    x1g = (mod - mu) / jnp.sqrt(var + 1e-5)
    x1g = x1g * P["gn_w"][None, :, None, None] + P["gn_b"][None, :, None, None]
    gx_nhwc = jnp.transpose(gx, (0, 2, 3, 1))
    x2 = lax.conv_general_dilated(gx_nhwc, P["ema_w3"], (1, 1), ((1, 1), (1, 1)),
                                  dimension_numbers=("NHWC", "HWIO", "NHWC"),
                                  precision=hi)
    x2 = jnp.transpose(x2 + P["ema_b3"][None, None, None, :], (0, 3, 1, 2))
    x11 = jax.nn.softmax(jnp.mean(x1g, axis=(2, 3)), axis=-1)[:, None, :]
    x21 = jax.nn.softmax(jnp.mean(x2, axis=(2, 3)), axis=-1)[:, None, :]
    x12 = x2.reshape(BG, cg, H * W)
    x22 = x1g.reshape(BG, cg, H * W)
    weights = (jnp.einsum("bic,bcs->bis", x11, x12, precision=hi)
               + jnp.einsum("bic,bcs->bis", x21, x22, precision=hi)
               ).reshape(BG, 1, H, W)
    return (gx * jax.nn.sigmoid(weights)).reshape(B, C2, H, W)


if __name__ == "__main__":
    key = jax.random.PRNGKey(0)
    ks = jax.random.split(key, 20)

    # Small shapes consistent with BottleneckEMA: c1 == c2 (shortcut active),
    # channels divisible by EMA factor=8.
    B, C1, H, W = 2, 64, 16, 16
    C2 = C1
    e = 0.5
    C_ = int(C2 * e)
    groups = 8
    cg = C2 // groups
    eps = 1e-5

    def fold_bn(gamma, beta, mean, var):
        s = gamma / jnp.sqrt(var + eps)
        return s, beta - mean * s

    # cv1: 1x1 conv weight (cin, cout) + folded BN (running stats / eval mode)
    w1 = jax.random.normal(ks[0], (C1, C_), jnp.float32) / jnp.sqrt(C1)
    bn1_scale, bn1_bias = fold_bn(
        1.0 + 0.1 * jax.random.normal(ks[1], (C_,), jnp.float32),
        0.1 * jax.random.normal(ks[2], (C_,), jnp.float32),
        0.1 * jax.random.normal(ks[3], (C_,), jnp.float32),
        jax.random.uniform(ks[4], (C_,), jnp.float32, 0.5, 1.5))

    # cv2: 3x3 conv weight (kh, kw, cin, cout) + folded BN
    w2 = jax.random.normal(ks[5], (3, 3, C_, C2), jnp.float32) / jnp.sqrt(9 * C_)
    bn2_scale, bn2_bias = fold_bn(
        1.0 + 0.1 * jax.random.normal(ks[6], (C2,), jnp.float32),
        0.1 * jax.random.normal(ks[7], (C2,), jnp.float32),
        0.1 * jax.random.normal(ks[8], (C2,), jnp.float32),
        jax.random.uniform(ks[9], (C2,), jnp.float32, 0.5, 1.5))

    # EMA params
    ema_w1 = jax.random.normal(ks[10], (cg, cg), jnp.float32) / jnp.sqrt(cg)
    ema_b1 = 0.1 * jax.random.normal(ks[11], (cg,), jnp.float32)
    ema_w3 = jax.random.normal(ks[12], (3, 3, cg, cg), jnp.float32) / jnp.sqrt(9 * cg)
    ema_b3 = 0.1 * jax.random.normal(ks[13], (cg,), jnp.float32)
    gn_w = 1.0 + 0.1 * jax.random.normal(ks[14], (cg,), jnp.float32)
    gn_b = 0.1 * jax.random.normal(ks[15], (cg,), jnp.float32)

    P = dict(w1=w1, bn1_scale=bn1_scale, bn1_bias=bn1_bias,
             w2=w2, bn2_scale=bn2_scale, bn2_bias=bn2_bias,
             ema_w1=ema_w1, ema_b1=ema_b1, ema_w3=ema_w3, ema_b3=ema_b3,
             gn_w=gn_w, gn_b=gn_b)

    x = jax.random.normal(ks[16], (B, C1, H, W), jnp.float32)

    fwd = jax.jit(functools.partial(bottleneck_ema_forward, groups=groups))
    out = jax.block_until_ready(fwd(x, P))

    ref = jax.block_until_ready(_reference_forward(x, P, groups=groups))
    assert out.shape == (B, C2, H, W) and out.dtype == x.dtype
    max_err = float(jnp.max(jnp.abs(out - ref)))
    # bf16 MXU inputs (f32 accumulation) vs f32-HIGHEST reference
    assert jnp.allclose(out, ref, atol=3e-2, rtol=3e-2), max_err
    print("KERNEL_OK")
</pallas_src>

<mosaic_0001>
module attributes {stable_mosaic.version = 11 : i64} {
  func.func @_bottleneck_kernel(%arg0: i32, %arg1: memref<256x64xf32, #tpu.memory_space<vmem>>, %arg2: memref<64x32xbf16, #tpu.memory_space<vmem>>, %arg3: memref<1x32xf32, #tpu.memory_space<vmem>>, %arg4: memref<9x32x64xbf16, #tpu.memory_space<vmem>>, %arg5: memref<1x64xf32, #tpu.memory_space<vmem>>, %arg6: memref<256x1xf32, #tpu.memory_space<vmem>>, %arg7: memref<256x1xf32, #tpu.memory_space<vmem>>, %arg8: memref<256x64xf32, #tpu.memory_space<vmem>>, %arg9: memref<304x32xf32, #tpu.memory_space<vmem>>) attributes {dimension_semantics = [#tpu.dimension_semantics<parallel>], iteration_bounds = array<i64: 2>, scalar_prefetch = 0 : i64, scratch_operands = 1 : i64, tpu.core_type = #tpu.core_type<tc>, window_params = [{transform_indices = @transform_0, window_bounds = array<i64: 256, 64>}, {pipeline_mode = #tpu.pipeline_mode<synchronous>, transform_indices = @transform_1, window_bounds = array<i64: 64, 32>}, {pipeline_mode = #tpu.pipeline_mode<synchronous>, transform_indices = @transform_2, window_bounds = array<i64: 1, 32>}, {pipeline_mode = #tpu.pipeline_mode<synchronous>, transform_indices = @transform_3, window_bounds = array<i64: 9, 32, 64>}, {pipeline_mode = #tpu.pipeline_mode<synchronous>, transform_indices = @transform_4, window_bounds = array<i64: 1, 64>}, {pipeline_mode = #tpu.pipeline_mode<synchronous>, transform_indices = @transform_5, window_bounds = array<i64: 256, 1>}, {pipeline_mode = #tpu.pipeline_mode<synchronous>, transform_indices = @transform_6, window_bounds = array<i64: 256, 1>}, {transform_indices = @transform_7, window_bounds = array<i64: 256, 64>}]} {
    %c0 = arith.constant 0 : index
    %c0_0 = arith.constant 0 : index
    %0 = vector.load %arg1[%c0, %c0_0] : memref<256x64xf32, #tpu.memory_space<vmem>>, vector<256x64xf32>
    %1 = arith.truncf %0 : vector<256x64xf32> to vector<256x64xbf16>
    %c0_1 = arith.constant 0 : index
    %c0_2 = arith.constant 0 : index
    %2 = vector.load %arg2[%c0_1, %c0_2] : memref<64x32xbf16, #tpu.memory_space<vmem>>, vector<64x32xbf16>
    %cst = arith.constant dense<0.000000e+00> : vector<256x32xf32>
    %3 = tpu.matmul %1, %2, %cst {dimension_numbers = #tpu.dot_dimension_numbers<[1], [0], [0], [1], [0, 0, 1, 1], [], []>} : vector<256x64xbf16>, vector<64x32xbf16>, vector<256x32xf32> -> vector<256x32xf32>
    %c0_3 = arith.constant 0 : index
    %c0_4 = arith.constant 0 : index
    %4 = vector.load %arg3[%c0_3, %c0_4] : memref<1x32xf32, #tpu.memory_space<vmem>>, vector<1x32xf32>
    %5 = vector.broadcast %4 : vector<1x32xf32> to vector<256x32xf32>
    %6 = arith.addf %3, %5 : vector<256x32xf32>
    %7 = arith.negf %6 : vector<256x32xf32>
    %8 = math.exp %7 : vector<256x32xf32>
    %cst_5 = arith.constant 1.000000e+00 : f32
    %9 = vector.broadcast %cst_5 : f32 to vector<256x32xf32>
    %10 = arith.addf %9, %8 : vector<256x32xf32>
    %11 = arith.divf %9, %10 : vector<256x32xf32>
    %12 = arith.mulf %6, %11 : vector<256x32xf32>
    %cst_6 = arith.constant 0.000000e+00 : f32
    %13 = vector.broadcast %cst_6 : f32 to vector<304x32xf32>
    %c0_7 = arith.constant 0 : index
    %c0_8 = arith.constant 0 : index
    %14 = vector.load %arg9[%c0_7, %c0_8] : memref<304x32xf32, #tpu.memory_space<vmem>>, vector<304x32xf32>
    tpu.vector_store %arg9[%c0_7, %c0_8], %13 {strides = array<i32>} : memref<304x32xf32, #tpu.memory_space<vmem>>, vector<304x32xf32>,
    %c24 = arith.constant 24 : index
    %c0_9 = arith.constant 0 : index
    %15 = vector.load %arg9[%c24, %c0_9] : memref<304x32xf32, #tpu.memory_space<vmem>>, vector<256x32xf32>
    tpu.vector_store %arg9[%c24, %c0_9], %12 {strides = array<i32>} : memref<304x32xf32, #tpu.memory_space<vmem>>, vector<256x32xf32>,
    %c0_10 = arith.constant 0 : index
    %c0_11 = arith.constant 0 : index
    %16 = vector.load %arg6[%c0_10, %c0_11] : memref<256x1xf32, #tpu.memory_space<vmem>>, vector<256x1xf32>
    %c0_12 = arith.constant 0 : index
    %c0_13 = arith.constant 0 : index
    %17 = vector.load %arg7[%c0_12, %c0_13] : memref<256x1xf32, #tpu.memory_space<vmem>>, vector<256x1xf32>
    %cst_14 = arith.constant 0.000000e+00 : f32
    %18 = vector.broadcast %cst_14 : f32 to vector<256x64xf32>
    %c7 = arith.constant 7 : index
    %c0_15 = arith.constant 0 : index
    %19 = vector.load %arg9[%c7, %c0_15] : memref<304x32xf32, #tpu.memory_space<vmem>>, vector<256x32xf32>
    %20 = vector.broadcast %16 : vector<256x1xf32> to vector<256x32xf32>
    %21 = arith.mulf %19, %20 : vector<256x32xf32>
    %22 = arith.truncf %21 : vector<256x32xf32> to vector<256x32xbf16>
    %c0_16 = arith.constant 0 : index
    %c0_17 = arith.constant 0 : index
    %c0_18 = arith.constant 0 : index
    %23 = vector.load %arg4[%c0_16, %c0_17, %c0_18] : memref<9x32x64xbf16, #tpu.memory_space<vmem>>, vector<1x32x64xbf16>
    %24 = vector.shape_cast %23 : vector<1x32x64xbf16> to vector<32x64xbf16>
    %cst_19 = arith.constant dense<0.000000e+00> : vector<256x64xf32>
    %25 = tpu.matmul %22, %24, %cst_19 {dimension_numbers = #tpu.dot_dimension_numbers<[1], [0], [0], [1], [0, 0, 1, 1], [], []>} : vector<256x32xbf16>, vector<32x64xbf16>, vector<256x64xf32> -> vector<256x64xf32>
    %26 = arith.addf %18, %25 : vector<256x64xf32>
    %c8 = arith.constant 8 : index
    %c0_20 = arith.constant 0 : index
    %27 = vector.load %arg9[%c8, %c0_20] : memref<304x32xf32, #tpu.memory_space<vmem>>, vector<256x32xf32>
    %28 = arith.truncf %27 : vector<256x32xf32> to vector<256x32xbf16>
    %c1 = arith.constant 1 : index
    %c0_21 = arith.constant 0 : index
    %c0_22 = arith.constant 0 : index
    %29 = vector.load %arg4[%c1, %c0_21, %c0_22] : memref<9x32x64xbf16, #tpu.memory_space<vmem>>, vector<1x32x64xbf16>
    %30 = vector.shape_cast %29 : vector<1x32x64xbf16> to vector<32x64xbf16>
    %cst_23 = arith.constant dense<0.000000e+00> : vector<256x64xf32>
    %31 = tpu.matmul %28, %30, %cst_23 {dimension_numbers = #tpu.dot_dimension_numbers<[1], [0], [0], [1], [0, 0, 1, 1], [], []>} : vector<256x32xbf16>, vector<32x64xbf16>, vector<256x64xf32> -> vector<256x64xf32>
    %32 = arith.addf %26, %31 : vector<256x64xf32>
    %c9 = arith.constant 9 : index
    %c0_24 = arith.constant 0 : index
    %33 = vector.load %arg9[%c9, %c0_24] : memref<304x32xf32, #tpu.memory_space<vmem>>, vector<256x32xf32>
    %34 = vector.broadcast %17 : vector<256x1xf32> to vector<256x32xf32>
    %35 = arith.mulf %33, %34 : vector<256x32xf32>
    %36 = arith.truncf %35 : vector<256x32xf32> to vector<256x32xbf16>
    %c2 = arith.constant 2 : index
    %c0_25 = arith.constant 0 : index
    %c0_26 = arith.constant 0 : index
    %37 = vector.load %arg4[%c2, %c0_25, %c0_26] : memref<9x32x64xbf16, #tpu.memory_space<vmem>>, vector<1x32x64xbf16>
    %38 = vector.shape_cast %37 : vector<1x32x64xbf16> to vector<32x64xbf16>
    %cst_27 = arith.constant dense<0.000000e+00> : vector<256x64xf32>
    %39 = tpu.matmul %36, %38, %cst_27 {dimension_numbers = #tpu.dot_dimension_numbers<[1], [0], [0], [1], [0, 0, 1, 1], [], []>} : vector<256x32xbf16>, vector<32x64xbf16>, vector<256x64xf32> -> vector<256x64xf32>
    %40 = arith.addf %32, %39 : vector<256x64xf32>
    %c23 = arith.constant 23 : index
    %c0_28 = arith.constant 0 : index
    %41 = vector.load %arg9[%c23, %c0_28] : memref<304x32xf32, #tpu.memory_space<vmem>>, vector<256x32xf32>
    %42 = vector.broadcast %16 : vector<256x1xf32> to vector<256x32xf32>
    %43 = arith.mulf %41, %42 : vector<256x32xf32>
    %44 = arith.truncf %43 : vector<256x32xf32> to vector<256x32xbf16>
    %c3 = arith.constant 3 : index
    %c0_29 = arith.constant 0 : index
    %c0_30 = arith.constant 0 : index
    %45 = vector.load %arg4[%c3, %c0_29, %c0_30] : memref<9x32x64xbf16, #tpu.memory_space<vmem>>, vector<1x32x64xbf16>
    %46 = vector.shape_cast %45 : vector<1x32x64xbf16> to vector<32x64xbf16>
    %cst_31 = arith.constant dense<0.000000e+00> : vector<256x64xf32>
    %47 = tpu.matmul %44, %46, %cst_31 {dimension_numbers = #tpu.dot_dimension_numbers<[1], [0], [0], [1], [0, 0, 1, 1], [], []>} : vector<256x32xbf16>, vector<32x64xbf16>, vector<256x64xf32> -> vector<256x64xf32>
    %48 = arith.addf %40, %47 : vector<256x64xf32>
    %c24_32 = arith.constant 24 : index
    %c0_33 = arith.constant 0 : index
    %49 = vector.load %arg9[%c24_32, %c0_33] : memref<304x32xf32, #tpu.memory_space<vmem>>, vector<256x32xf32>
    %50 = arith.truncf %49 : vector<256x32xf32> to vector<256x32xbf16>
    %c4 = arith.constant 4 : index
    %c0_34 = arith.constant 0 : index
    %c0_35 = arith.constant 0 : index
    %51 = vector.load %arg4[%c4, %c0_34, %c0_35] : memref<9x32x64xbf16, #tpu.memory_space<vmem>>, vector<1x32x64xbf16>
    %52 = vector.shape_cast %51 : vector<1x32x64xbf16> to vector<32x64xbf16>
    %cst_36 = arith.constant dense<0.000000e+00> : vector<256x64xf32>
    %53 = tpu.matmul %50, %52, %cst_36 {dimension_numbers = #tpu.dot_dimension_numbers<[1], [0], [0], [1], [0, 0, 1, 1], [], []>} : vector<256x32xbf16>, vector<32x64xbf16>, vector<256x64xf32> -> vector<256x64xf32>
    %54 = arith.addf %48, %53 : vector<256x64xf32>
    %c25 = arith.constant 25 : index
    %c0_37 = arith.constant 0 : index
    %55 = vector.load %arg9[%c25, %c0_37] : memref<304x32xf32, #tpu.memory_space<vmem>>, vector<256x32xf32>
    %56 = vector.broadcast %17 : vector<256x1xf32> to vector<256x32xf32>
    %57 = arith.mulf %55, %56 : vector<256x32xf32>
    %58 = arith.truncf %57 : vector<256x32xf32> to vector<256x32xbf16>
    %c5 = arith.constant 5 : index
    %c0_38 = arith.constant 0 : index
    %c0_39 = arith.constant 0 : index
    %59 = vector.load %arg4[%c5, %c0_38, %c0_39] : memref<9x32x64xbf16, #tpu.memory_space<vmem>>, vector<1x32x64xbf16>
    %60 = vector.shape_cast %59 : vector<1x32x64xbf16> to vector<32x64xbf16>
    %cst_40 = arith.constant dense<0.000000e+00> : vector<256x64xf32>
    %61 = tpu.matmul %58, %60, %cst_40 {dimension_numbers = #tpu.dot_dimension_numbers<[1], [0], [0], [1], [0, 0, 1, 1], [], []>} : vector<256x32xbf16>, vector<32x64xbf16>, vector<256x64xf32> -> vector<256x64xf32>
    %62 = arith.addf %54, %61 : vector<256x64xf32>
    %c39 = arith.constant 39 : index
    %c0_41 = arith.constant 0 : index
    %63 = vector.load %arg9[%c39, %c0_41] : memref<304x32xf32, #tpu.memory_space<vmem>>, vector<256x32xf32>
    %64 = vector.broadcast %16 : vector<256x1xf32> to vector<256x32xf32>
    %65 = arith.mulf %63, %64 : vector<256x32xf32>
    %66 = arith.truncf %65 : vector<256x32xf32> to vector<256x32xbf16>
    %c6 = arith.constant 6 : index
    %c0_42 = arith.constant 0 : index
    %c0_43 = arith.constant 0 : index
    %67 = vector.load %arg4[%c6, %c0_42, %c0_43] : memref<9x32x64xbf16, #tpu.memory_space<vmem>>, vector<1x32x64xbf16>
    %68 = vector.shape_cast %67 : vector<1x32x64xbf16> to vector<32x64xbf16>
    %cst_44 = arith.constant dense<0.000000e+00> : vector<256x64xf32>
    %69 = tpu.matmul %66, %68, %cst_44 {dimension_numbers = #tpu.dot_dimension_numbers<[1], [0], [0], [1], [0, 0, 1, 1], [], []>} : vector<256x32xbf16>, vector<32x64xbf16>, vector<256x64xf32> -> vector<256x64xf32>
    %70 = arith.addf %62, %69 : vector<256x64xf32>
    %c40 = arith.constant 40 : index
    %c0_45 = arith.constant 0 : index
    %71 = vector.load %arg9[%c40, %c0_45] : memref<304x32xf32, #tpu.memory_space<vmem>>, vector<256x32xf32>
    %72 = arith.truncf %71 : vector<256x32xf32> to vector<256x32xbf16>
    %c7_46 = arith.constant 7 : index
    %c0_47 = arith.constant 0 : index
    %c0_48 = arith.constant 0 : index
    %73 = vector.load %arg4[%c7_46, %c0_47, %c0_48] : memref<9x32x64xbf16, #tpu.memory_space<vmem>>, vector<1x32x64xbf16>
    %74 = vector.shape_cast %73 : vector<1x32x64xbf16> to vector<32x64xbf16>
    %cst_49 = arith.constant dense<0.000000e+00> : vector<256x64xf32>
    %75 = tpu.matmul %72, %74, %cst_49 {dimension_numbers = #tpu.dot_dimension_numbers<[1], [0], [0], [1], [0, 0, 1, 1], [], []>} : vector<256x32xbf16>, vector<32x64xbf16>, vector<256x64xf32> -> vector<256x64xf32>
    %76 = arith.addf %70, %75 : vector<256x64xf32>
    %c41 = arith.constant 41 : index
    %c0_50 = arith.constant 0 : index
    %77 = vector.load %arg9[%c41, %c0_50] : memref<304x32xf32, #tpu.memory_space<vmem>>, vector<256x32xf32>
    %78 = vector.broadcast %17 : vector<256x1xf32> to vector<256x32xf32>
    %79 = arith.mulf %77, %78 : vector<256x32xf32>
    %80 = arith.truncf %79 : vector<256x32xf32> to vector<256x32xbf16>
    %c8_51 = arith.constant 8 : index
    %c0_52 = arith.constant 0 : index
    %c0_53 = arith.constant 0 : index
    %81 = vector.load %arg4[%c8_51, %c0_52, %c0_53] : memref<9x32x64xbf16, #tpu.memory_space<vmem>>, vector<1x32x64xbf16>
    %82 = vector.shape_cast %81 : vector<1x32x64xbf16> to vector<32x64xbf16>
    %cst_54 = arith.constant dense<0.000000e+00> : vector<256x64xf32>
    %83 = tpu.matmul %80, %82, %cst_54 {dimension_numbers = #tpu.dot_dimension_numbers<[1], [0], [0], [1], [0, 0, 1, 1], [], []>} : vector<256x32xbf16>, vector<32x64xbf16>, vector<256x64xf32> -> vector<256x64xf32>
    %84 = arith.addf %76, %83 : vector<256x64xf32>
    %c0_55 = arith.constant 0 : index
    %c0_56 = arith.constant 0 : index
    %85 = vector.load %arg5[%c0_55, %c0_56] : memref<1x64xf32, #tpu.memory_space<vmem>>, vector<1x64xf32>
    %86 = vector.broadcast %85 : vector<1x64xf32> to vector<256x64xf32>
    %87 = arith.addf %84, %86 : vector<256x64xf32>
    %88 = arith.negf %87 : vector<256x64xf32>
    %89 = math.exp %88 : vector<256x64xf32>
    %cst_57 = arith.constant 1.000000e+00 : f32
    %90 = vector.broadcast %cst_57 : f32 to vector<256x64xf32>
    %91 = arith.addf %90, %89 : vector<256x64xf32>
    %92 = arith.divf %90, %91 : vector<256x64xf32>
    %93 = arith.mulf %87, %92 : vector<256x64xf32>
    %94 = arith.addf %93, %0 : vector<256x64xf32>
    %c0_58 = arith.constant 0 : index
    %c0_59 = arith.constant 0 : index
    %95 = vector.load %arg8[%c0_58, %c0_59] : memref<256x64xf32, #tpu.memory_space<vmem>>, vector<256x64xf32>
    tpu.vector_store %arg8[%c0_58, %c0_59], %94 {strides = array<i32>} : memref<256x64xf32, #tpu.memory_space<vmem>>, vector<256x64xf32>,
    return
  }
  func.func @transform_0(%arg0: i32) -> (i32, i32) {
    %c0_i32 = arith.constant 0 : i32
    %c0_i32_0 = arith.constant 0 : i32
    return %arg0, %c0_i32 : i32, i32
  }
  func.func @transform_1(%arg0: i32) -> (i32, i32) {
    %c0_i32 = arith.constant 0 : i32
    %c0_i32_0 = arith.constant 0 : i32
    %c0_i32_1 = arith.constant 0 : i32
    return %c0_i32, %c0_i32_0 : i32, i32
  }
  func.func @transform_2(%arg0: i32) -> (i32, i32) {
    %c0_i32 = arith.constant 0 : i32
    %c0_i32_0 = arith.constant 0 : i32
    %c0_i32_1 = arith.constant 0 : i32
    return %c0_i32, %c0_i32_0 : i32, i32
  }
  func.func @transform_3(%arg0: i32) -> (i32, i32, i32) {
    %c0_i32 = arith.constant 0 : i32
    %c0_i32_0 = arith.constant 0 : i32
    %c0_i32_1 = arith.constant 0 : i32
    %c0_i32_2 = arith.constant 0 : i32
    return %c0_i32, %c0_i32_0, %c0_i32_1 : i32, i32, i32
  }
  func.func @transform_4(%arg0: i32) -> (i32, i32) {
    %c0_i32 = arith.constant 0 : i32
    %c0_i32_0 = arith.constant 0 : i32
    %c0_i32_1 = arith.constant 0 : i32
    return %c0_i32, %c0_i32_0 : i32, i32
  }
  func.func @transform_5(%arg0: i32) -> (i32, i32) {
    %c0_i32 = arith.constant 0 : i32
    %c0_i32_0 = arith.constant 0 : i32
    %c0_i32_1 = arith.constant 0 : i32
    return %c0_i32, %c0_i32_0 : i32, i32
  }
  func.func @transform_6(%arg0: i32) -> (i32, i32) {
    %c0_i32 = arith.constant 0 : i32
    %c0_i32_0 = arith.constant 0 : i32
    %c0_i32_1 = arith.constant 0 : i32
    return %c0_i32, %c0_i32_0 : i32, i32
  }
  func.func @transform_7(%arg0: i32) -> (i32, i32) {
    %c0_i32 = arith.constant 0 : i32
    %c0_i32_0 = arith.constant 0 : i32
    return %arg0, %c0_i32 : i32, i32
  }
}

</mosaic_0001>

<bundles_post_ra>
// kernel: bottleneck_ema_forward.1
= control target key start
LH: loop header
LB: loop body
LE: loop exit
PB: predicated region body
PF: predicated region fallthrough
CT: control target
= control target key end

     0   :  { %12 = vsyncpa [#allocation4], 0  ;;  %s8399_s0 = inlined_call_operand.hbm [shape: f32[512,64], index: 0, kind: input, shape index: {}]   ;;  %s8400_s1 = inlined_call_operand.vmem [shape: bf16[64,32], index: 1, kind: input, shape index: {}]   ;;  %s8401_s2 = inlined_call_operand.hbm [shape: f32[1,32], index: 2, kind: input, shape index: {}]   ;;  %s8402_s3 = inlined_call_operand.vmem [shape: bf16[9,32,64], index: 3, kind: input, shape index: {}]   ;;  %s8403_s4 = inlined_call_operand.hbm [shape: f32[1,64], index: 4, kind: input, shape index: {}]   ;;  %s8404_s5 = inlined_call_operand.vmem [shape: f32[256,1], index: 5, kind: input, shape index: {}]   ;;  %s8405_s6 = inlined_call_operand.vmem [shape: f32[256,1], index: 6, kind: input, shape index: {}]   ;;  %s8406_s7 = inlined_call_operand.vmem [shape: f32[512,64], index: 7, kind: output, shape index: {}]  }
   0x1   :  { %14 = vsyncpa [#allocation4 + $0x1], 0 }
   0x2   :  { %15 = vsyncpa [#allocation6], 0  ;;  %s5984_s24 = smov 0   ;;  %s5986_s25 = smov 0  }
   0x3   :  { %s5988_s26 = smov 0   ;;  %s5990_s27 = smov 0  }
   0x4 LB: > { %s4597_s28 = sadd.s32 4294967295, %s5935_s27   ;;  %s6004_s29 = sadd.s32 1, %s5935_s27   ;;  %s5935_s27 = sphi %s5990_s27, %s8783_s27   ;;  %s5931_s26 = sphi %s5988_s26, %s8782_s26   ;;  %s5927_s25 = sphi %s5986_s25, %s8781_s25   ;;  %s5923_s24 = sphi %s5984_s24, %s8780_s24  }
   0x5   : > { %s25_s30 = ssub.s32 %s5935_s27, %s6004_s29  ;;  %s28_s8 = sadd.s32 1, %s5931_s26 }
   0x6   : > { %p26_p0 = scmp.eq.s32.totalorder %s25_s30, 0  ;;  %p35_p1 = scmp.ne.s32.totalorder %s5931_s26, %s5927_s25 }
   0x7   : > { %p36_p2 = scmp.eq.s32.totalorder %s5935_s27, 0  ;;  %p41_p3 = scmp.ne.s32.totalorder %s5927_s25, %s5923_s24 }
   0x8   : > { %s6014_s9 = scalar_select %p26_p0, %s5931_s26, %s28_s8  }
   0x9   : > { %p6016_p4 = por %p36_p2, %p35_p1  ;;  %p6022_p5 = scmp.eq.s32.totalorder %s4597_s28, 0 }
   0xa   : > { %p4599_p6 = scmp.ge.s32.totalorder %s5935_s27, 1  ;;  %p204_p7 = scmp.lt.s32.totalorder %s5935_s27, 3 }
   0xb   : > { %s8506_s11 = scalar_select %p6022_p5, 1, 0 }
   0xc   : > { %p6030_p8 = por %p6022_p5, %p41_p3  ;;  %p6034_p9 = pnand %p4599_p6, %p204_p7 }
   0xd   : > { %s5937_s14 = smov [#allocation5]   ;;  %p5464_p11 = scmp.lt.s32.totalorder %s5935_s27, 2 }
   0xe   : > { %s8507_s12 = scalar_select %p6030_p8, 1, 0 }
   0xf   : > { %s8508_s13 = scalar_select %p6034_p9, 1, 0 }
  0x10   : > { %s220_s15 = sshll.u32 %s5937_s14, 4  ;;  %p5451_p10 = pneg %p6034_p9  ;;  %s221_s15 = int_to_ptr.vmem [resolvable:$true] %s220_s15 }
  0x11   : > { %s5938_s17 = smov [#allocation7]   ;;  %p6049_p13 = pnand %p5464_p11, %p6016_p4 }
  0x12   : > { %p6043_p12 = pnand %p5451_p10, %p6022_p5  ;;  %s234_s18 = sshll.u32 %s5938_s17, 4  ;;  %s235_s18 = int_to_ptr.vmem [resolvable:$true] %s234_s18 }
  0x13   : > { %s251_s20 = sand.u32 1, %s5931_s26   ;;  %s5828_s21 = scalar_lea.vmem %s221_s15, 16 }
  0x14   : > { %p5819_p0 = pneg %p6043_p12  ;;  %p5829_p1 = scmp.ne.s32.totalorder %s221_s15, %s5828_s21 }
  0x15   : > { %s5835_s22 = scalar_lea.vmem %s221_s15, 32  ;;  %p5836_p6 = scmp.lt.s32.totalorder %s221_s15, %s221_s15 }
  0x16   : > { %p5831_p2 = pnand %p5829_p1, %p5819_p0  ;;  %p5837_p7 = scmp.lt.s32.totalorder %s5835_s22, %s5828_s21 }
  0x18   : > { %p5832_p3 = pneg %p5831_p2  ;;  %p5838_p10 = por %p5837_p7, %p5836_p6 }
  0x1a   : > { %p5839_p5 = pnand %p5838_p10, %p5832_p3 }
  0x1c   : > { %5842 = shalt.err (!%p5839_p5)
}
  0x1d   : > { %5454 = dma.hbm_to_vmem [thread:$0]  (!%p6043_p12), %s8401_s2, 16, %s221_s15, [#allocation6]  }
  0x1e   : > { %s5854_s30 = scalar_lea.vmem %s235_s18, 16  ;;  %s5861_s8 = scalar_lea.vmem %s235_s18, 32 }
  0x1f   : > { %p5855_p4 = scmp.ne.s32.totalorder %s235_s18, %s5854_s30  ;;  %p5862_p2 = scmp.lt.s32.totalorder %s235_s18, %s235_s18 }
  0x20   : > { %p5863_p8 = scmp.lt.s32.totalorder %s5861_s8, %s5854_s30 }
  0x21   : > { %p5857_p11 = pnand %p5855_p4, %p5819_p0 }
  0x22   : > { %p5864_p9 = por %p5863_p8, %p5862_p2 }
  0x23   : > { %p5858_p1 = pneg %p5857_p11 }
  0x25   : > { %p5865_p6 = pnand %p5864_p9, %p5858_p1 }
  0x27   : > { %5868 = shalt.err (!%p5865_p6)
}
  0x28   : > { %5457 = dma.hbm_to_vmem [thread:$0]  (!%p6043_p12), %s8403_s4, 16, %s235_s18, [#allocation6]  }
  0x29   : > { %s4603_s15 = sshll.u32 %s251_s20, 8  ;;  %s4894_s17 = sshll.u32 %s5935_s27, 12 }
  0x2a   : > { %s6078_s23 = scalar_lea.hbm %s8399_s0, %s4894_s17  ;;  %s255_s16 = scalar_lea.vmem [#allocation3], %s4603_s15 }
  0x2b   : > { %s262_s24 = sshll.u32 %s255_s16, 4  ;;  %s6084_s30 = scalar_lea.sflag [#allocation4], %s251_s20  ;;  %s6080_s24 = int_to_ptr.vmem [resolvable:$true] %s262_s24 }
  0x2c   : > { %s5869_s8 = scalar_lea.hbm %s6078_s23, 4096  ;;  %p5871_p8 = pneg %p6049_p13 }
  0x2d   : > { %p5870_p5 = scmp.ne.s32.totalorder %s6078_s23, %s5869_s8  ;;  %s5874_s14 = scalar_lea.hbm %s8399_s0, 8192 }
  0x2e   : > { %p5875_p0 = scmp.lt.s32.totalorder %s6078_s23, %s8399_s0  ;;  %p5876_p3 = scmp.lt.s32.totalorder %s5874_s14, %s5869_s8 }
  0x2f   : > { %p5872_p9 = pnand %p5871_p8, %p5870_p5 }
  0x30   : > { %p5877_p7 = por %p5876_p3, %p5875_p0 }
  0x31   : > { %p5873_p12 = pneg %p5872_p9 }
  0x33   : > { %p5878_p10 = pnand %p5877_p7, %p5873_p12 }
  0x35   : > { %5881 = shalt.err (!%p5878_p10)
}
  0x36   : > { %s5882_s20 = scalar_lea.vmem %s6080_s24, 4096  ;;  %s5939_s15 = smov [#allocation3]  }
  0x37   : > { %p5883_p4 = scmp.ne.s32.totalorder %s6080_s24, %s5882_s20  ;;  %s5887_s22 = sshll.u32 %s5939_s15, 4  ;;  %s5888_s22 = int_to_ptr.vmem [resolvable:$false] %s5887_s22 }
  0x38   : > { %s5889_s16 = scalar_lea.vmem %s5888_s22, 8192  ;;  %p5890_p2 = scmp.lt.s32.totalorder %s6080_s24, %s5888_s22 }
  0x39   : > { %p5885_p11 = pnand %p5883_p4, %p5871_p8  ;;  %p5891_p6 = scmp.lt.s32.totalorder %s5889_s16, %s5882_s20 }
  0x3b   : > { %p5886_p1 = pneg %p5885_p11  ;;  %p5892_p5 = por %p5891_p6, %p5890_p2 }
  0x3d   : > { %p5893_p9 = pnand %p5892_p5, %p5886_p1 }
  0x3f   : > { %5896 = shalt.err (!%p5893_p9)
}
  0x40   : > { %s5940_s8 = smov 128   ;;  %s5941_s18 = smov 8  }
  0x41   : > { %5461 = dma.hbm_to_vmem [thread:$0]  (!%p6049_p13), %s6078_s23, 4096, %s6080_s24, %s6084_s30, %s5940_s8, %s5940_s8, %s5941_s18  }
  0x42   : > { %p8511_p8 = scmp.ne.s32.totalorder %s8508_s13, 0 }
  0x44   : > { %274 = sbr.rel (%p8511_p8) target bundleno = 904 (0x388), region = 48 }
  0x49   : > { %s276_s10 = sand.u32 1, %s5927_s25   ;;  %p8512_p12 = scmp.ne.s32.totalorder %s8507_s12, 0 }
  0x4a   : > { %s4607_s14 = sshll.u32 %s276_s10, 8  ;;  %s277_s17 = scalar_lea.sflag [#allocation4], %s276_s10 }
  0x4b   : > { %s6108_s21 = scalar_lea.vmem [#allocation3], %s4607_s14 }
  0x4c   : > { %5914 = dma.done.wait (%p8512_p12), %s277_s17, 4096  }
  0x4d   : > { %5916 = vsyncadd (%p8512_p12), %s277_s17, 4294963200  ;;  %p8513_p0 = scmp.ne.s32.totalorder %s8506_s11, 0 }
  0x4f   : > { %5918 = dma.done.wait (%p8513_p0), [#allocation6], 32  }
  0x50   : > { %5920 = vsyncadd (%p8513_p0), [#allocation6], 4294967264  ;;  %v5942_v0 = vmov 0   ;;  %vm848_vm0 = vcmask 261120   ;;  %v5943_v1 = vmov 0.0   ;;  %v5507_v2 = vld [vmem:[%s8400_s1 + $0x18] sm:$0xff]  }
  0x51   : > { %5506 = vset.pattern.permute.xlu1 %v5942_v0  ;;  %5505 = vset.pattern.permute.xlu0 %v5942_v0  ;;  %849 = vst.msk [vmem:[#allocation2] sm:$0xff] %vm848_vm0, %v5943_v1  ;;  %850 = vst.msk [vmem:[#allocation2 + $0x8] sm:$0xff] %vm848_vm0, %v5943_v1  ;;  %v5508_v3 = vld [vmem:[%s8400_s1 + $0x10] sm:$0xff]   ;;  %v919_v5 = vld [vmem:[%s8404_s5] sm:$0xff]  ;;  %vm414_vm1 = vcmask 523264   ;;  %s8107_s18 = sshll.u32 %s4597_s28, 5 }
  0x52   : > { %851 = vst.msk [vmem:[#allocation2 + $0x10] sm:$0xff] %vm848_vm0, %v5943_v1  ;;  %852 = vst.msk [vmem:[#allocation2 + $0x18] sm:$0xff] %vm848_vm0, %v5943_v1  ;;  %5077 = vmatprep.subr.bf16.mxu0 %v5507_v2  ;;  %v921_v4 = vld [vmem:[%s8404_s5 + $0x10] sm:$0xff]  ;;  %v5509_v6 = vld [vmem:[%s8400_s1 + $0x8] sm:$0xff]   ;;  %1017 = vperm.xlu0 %5505, %v919_v5   ;;  %p321_p13 = scmp.lt.s32.totalorder %s8107_s18, 63 }
  0x53   : > { %853 = vst.msk [vmem:[#allocation2 + $0x20] sm:$0xff] %vm848_vm0, %v5943_v1  ;;  %854 = vst.msk [vmem:[#allocation2 + $0x28] sm:$0xff] %vm848_vm0, %v5943_v1  ;;  %5078 = vmatpush3.bf16.msra.mxu0 %v5507_v2  ;;  %1027 = vperm.xlu1 %5506, %v921_v4   ;;  %v922_v7 = vld [vmem:[%s8404_s5 + $0x18] sm:$0xff]  ;;  %v920_v8 = vld [vmem:[%s8404_s5 + $0x8] sm:$0xff] }
  0x54   : > { %855 = vst.msk [vmem:[#allocation2 + $0x30] sm:$0xff] %vm848_vm0, %v5943_v1  ;;  %856 = vst.msk [vmem:[#allocation2 + $0x38] sm:$0xff] %vm848_vm0, %v5943_v1  ;;  %5079 = vmatprep.subr.bf16.mxu0 %v5508_v3  ;;  %v327_v9 = vld [vmem:[%s6108_s21] sm:$0xff]  ;;  %v328_v10 = vld [vmem:[%s6108_s21 + $0x8] sm:$0xff]  ;;  %s8785_s18 = smov (!%p321_p13, %s8107_s18), 63 }
  0x55   : > { %857 = vst.msk [vmem:[#allocation2 + $0x40] sm:$0xff] %vm848_vm0, %v5943_v1  ;;  %858 = vst.msk [vmem:[#allocation2 + $0x48] sm:$0xff] %vm848_vm0, %v5943_v1  ;;  %v359_v11 = vpack.c.bf16 %v328_v10, %v327_v9  ;;  %v5510_v12 = vld [vmem:[%s8400_s1] sm:$0xff]   ;;  %v952_v13 = vld [vmem:[%s8405_s6 + $0x8] sm:$0xff]  ;;  %s4611_s27 = sshll.u32 %s8785_s18, 3 }
  0x56   : > { %859 = vst.msk [vmem:[#allocation2 + $0x50] sm:$0xff] %vm848_vm0, %v5943_v1  ;;  %860 = vst.msk [vmem:[#allocation2 + $0x58] sm:$0xff] %vm848_vm0, %v5943_v1  ;;  %1022 = vperm.xlu0 %5505, %v920_v8   ;;  %v951_v14 = vld [vmem:[%s8405_s6] sm:$0xff]  ;;  %v330_v16 = vld [vmem:[%s6108_s21 + $0x18] sm:$0xff]  ;;  %s8174_s14 = scalar_lea.vmem %s8406_s7, %s4611_s27 }
  0x57   : > { %861 = vst.msk [vmem:[#allocation2 + $0x60] sm:$0xff] %vm848_vm0, %v5943_v1  ;;  %862 = vst.msk [vmem:[#allocation2 + $0x68] sm:$0xff] %vm848_vm0, %v5943_v1  ;;  %5080 = vmatpush3.bf16.msra.mxu0 %v5508_v3  ;;  %1032 = vperm.xlu1 %5506, %v922_v7   ;;  %v329_v15 = vld [vmem:[%s6108_s21 + $0x10] sm:$0xff]  ;;  %v954_v17 = vld [vmem:[%s8405_s6 + $0x18] sm:$0xff] }
  0x58   : > { %863 = vst.msk [vmem:[#allocation2 + $0x70] sm:$0xff] %vm848_vm0, %v5943_v1  ;;  %864 = vst.msk [vmem:[#allocation2 + $0x78] sm:$0xff] %vm848_vm0, %v5943_v1  ;;  %5081 = vmatprep.subr.bf16.mxu0 %v5509_v6  ;;  %5085 = vmatprep.mubr.msk.bf16.mxu0 %vm414_vm1, %v359_v11  ;;  %v331_v18 = vld [vmem:[%s6108_s21 + $0x20] sm:$0xff]  ;;  %v332_v19 = vld [vmem:[%s6108_s21 + $0x28] sm:$0xff]  ;;  %v360_v21 = vpack.c.bf16 %v330_v16, %v329_v15 }
  0x59   : > { %865 = vst.msk [vmem:[#allocation2 + $0x80] sm:$0xff] %vm848_vm0, %v5943_v1  ;;  %866 = vst.msk [vmem:[#allocation2 + $0x88] sm:$0xff] %vm848_vm0, %v5943_v1  ;;  %v953_v20 = vld [vmem:[%s8405_s6 + $0x10] sm:$0xff]  ;;  %v361_v22 = vpack.c.bf16 %v332_v19, %v331_v18  ;;  %v924_v23 = vld [vmem:[%s8404_s5 + $0x28] sm:$0xff] }
  0x5a   : > { %867 = vst.msk [vmem:[#allocation2 + $0x90] sm:$0xff] %vm848_vm0, %v5943_v1  ;;  %868 = vst.msk [vmem:[#allocation2 + $0x98] sm:$0xff] %vm848_vm0, %v5943_v1  ;;  %1756 = vperm.xlu0 %5505, %v951_v14   ;;  %v923_v24 = vld [vmem:[%s8404_s5 + $0x20] sm:$0xff]  ;;  %v334_v26 = vld [vmem:[%s6108_s21 + $0x38] sm:$0xff] }
  0x5b   : > { %869 = vst.msk [vmem:[#allocation2 + $0xa0] sm:$0xff] %vm848_vm0, %v5943_v1  ;;  %870 = vst.msk [vmem:[#allocation2 + $0xa8] sm:$0xff] %vm848_vm0, %v5943_v1  ;;  %5082 = vmatpush3.bf16.msra.mxu0 %v5509_v6  ;;  %1761 = vperm.xlu1 %5506, %v952_v13   ;;  %v333_v25 = vld [vmem:[%s6108_s21 + $0x30] sm:$0xff]  ;;  %v926_v27 = vld [vmem:[%s8404_s5 + $0x38] sm:$0xff] }
  0x5c   : > { %871 = vst.msk [vmem:[#allocation2 + $0xb0] sm:$0xff] %vm848_vm0, %v5943_v1  ;;  %872 = vst.msk [vmem:[#allocation2 + $0xb8] sm:$0xff] %vm848_vm0, %v5943_v1  ;;  %5083 = vmatprep.subr.bf16.mxu0 %v5510_v12  ;;  %v335_v28 = vld [vmem:[%s6108_s21 + $0x40] sm:$0xff]  ;;  %v336_v29 = vld [vmem:[%s6108_s21 + $0x48] sm:$0xff]  ;;  %v362_v31 = vpack.c.bf16 %v334_v26, %v333_v25 }
  0x5d   : > { %873 = vst.msk [vmem:[#allocation2 + $0xc0] sm:$0xff] %vm848_vm0, %v5943_v1  ;;  %874 = vst.msk [vmem:[#allocation2 + $0xc8] sm:$0xff] %vm848_vm0, %v5943_v1  ;;  %v925_v30 = vld [vmem:[%s8404_s5 + $0x30] sm:$0xff]  ;;  %v363_v32 = vpack.c.bf16 %v336_v29, %v335_v28  ;;  %v956_v33 = vld [vmem:[%s8405_s6 + $0x28] sm:$0xff] }
  0x5e   : > { %875 = vst.msk [vmem:[#allocation2 + $0xd0] sm:$0xff] %vm848_vm0, %v5943_v1  ;;  %876 = vst.msk [vmem:[#allocation2 + $0xd8] sm:$0xff] %vm848_vm0, %v5943_v1  ;;  %1766 = vperm.xlu0 %5505, %v953_v20   ;;  %v955_v34 = vld [vmem:[%s8405_s6 + $0x20] sm:$0xff]  ;;  %v338_v36 = vld [vmem:[%s6108_s21 + $0x58] sm:$0xff] }
  0x5f   : > { %877 = vst.msk [vmem:[#allocation2 + $0xe0] sm:$0xff] %vm848_vm0, %v5943_v1  ;;  %878 = vst.msk [vmem:[#allocation2 + $0xe8] sm:$0xff] %vm848_vm0, %v5943_v1  ;;  %5084 = vmatpush3.bf16.msra.mxu0 %v5510_v12  ;;  %1771 = vperm.xlu1 %5506, %v954_v17   ;;  %v337_v35 = vld [vmem:[%s6108_s21 + $0x50] sm:$0xff]  ;;  %v958_v37 = vld [vmem:[%s8405_s6 + $0x38] sm:$0xff] }
  0x60   : > { %879 = vst.msk [vmem:[#allocation2 + $0xf0] sm:$0xff] %vm848_vm0, %v5943_v1  ;;  %880 = vst.msk [vmem:[#allocation2 + $0xf8] sm:$0xff] %vm848_vm0, %v5943_v1  ;;  %v339_v38 = vld [vmem:[%s6108_s21 + $0x60] sm:$0xff]  ;;  %v340_v39 = vld [vmem:[%s6108_s21 + $0x68] sm:$0xff]  ;;  %v364_v41 = vpack.c.bf16 %v338_v36, %v337_v35 }
  0x61   : > { %881 = vst.msk [vmem:[#allocation2 + $0x100] sm:$0xff] %vm848_vm0, %v5943_v1  ;;  %882 = vst.msk [vmem:[#allocation2 + $0x108] sm:$0xff] %vm848_vm0, %v5943_v1  ;;  %v957_v40 = vld [vmem:[%s8405_s6 + $0x30] sm:$0xff]  ;;  %v365_v42 = vpack.c.bf16 %v340_v39, %v339_v38  ;;  %v928_v43 = vld [vmem:[%s8404_s5 + $0x48] sm:$0xff] }
  0x62   : > { %883 = vst.msk [vmem:[#allocation2 + $0x110] sm:$0xff] %vm848_vm0, %v5943_v1  ;;  %884 = vst.msk [vmem:[#allocation2 + $0x118] sm:$0xff] %vm848_vm0, %v5943_v1  ;;  %5086 = vmatmul.mubr.msk.bf16.vlgmr.msra.gmra.mxu0 %vm414_vm1, %v360_v21  ;;  %1037 = vperm.xlu0 %5505, %v923_v24   ;;  %v927_v44 = vld [vmem:[%s8404_s5 + $0x40] sm:$0xff]  ;;  %v342_v46 = vld [vmem:[%s6108_s21 + $0x78] sm:$0xff] }
  0x63   : > { %885 = vst.msk [vmem:[#allocation2 + $0x120] sm:$0xff] %vm848_vm0, %v5943_v1  ;;  %886 = vst.msk [vmem:[#allocation2 + $0x128] sm:$0xff] %vm848_vm0, %v5943_v1  ;;  %1042 = vperm.xlu1 %5506, %v924_v23   ;;  %5089 = vmatprep.mubr.msk.bf16.mxu0 %vm414_vm1, %v361_v22  ;;  %v341_v45 = vld [vmem:[%s6108_s21 + $0x70] sm:$0xff]  ;;  %v930_v47 = vld [vmem:[%s8404_s5 + $0x58] sm:$0xff] }
  0x64   : > { %v929_v48 = vld [vmem:[%s8404_s5 + $0x50] sm:$0xff]  ;;  %v344_v50 = vld [vmem:[%s6108_s21 + $0x88] sm:$0xff]  ;;  %v366_v51 = vpack.c.bf16 %v342_v46, %v341_v45  ;;  %v960_v52 = vld [vmem:[%s8405_s6 + $0x48] sm:$0xff] }
  0x65   : > { %v343_v49 = vld [vmem:[%s6108_s21 + $0x80] sm:$0xff]  ;;  %v959_v53 = vld [vmem:[%s8405_s6 + $0x40] sm:$0xff]  ;;  %v346_v56 = vld [vmem:[%s6108_s21 + $0x98] sm:$0xff] }
  0x66   : > { %1047 = vperm.xlu0 %5505, %v925_v30   ;;  %v367_v54 = vpack.c.bf16 %v344_v50, %v343_v49  ;;  %v345_v55 = vld [vmem:[%s6108_s21 + $0x90] sm:$0xff]  ;;  %v962_v57 = vld [vmem:[%s8405_s6 + $0x58] sm:$0xff]  ;;  %v347_v58 = vld [vmem:[%s6108_s21 + $0xa0] sm:$0xff] }
  0x67   : > { %1052 = vperm.xlu1 %5506, %v926_v27   ;;  %v348_v59 = vld [vmem:[%s6108_s21 + $0xa8] sm:$0xff]  ;;  %v961_v60 = vld [vmem:[%s8405_s6 + $0x50] sm:$0xff]  ;;  %v368_v61 = vpack.c.bf16 %v346_v56, %v345_v55  ;;  %v932_v62 = vld [vmem:[%s8404_s5 + $0x68] sm:$0xff] }
  0x68   : > { %v369_v63 = vpack.c.bf16 %v348_v59, %v347_v58  ;;  %v931_v0 = vld [vmem:[%s8404_s5 + $0x60] sm:$0xff]  ;;  %v350_v2 = vld [vmem:[%s6108_s21 + $0xb8] sm:$0xff]  ;;  %v934_v3 = vld [vmem:[%s8404_s5 + $0x78] sm:$0xff] }
  0x69   : > { %v349_v1 = vld [vmem:[%s6108_s21 + $0xb0] sm:$0xff]  ;;  %v351_v4 = vld [vmem:[%s6108_s21 + $0xc0] sm:$0xff]  ;;  %v352_v5 = vld [vmem:[%s6108_s21 + $0xc8] sm:$0xff] }
  0x6a   : > { %5090 = vmatmul.mubr.msk.bf16.gmra.mxu0 %vm414_vm1, %v362_v31  ;;  %1776 = vperm.xlu0 %5505, %v955_v34   ;;  %v933_v6 = vld [vmem:[%s8404_s5 + $0x70] sm:$0xff]  ;;  %v370_v7 = vpack.c.bf16 %v350_v2, %v349_v1  ;;  %v371_v8 = vpack.c.bf16 %v352_v5, %v351_v4  ;;  %v964_v9 = vld [vmem:[%s8405_s6 + $0x68] sm:$0xff]  ;;  %v963_v10 = vld [vmem:[%s8405_s6 + $0x60] sm:$0xff] }
  0x6b   : > { %1781 = vperm.xlu1 %5506, %v956_v33   ;;  %5093 = vmatprep.mubr.msk.bf16.mxu0 %vm414_vm1, %v363_v32  ;;  %v353_v11 = vld [vmem:[%s6108_s21 + $0xd0] sm:$0xff]  ;;  %v354_v12 = vld [vmem:[%s6108_s21 + $0xd8] sm:$0xff]  ;;  %v966_v13 = vld [vmem:[%s8405_s6 + $0x78] sm:$0xff] }
  0x6c   : > { %v355_v14 = vld [vmem:[%s6108_s21 + $0xe0] sm:$0xff]  ;;  %v356_v15 = vld [vmem:[%s6108_s21 + $0xe8] sm:$0xff]  ;;  %v372_v17 = vpack.c.bf16 %v354_v12, %v353_v11  ;;  %v936_v19 = vld [vmem:[%s8404_s5 + $0x88] sm:$0xff] }
  0x6d   : > { %v965_v16 = vld [vmem:[%s8405_s6 + $0x70] sm:$0xff]  ;;  %v373_v18 = vpack.c.bf16 %v356_v15, %v355_v14  ;;  %v935_v20 = vld [vmem:[%s8404_s5 + $0x80] sm:$0xff]  ;;  %v358_v22 = vld [vmem:[%s6108_s21 + $0xf8] sm:$0xff] }
  0x6e   : > { %1786 = vperm.xlu0 %5505, %v957_v40   ;;  %v357_v21 = vld [vmem:[%s6108_s21 + $0xf0] sm:$0xff]  ;;  %v938_v23 = vld [vmem:[%s8404_s5 + $0x98] sm:$0xff]  ;;  %v937_v24 = vld [vmem:[%s8404_s5 + $0x90] sm:$0xff] }
  0x6f   : > { %1791 = vperm.xlu1 %5506, %v958_v37   ;;  %v374_v25 = vpack.c.bf16 %v358_v22, %v357_v21  ;;  %v968_v26 = vld [vmem:[%s8405_s6 + $0x88] sm:$0xff]  ;;  %v967_v27 = vld [vmem:[%s8405_s6 + $0x80] sm:$0xff]  ;;  %v970_v28 = vld [vmem:[%s8405_s6 + $0x98] sm:$0xff] }
  0x70   : > { %v969_v29 = vld [vmem:[%s8405_s6 + $0x90] sm:$0xff]  ;;  %v940_v30 = vld [vmem:[%s8404_s5 + $0xa8] sm:$0xff]  ;;  %v939_v31 = vld [vmem:[%s8404_s5 + $0xa0] sm:$0xff] }
  0x71   : > { %v942_v32 = vld [vmem:[%s8404_s5 + $0xb8] sm:$0xff]  ;;  %v941_v33 = vld [vmem:[%s8404_s5 + $0xb0] sm:$0xff]  ;;  %v972_v34 = vld [vmem:[%s8405_s6 + $0xa8] sm:$0xff] }
  0x72   : > { %5094 = vmatmul.mubr.msk.bf16.gmra.mxu0 %vm414_vm1, %v364_v41  ;;  %1057 = vperm.xlu0 %5505, %v927_v44   ;;  %v971_v35 = vld [vmem:[%s8405_s6 + $0xa0] sm:$0xff]  ;;  %v974_v36 = vld [vmem:[%s8405_s6 + $0xb8] sm:$0xff]  ;;  %v973_v37 = vld [vmem:[%s8405_s6 + $0xb0] sm:$0xff] }
  0x73   : > { %1062 = vperm.xlu1 %5506, %v928_v43   ;;  %5097 = vmatprep.mubr.msk.bf16.mxu0 %vm414_vm1, %v365_v42  ;;  %v944_v38 = vld [vmem:[%s8404_s5 + $0xc8] sm:$0xff]  ;;  %v943_v39 = vld [vmem:[%s8404_s5 + $0xc0] sm:$0xff]  ;;  %v946_v40 = vld [vmem:[%s8404_s5 + $0xd8] sm:$0xff] }
  0x74   : > { %v945_v41 = vld [vmem:[%s8404_s5 + $0xd0] sm:$0xff]  ;;  %v976_v42 = vld [vmem:[%s8405_s6 + $0xc8] sm:$0xff]  ;;  %v975_v43 = vld [vmem:[%s8405_s6 + $0xc0] sm:$0xff] }
  0x75   : > { %v978_v44 = vld [vmem:[%s8405_s6 + $0xd8] sm:$0xff]  ;;  %v977_v45 = vld [vmem:[%s8405_s6 + $0xd0] sm:$0xff]  ;;  %v948_v46 = vld [vmem:[%s8404_s5 + $0xe8] sm:$0xff] }
  0x76   : > { %1067 = vperm.xlu0 %5505, %v929_v48   ;;  %v950_v48 = vld [vmem:[%s8404_s5 + $0xf8] sm:$0xff]  ;;  %v949_v49 = vld [vmem:[%s8404_s5 + $0xf0] sm:$0xff]  ;;  %v980_v50 = vld [vmem:[%s8405_s6 + $0xe8] sm:$0xff] }
  0x77   : > { %1072 = vperm.xlu1 %5506, %v930_v47   ;;  %v947_v47 = vld [vmem:[%s8404_s5 + $0xe0] sm:$0xff]  ;;  %v5512_v55 = vld [vmem:[%s8402_s3 + $0x28] sm:$0xff]   ;;  %v5513_v56 = vld [vmem:[%s8402_s3 + $0x10] sm:$0xff]  }
  0x78   : > { %5189 = vmatprep.subr.bf16.mxu0 %v5512_v55  ;;  %v5514_v59 = vld [vmem:[%s8402_s3 + $0x20] sm:$0xff]   ;;  %v6452_v11 = vld [vmem:[%s8402_s3 + $0x8] sm:$0xff]  }
  0x79   : > { %5190 = vmatpush3.bf16.msra.mxu0 %v5512_v55 }
  0x7a   : > { %5098 = vmatmul.mubr.msk.bf16.gmra.mxu0 %vm414_vm1, %v366_v51  ;;  %1796 = vperm.xlu0 %5505, %v959_v53   ;;  %v979_v51 = vld [vmem:[%s8405_s6 + $0xe0] sm:$0xff]  ;;  %v981_v53 = vld [vmem:[%s8405_s6 + $0xf0] sm:$0xff] }
  0x7b   : > { %1801 = vperm.xlu1 %5506, %v960_v52   ;;  %5101 = vmatprep.mubr.msk.bf16.mxu0 %vm414_vm1, %v367_v54  ;;  %v982_v52 = vld [vmem:[%s8405_s6 + $0xf8] sm:$0xff] }
  0x7c   : > { %v5511_v54 = vld [vmem:[%s8402_s3 + $0x18] sm:$0xff]   ;;  %5191 = vmatprep.subr.bf16.mxu0 %v5514_v59 }
  0x7d   : > { %5117 = vmatprep.subr.bf16.mxu1 %v5511_v54  ;;  %5192 = vmatpush3.bf16.msra.mxu0 %v5514_v59 }
  0x7e   : > { %1806 = vperm.xlu0 %5505, %v961_v60   ;;  %5118 = vmatpush3.bf16.msra.mxu1 %v5511_v54  ;;  %v1227_v60 = vld [vmem:[#allocation2 + $0x8] sm:$0xff] }
  0x7f   : > { %1811 = vperm.xlu1 %5506, %v962_v57   ;;  %5119 = vmatprep.subr.bf16.mxu1 %v5513_v56 }
  0x82   : > { %5102 = vmatmul.mubr.msk.bf16.gmra.mxu0 %vm414_vm1, %v368_v61  ;;  %1077 = vperm.xlu0 %5505, %v931_v0   ;;  %v1228_v61 = vld [vmem:[#allocation2 + $0x10] sm:$0xff] }
  0x83   : > { %1082 = vperm.xlu1 %5506, %v932_v62   ;;  %5105 = vmatprep.mubr.msk.bf16.mxu0 %vm414_vm1, %v369_v63  ;;  %v1259_v62 = vpack.c.bf16 %v1228_v61, %v1227_v60 }
  0x84   : > { %5120 = vmatpush3.bf16.msra.mxu1 %v5513_v56 }
  0x85   : > { %5121 = vmatprep.mubr.msk.bf16.mxu1 %vm848_vm0, %v1259_v62  ;;  %5153 = vmatprep.subr.bf16.mxu1 %v6452_v11 }
  0x86   : > { %1087 = vperm.xlu0 %5505, %v933_v6  }
  0x87   : > { %1092 = vperm.xlu1 %5506, %v934_v3  }
  0x8a   : > { %5106 = vmatmul.mubr.msk.bf16.gmra.mxu0 %vm414_vm1, %v370_v7  ;;  %1816 = vperm.xlu0 %5505, %v963_v10  }
  0x8b   : > { %1821 = vperm.xlu1 %5506, %v964_v9   ;;  %5109 = vmatprep.mubr.msk.bf16.mxu0 %vm414_vm1, %v371_v8 }
  0x8e   : > { %1826 = vperm.xlu0 %5505, %v965_v16  }
  0x8f   : > { %1831 = vperm.xlu1 %5506, %v966_v13  }
  0x92   : > { %5110 = vmatmul.mubr.msk.bf16.gmra.mxu0 %vm414_vm1, %v372_v17  ;;  %1097 = vperm.xlu0 %5505, %v935_v20   ;;  %v6474_v20 = vld [vmem:[%s8402_s3 + $0x48] sm:$0xff]  }
  0x93   : > { %1102 = vperm.xlu1 %5506, %v936_v19   ;;  %5113 = vmatprep.mubr.msk.bf16.mxu0 %vm414_vm1, %v373_v18 }
  0x94   : > { %5261 = vmatprep.subr.bf16.mxu0 %v6474_v20 }
  0x96   : > { %1107 = vperm.xlu0 %5505, %v937_v24  }
  0x97   : > { %1112 = vperm.xlu1 %5506, %v938_v23  }
  0x9a   : > { %5114 = vmatmul.mubr.msk.bf16.gmra.mxu0 %vm414_vm1, %v374_v25  ;;  %1836 = vperm.xlu0 %5505, %v967_v27   ;;  %v6485_v25 = vld [vmem:[#allocation5] ss:$0 sm:$0xff] }
  0x9b   : > { %1841 = vperm.xlu1 %5506, %v968_v26  }
  0x9e   : > { %1846 = vperm.xlu0 %5505, %v969_v29  }
  0x9f   : > { %1851 = vperm.xlu1 %5506, %v970_v28  }
  0xa2   : > { %1117 = vperm.xlu0 %5505, %v939_v31  }
  0xa3   : > { %1122 = vperm.xlu1 %5506, %v940_v30  }
  0xa6   : > { %1127 = vperm.xlu0 %5505, %v941_v33  }
  0xa7   : > { %1132 = vperm.xlu1 %5506, %v942_v32  }
  0xaa   : > { %1856 = vperm.xlu0 %5505, %v971_v35  }
  0xab   : > { %1861 = vperm.xlu1 %5506, %v972_v34  }
  0xae   : > { %1866 = vperm.xlu0 %5505, %v973_v37  }
  0xaf   : > { %1871 = vperm.xlu1 %5506, %v974_v36  }
  0xb2   : > { %1137 = vperm.xlu0 %5505, %v943_v39  }
  0xb3   : > { %1142 = vperm.xlu1 %5506, %v944_v38  }
  0xb6   : > { %1147 = vperm.xlu0 %5505, %v945_v41  }
  0xb7   : > { %1152 = vperm.xlu1 %5506, %v946_v40  }
  0xba   : > { %1876 = vperm.xlu0 %5505, %v975_v43  }
  0xbb   : > { %1881 = vperm.xlu1 %5506, %v976_v42  }
  0xbe   : > { %1886 = vperm.xlu0 %5505, %v977_v45  }
  0xbf   : > { %1891 = vperm.xlu1 %5506, %v978_v44  }
  0xc2   : > { %1157 = vperm.xlu0 %5505, %v947_v47  }
  0xc3   : > { %1162 = vperm.xlu1 %5506, %v948_v46  }
  0xc6   : > { %1167 = vperm.xlu0 %5505, %v949_v49  }
  0xc7   : > { %1172 = vperm.xlu1 %5506, %v950_v48  }
  0xca   : > { %1896 = vperm.xlu0 %5505, %v979_v51  }
  0xcb   : > { %1901 = vperm.xlu1 %5506, %v980_v50  }
  0xcd   : > { %v6419_v58 = vpop.permute.xlu0 %1017 }
  0xce   : > { %1906 = vperm.xlu0 %5505, %v981_v53   ;;  %v6417_v57 = vpop.permute.xlu1 %1027 }
  0xcf   : > { %1911 = vperm.xlu1 %5506, %v982_v52   ;;  %8514 = vst [vmem:[#allocation10_spill] sm:$0xff] %v6417_v57 }
  0xd1   : > { %v6427_v0 = vpop.permute.xlu0 %1022 }
  0xd2   : > { %v6425_v63 = vpop.permute.xlu1 %1032 }
  0xd5   : > { %v6431_v2 = vpop.permute.xlu0 %1756 }
  0xd6   : > { %v6429_v1 = vpop.permute.xlu1 %1761  ;;  %8516 = vst [vmem:[#allocation12_spill] sm:$0xff] %v6431_v2 }
  0xd7   : > { %8515 = vst [vmem:[#allocation11_spill] sm:$0xff] %v6429_v1 }
  0xd9   : > { %v6435_v4 = vpop.permute.xlu0 %1766 }
  0xda   : > { %v6433_v3 = vpop.permute.xlu1 %1771  ;;  %8518 = vst [vmem:[#allocation14_spill] sm:$0xff] %v6435_v4 }
  0xdb   : > { %8517 = vst [vmem:[#allocation13_spill] sm:$0xff] %v6433_v3 }
  0xdd   : > { %v6439_v6 = vpop.permute.xlu0 %1037 }
  0xde   : > { %v6437_v5 = vpop.permute.xlu1 %1042 }
  0xdf   : > { %8519 = vst [vmem:[#allocation15_spill] sm:$0xff] %v6437_v5 }
  0xe1   : > { %v6443_v8 = vpop.permute.xlu0 %1047 }
  0xe2   : > { %v6441_v7 = vpop.permute.xlu1 %1052  ;;  %8521 = vst [vmem:[#allocation17_spill] sm:$0xff] %v6443_v8 }
  0xe3   : > { %8520 = vst [vmem:[#allocation16_spill] sm:$0xff] %v6441_v7 }
  0xe5   : > { %v6447_v10 = vpop.permute.xlu0 %1776 }
  0xe6   : > { %v6445_v9 = vpop.permute.xlu1 %1781  ;;  %8523 = vst [vmem:[#allocation19_spill] sm:$0xff] %v6447_v10 }
  0xe7   : > { %8522 = vst [vmem:[#allocation18_spill] sm:$0xff] %v6445_v9 }
  0xe9   : > { %v6456_v13 = vpop.permute.xlu0 %1786 }
  0xea   : > { %v6454_v12 = vpop.permute.xlu1 %1791  ;;  %8525 = vst [vmem:[#allocation21_spill] sm:$0xff] %v6456_v13 }
  0xeb   : > { %8524 = vst [vmem:[#allocation20_spill] sm:$0xff] %v6454_v12 }
  0xed   : > { %v6461_v15 = vpop.permute.xlu0 %1057 }
  0xee   : > { %v6459_v14 = vpop.permute.xlu1 %1062  ;;  %8527 = vst [vmem:[#allocation23_spill] sm:$0xff] %v6461_v15 }
  0xef   : > { %8526 = vst [vmem:[#allocation22_spill] sm:$0xff] %v6459_v14 }
  0xf1   : > { %v6465_v17 = vpop.permute.xlu0 %1067 }
  0xf2   : > { %v6463_v16 = vpop.permute.xlu1 %1072  ;;  %8529 = vst [vmem:[#allocation25_spill] sm:$0xff] %v6465_v17 }
  0xf3   : > { %8528 = vst [vmem:[#allocation24_spill] sm:$0xff] %v6463_v16 }
  0xf5   : > { %v6469_v19 = vpop.permute.xlu0 %1796 }
  0xf6   : > { %v6467_v18 = vpop.permute.xlu1 %1801  ;;  %8531 = vst [vmem:[#allocation27_spill] sm:$0xff] %v6469_v19 }
  0xf7   : > { %8530 = vst [vmem:[#allocation26_spill] sm:$0xff] %v6467_v18 }
  0xf9   : > { %v6478_v22 = vpop.permute.xlu0 %1806 }
  0xfa   : > { %v6476_v21 = vpop.permute.xlu1 %1811  ;;  %8533 = vst [vmem:[#allocation29_spill] sm:$0xff] %v6478_v22 }
  0xfb   : > { %8532 = vst [vmem:[#allocation28_spill] sm:$0xff] %v6476_v21 }
  0xfd   : > { %v6483_v24 = vpop.permute.xlu0 %1077 }
  0xfe   : > { %v6481_v23 = vpop.permute.xlu1 %1082  ;;  %8535 = vst [vmem:[#allocation31_spill] sm:$0xff] %v6483_v24 }
  0xff   : > { %8534 = vst [vmem:[#allocation30_spill] sm:$0xff] %v6481_v23 }
 0x101   : > { %v6489_v27 = vpop.permute.xlu0 %1087 }
 0x102   : > { %v6487_v26 = vpop.permute.xlu1 %1092  ;;  %8537 = vst [vmem:[#allocation33_spill] sm:$0xff] %v6489_v27 }
 0x103   : > { %8536 = vst [vmem:[#allocation32_spill] sm:$0xff] %v6487_v26 }
 0x105   : > { %v6500_v35 = vpop.permute.xlu0 %1816 }
 0x106   : > { %v6498_v34 = vpop.permute.xlu1 %1821  ;;  %8539 = vst [vmem:[#allocation35_spill] sm:$0xff] %v6500_v35 }
 0x107   : > { %8538 = vst [vmem:[#allocation34_spill] sm:$0xff] %v6498_v34 }
 0x109   : > { %v6516_v46 = vpop.permute.xlu0 %1826 }
 0x10a   : > { %v6514_v45 = vpop.permute.xlu1 %1831  ;;  %8541 = vst [vmem:[#allocation37_spill] sm:$0xff] %v6516_v46 }
 0x10b   : > { %8540 = vst [vmem:[#allocation36_spill] sm:$0xff] %v6514_v45 }
 0x10d   : > { %v6532_v59 = vpop.permute.xlu0 %1097 }
 0x10e   : > { %v6530_v56 = vpop.permute.xlu1 %1102  ;;  %8543 = vst [vmem:[#allocation39_spill] sm:$0xff] %v6532_v59 }
 0x10f   : > { %8542 = vst [vmem:[#allocation38_spill] sm:$0xff] %v6530_v56 }
 0x122   : > { %v5087_v28 = vpop.f32.mrf.mxu0 }
 0x123   : > { %v6492_v29 = vadd.f32 %v5087_v28, %v6485_v25 }
 0x124   : > { %v497_v30 = vpop.f32.mrf.mxu0 }
 0x125   : > { %v4635_v31 = vmul.f32 -1.442695, %v6492_v29  ;;  %v6496_v32 = vadd.f32 %v6485_v25, %v497_v30 }
 0x126   : > { %v5088_v33 = vpop.f32.mrf.mxu0 }
 0x127   : > { %5529 = vpow2.f32 %v4635_v31  ;;  %v4633_v36 = vmul.f32 -1.442695, %v6496_v32  ;;  %v6504_v37 = vadd.f32 %v5088_v33, %v6485_v25 }
 0x128   : > { %v500_v38 = vpop.f32.mrf.mxu0 }
 0x129   : > { %5531 = vpow2.f32 %v4633_v36  ;;  %v4636_v39 = vmul.f32 -1.442695, %v6504_v37  ;;  %v6508_v40 = vadd.f32 %v6485_v25, %v500_v38 }
 0x12a   : > { %v5091_v41 = vpop.f32.mrf.mxu0 }
 0x12b   : > { %5533 = vpow2.f32 %v4636_v39  ;;  %v4634_v42 = vmul.f32 -1.442695, %v6508_v40  ;;  %v6512_v43 = vadd.f32 %v5091_v41, %v6485_v25 }
 0x12c   : > { %v513_v44 = vpop.f32.mrf.mxu0 }
 0x12d   : > { %5535 = vpow2.f32 %v4634_v42  ;;  %v4639_v47 = vmul.f32 -1.442695, %v6512_v43  ;;  %v6520_v48 = vadd.f32 %v6485_v25, %v513_v44 }
 0x12e   : > { %v5092_v49 = vpop.f32.mrf.mxu0 }
 0x12f   : > { %5537 = vpow2.f32 %v4639_v47  ;;  %v4637_v50 = vmul.f32 -1.442695, %v6520_v48  ;;  %v6524_v51 = vadd.f32 %v5092_v49, %v6485_v25  ;;  %v6546_v49 = vpop.permute.xlu1 %1112 }
 0x130   : > { %v516_v52 = vpop.f32.mrf.mxu0  ;;  %8544 = vst [vmem:[#allocation40_spill] sm:$0xff] %v6546_v49 }
 0x131   : > { %5539 = vpow2.f32 %v4637_v50  ;;  %v4640_v53 = vmul.f32 -1.442695, %v6524_v51  ;;  %v6528_v54 = vadd.f32 %v6485_v25, %v516_v52  ;;  %v6548_v50 = vpop.permute.xlu0 %1107 }
 0x132   : > { %v5095_v55 = vpop.f32.mrf.mxu0  ;;  %8545 = vst [vmem:[#allocation41_spill] sm:$0xff] %v6548_v50 }
 0x133   : > { %5541 = vpow2.f32 %v4640_v53  ;;  %v4638_v60 = vmul.f32 -1.442695, %v6528_v54  ;;  %v6536_v61 = vadd.f32 %v5095_v55, %v6485_v25 }
 0x134   : > { %v5530_v62 = vpop.eup %5529  ;;  %v529_v28 = vpop.f32.mrf.mxu0 }
 0x135   : > { %v722_v30 = vadd.f32 1.0, %v5530_v62  ;;  %5543 = vpow2.f32 %v4638_v60  ;;  %v4643_v31 = vmul.f32 -1.442695, %v6536_v61  ;;  %v6540_v33 = vadd.f32 %v6485_v25, %v529_v28 }
 0x136   : > { %v5532_v36 = vpop.eup %5531  ;;  %v5096_v38 = vpop.f32.mrf.mxu0 }
 0x137   : > { %5545 = vrcp.f32 %v722_v30  ;;  %v720_v39 = vadd.f32 1.0, %v5532_v36  ;;  %v4641_v41 = vmul.f32 -1.442695, %v6540_v33  ;;  %v6544_v42 = vadd.f32 %v5096_v38, %v6485_v25 }
 0x138   : > { %v5534_v44 = vpop.eup %5533  ;;  %5547 = vpow2.f32 %v4643_v31  ;;  %v532_v47 = vpop.f32.mrf.mxu0 }
 0x139   : > { %5549 = vrcp.f32 %v720_v39  ;;  %v723_v52 = vadd.f32 1.0, %v5534_v44  ;;  %v4644_v53 = vmul.f32 -1.442695, %v6544_v42  ;;  %v6552_v55 = vadd.f32 %v6485_v25, %v532_v47 }
 0x13a   : > { %v5536_v60 = vpop.eup %5535  ;;  %5551 = vpow2.f32 %v4641_v41  ;;  %v5099_v62 = vpop.f32.mrf.mxu0 }
 0x13b   : > { %5553 = vrcp.f32 %v723_v52  ;;  %v721_v28 = vadd.f32 1.0, %v5536_v60  ;;  %v4642_v30 = vmul.f32 -1.442695, %v6552_v55  ;;  %v6556_v31 = vadd.f32 %v5099_v62, %v6485_v25  ;;  %v6562_v52 = vpop.permute.xlu1 %1841  ;;  %v6564_v60 = vpop.permute.xlu0 %1836 }
 0x13c   : > { %v5538_v36 = vpop.eup %5537  ;;  %5555 = vpow2.f32 %v4644_v53  ;;  %v545_v38 = vpop.f32.mrf.mxu0  ;;  %8546 = vst [vmem:[#allocation42_spill] sm:$0xff] %v6562_v52  ;;  %8547 = vst [vmem:[#allocation43_spill] sm:$0xff] %v6564_v60 }
 0x13d   : > { %5557 = vrcp.f32 %v721_v28  ;;  %v726_v39 = vadd.f32 1.0, %v5538_v36  ;;  %v4647_v44 = vmul.f32 -1.442695, %v6556_v31  ;;  %v6560_v47 = vadd.f32 %v6485_v25, %v545_v38 }
 0x13e   : > { %v5540_v50 = vpop.eup %5539  ;;  %5559 = vpow2.f32 %v4642_v30  ;;  %v5100_v41 = vpop.f32.mrf.mxu0 }
 0x13f   : > { %5561 = vrcp.f32 %v726_v39  ;;  %v724_v62 = vadd.f32 1.0, %v5540_v50  ;;  %v4645_v49 = vmul.f32 -1.442695, %v6560_v47  ;;  %v6568_v53 = vadd.f32 %v5100_v41, %v6485_v25  ;;  %v6580_v23 = vpop.permute.xlu0 %1846 }
 0x140   : > { %v5542_v28 = vpop.eup %5541  ;;  %5563 = vpow2.f32 %v4647_v44  ;;  %v548_v36 = vpop.f32.mrf.mxu0  ;;  %8549 = vst [vmem:[#allocation45_spill] sm:$0xff] %v6580_v23 }
 0x141   : > { %5565 = vrcp.f32 %v724_v62  ;;  %v727_v38 = vadd.f32 1.0, %v5542_v28  ;;  %v4648_v56 = vmul.f32 -1.442695, %v6568_v53  ;;  %v6572_v30 = vadd.f32 %v6485_v25, %v548_v36  ;;  %v6578_v28 = vpop.permute.xlu1 %1851 }
 0x142   : > { %v5544_v27 = vpop.eup %5543  ;;  %5567 = vpow2.f32 %v4645_v49  ;;  %v5103_v59 = vpop.f32.mrf.mxu0  ;;  %8548 = vst [vmem:[#allocation44_spill] sm:$0xff] %v6578_v28 }
 0x143   : > { %5569 = vrcp.f32 %v727_v38  ;;  %v725_v50 = vadd.f32 1.0, %v5544_v27  ;;  %v4646_v39 = vmul.f32 -1.442695, %v6572_v30  ;;  %v6576_v41 = vadd.f32 %v5103_v59, %v6485_v25 }
 0x144   : > { %v5546_v26 = vpop.eup %5545  ;;  %5571 = vpow2.f32 %v4648_v56  ;;  %v561_v44 = vpop.f32.mrf.mxu0 }
 0x145   : > { %v5548_v62 = vpop.eup %5547  ;;  %v818_v36 = vmul.f32 %v5546_v26, %v6492_v29  ;;  %5573 = vrcp.f32 %v725_v50  ;;  %v4651_v49 = vmul.f32 -1.442695, %v6576_v41  ;;  %v6585_v27 = vadd.f32 %v6485_v25, %v561_v44  ;;  %v6599_v8 = vpop.permute.xlu1 %1122 }
 0x146   : > { %v5550_v38 = vpop.eup %5549  ;;  %v730_v17 = vadd.f32 1.0, %v5548_v62  ;;  %5575 = vpow2.f32 %v4646_v39  ;;  %v5104_v59 = vpop.f32.mrf.mxu0  ;;  %8550 = vst [vmem:[#allocation46_spill] sm:$0xff] %v6599_v8 }
 0x147   : > { %v5552_v24 = vpop.eup %5551  ;;  %889 = vst.msk [vmem:[#allocation2 + $0x28] sm:$0xff] %vm848_vm0, %v818_v36  ;;  %v816_v56 = vmul.f32 %v5550_v38, %v6496_v32  ;;  %5577 = vpow2.f32 %v4651_v49  ;;  %v4649_v16 = vmul.f32 -1.442695, %v6585_v27  ;;  %v6591_v26 = vadd.f32 %v5104_v59, %v6485_v25 }
 0x148   : > { %v5554_v29 = vpop.eup %5553  ;;  %5579 = vrcp.f32 %v730_v17  ;;  %v728_v50 = vadd.f32 1.0, %v5552_v24  ;;  %v564_v44 = vpop.f32.mrf.mxu0 }
 0x149   : > { %v5556_v14 = vpop.eup %5555  ;;  %887 = vst.msk [vmem:[#allocation2 + $0x18] sm:$0xff] %vm848_vm0, %v816_v56  ;;  %v819_v39 = vmul.f32 %v5554_v29, %v6504_v37  ;;  %5581 = vpow2.f32 %v4649_v16  ;;  %v4652_v62 = vmul.f32 -1.442695, %v6591_v26  ;;  %v6597_v32 = vadd.f32 %v6485_v25, %v564_v44  ;;  %v6601_v17 = vpop.permute.xlu0 %1117  ;;  %v1722_v44 = vld [vmem:[#allocation2 + $0x9] sm:$0xff] }
 0x14a   : > { %v5558_v36 = vpop.eup %5557  ;;  %5583 = vrcp.f32 %v728_v50  ;;  %v731_v49 = vadd.f32 1.0, %v5556_v14  ;;  %v5107_v38 = vpop.f32.mrf.mxu0  ;;  %8551 = vst [vmem:[#allocation47_spill] sm:$0xff] %v6601_v17 }
 0x14b   : > { %v5560_v59 = vpop.eup %5559  ;;  %890 = vst.msk [vmem:[#allocation2 + $0x30] sm:$0xff] %vm848_vm0, %v819_v39  ;;  %v817_v24 = vmul.f32 %v5558_v36, %v6508_v40  ;;  %5585 = vpow2.f32 %v4652_v62  ;;  %v4650_v16 = vmul.f32 -1.442695, %v6597_v32  ;;  %v6607_v37 = vadd.f32 %v5107_v38, %v6485_v25  ;;  %v6622_v15 = vpop.permute.xlu1 %1132 }
 0x14c   : > { %v5562_v56 = vpop.eup %5561  ;;  %5587 = vrcp.f32 %v731_v49  ;;  %v729_v29 = vadd.f32 1.0, %v5560_v59  ;;  %v577_v14 = vpop.f32.mrf.mxu0  ;;  %8552 = vst [vmem:[#allocation48_spill] sm:$0xff] %v6622_v15 }
 0x14d   : > { %v5564_v50 = vpop.eup %5563  ;;  %888 = vst.msk [vmem:[#allocation2 + $0x20] sm:$0xff] %vm848_vm0, %v817_v24  ;;  %v822_v8 = vmul.f32 %v5562_v56, %v6512_v43  ;;  %5589 = vpow2.f32 %v4650_v16  ;;  %v4655_v39 = vmul.f32 -1.442695, %v6607_v37  ;;  %v6613_v40 = vadd.f32 %v6485_v25, %v577_v14  ;;  %v6624_v7 = vpop.permute.xlu0 %1127 }
 0x14e   : > { %v5566_v62 = vpop.eup %5565  ;;  %5591 = vrcp.f32 %v729_v29  ;;  %v734_v36 = vadd.f32 1.0, %v5564_v50  ;;  %v5108_v38 = vpop.f32.mrf.mxu0  ;;  %v1914_v16 = vmul.f32 %v6431_v2, %v1722_v44  ;;  %8553 = vst [vmem:[#allocation49_spill] sm:$0xff] %v6624_v7 }
 0x14f   : > { %v5568_v17 = vpop.eup %5567  ;;  %893 = vst.msk [vmem:[#allocation2 + $0x48] sm:$0xff] %vm848_vm0, %v822_v8  ;;  %v820_v49 = vmul.f32 %v5566_v62, %v6520_v48  ;;  %5593 = vpow2.f32 %v4655_v39  ;;  %v4653_v59 = vmul.f32 -1.442695, %v6613_v40  ;;  %v6619_v43 = vadd.f32 %v5108_v38, %v6485_v25 }
 0x150   : > { %v5570_v24 = vpop.eup %5569  ;;  %5595 = vrcp.f32 %v734_v36  ;;  %v732_v56 = vadd.f32 1.0, %v5568_v17  ;;  %v580_v14 = vpop.f32.mrf.mxu0  ;;  %v1723_v29 = vld [vmem:[#allocation2 + $0x11] sm:$0xff] }
 0x151   : > { %v5572_v50 = vpop.eup %5571  ;;  %891 = vst.msk [vmem:[#allocation2 + $0x38] sm:$0xff] %vm848_vm0, %v820_v49  ;;  %v823_v8 = vmul.f32 %v5570_v24, %v6524_v51  ;;  %5597 = vpow2.f32 %v4653_v59  ;;  %v4656_v48 = vmul.f32 -1.442695, %v6619_v43  ;;  %v6630_v39 = vadd.f32 %v6485_v25, %v580_v14  ;;  %v1231_v24 = vld [vmem:[#allocation2 + $0x28] sm:$0xff] }
 0x152   : > { %v5574_v44 = vpop.eup %5573  ;;  %5599 = vrcp.f32 %v732_v56  ;;  %v735_v17 = vadd.f32 1.0, %v5572_v50  ;;  %v5111_v62 = vpop.f32.mrf.mxu0  ;;  %v1915_v36 = vmul.f32 %v6429_v1, %v1723_v29  ;;  %v1232_v38 = vld [vmem:[#allocation2 + $0x30] sm:$0xff] }
 0x153   : > { %v5576_v2 = vpop.eup %5575  ;;  %894 = vst.msk [vmem:[#allocation2 + $0x50] sm:$0xff] %vm848_vm0, %v823_v8  ;;  %v821_v49 = vmul.f32 %v5574_v44, %v6528_v54  ;;  %5601 = vpow2.f32 %v4656_v48  ;;  %v4654_v51 = vmul.f32 -1.442695, %v6630_v39  ;;  %v6637_v59 = vadd.f32 %v5111_v62, %v6485_v25  ;;  %v1229_v44 = vld [vmem:[#allocation2 + $0x18] sm:$0xff] }
 0x154   : > { %v5578_v14 = vpop.eup %5577  ;;  %5603 = vrcp.f32 %v735_v17  ;;  %v733_v56 = vadd.f32 1.0, %v5576_v2  ;;  %v593_v50 = vpop.f32.mrf.mxu0  ;;  %v1946_v7 = vpack.c.bf16 %v1915_v36, %v1914_v16  ;;  %v1230_v15 = vld [vmem:[#allocation2 + $0x20] sm:$0xff]  ;;  %v6639_v29 = vpack.c.bf16 %v1232_v38, %v1231_v24  ;;  %v1726_v17 = vld [vmem:[#allocation2 + $0x29] sm:$0xff] }
 0x155   : > { %v1724_v1 = vld [vmem:[#allocation2 + $0x19] sm:$0xff]  ;;  %v5580_v5 = vpop.eup %5579  ;;  %892 = vst.msk [vmem:[#allocation2 + $0x40] sm:$0xff] %vm848_vm0, %v821_v49  ;;  %v738_v54 = vadd.f32 1.0, %v5578_v14  ;;  %5605 = vpow2.f32 %v4654_v51  ;;  %v4659_v8 = vmul.f32 -1.442695, %v6637_v59  ;;  %v6644_v48 = vadd.f32 %v6485_v25, %v593_v50  ;;  %v1725_v62 = vld [vmem:[#allocation2 + $0x21] sm:$0xff]  ;;  %v6654_v14 = vpop.permute.xlu1 %1861 }
 0x156   : > { %8554 = vst [vmem:[#allocation50_spill] sm:$0xff] %v6639_v29  ;;  %v5582_v2 = vpop.eup %5581  ;;  %v826_v16 = vmul.f32 %v5580_v5, %v6536_v61  ;;  %5607 = vrcp.f32 %v733_v56  ;;  %5193 = vmatprep.mubr.msk.bf16.mxu0 %vm848_vm0, %v1946_v7  ;;  %v5112_v36 = vpop.f32.mrf.mxu0  ;;  %v6648_v38 = vpack.c.bf16 %v1230_v15, %v1229_v44  ;;  %v1916_v49 = vmul.f32 %v6435_v4, %v1724_v1  ;;  %v5516_v51 = vld [vmem:[%s8402_s3] sm:$0xff]  }
 0x157   : > { %v5584_v24 = vpop.eup %5583  ;;  %8556 = vst [vmem:[#allocation52_spill] sm:$0xff] %v6654_v14  ;;  %v6656_v50 = vpop.permute.xlu0 %1856  ;;  %5609 = vrcp.f32 %v738_v54  ;;  %v736_v57 = vadd.f32 1.0, %v5582_v2  ;;  %v4657_v5 = vmul.f32 -1.442695, %v6644_v48  ;;  %v6660_v7 = vadd.f32 %v5112_v36, %v6485_v25 }
 0x158   : > { %8555 = vst [vmem:[#allocation51_spill] sm:$0xff] %v6648_v38  ;;  %8557 = vst [vmem:[#allocation53_spill] sm:$0xff] %v6656_v50  ;;  %v5586_v15 = vpop.eup %5585  ;;  %v824_v1 = vmul.f32 %v5584_v24, %v6540_v33  ;;  %5611 = vpow2.f32 %v4659_v8  ;;  %5122 = vmatmul.mubr.msk.bf16.vlgmr.msra.gmra.mxu1 %vm848_vm0, %v6648_v38  ;;  %v596_v61 = vpop.f32.mrf.mxu0  ;;  %v1917_v56 = vmul.f32 %v6433_v3, %v1725_v62  ;;  %v1727_v44 = vld [vmem:[#allocation2 + $0x31] sm:$0xff] }
 0x159   : > { %897 = vst.msk [vmem:[#allocation2 + $0x68] sm:$0xff] %vm848_vm0, %v826_v16  ;;  %v1918_v54 = vmul.f32 %v6447_v10, %v1726_v17  ;;  %v5588_v2 = vpop.eup %5587  ;;  %5613 = vrcp.f32 %v736_v57  ;;  %v739_v4 = vadd.f32 1.0, %v5586_v15  ;;  %v4660_v36 = vmul.f32 -1.442695, %v6660_v7  ;;  %5154 = vmatpush3.bf16.msra.mxu1 %v6452_v11  ;;  %5125 = vmatprep.mubr.msk.bf16.mxu1 %vm848_vm0, %v6639_v29  ;;  %v5518_v11 = vld [vmem:[%s8402_s3 + $0x40] sm:$0xff]   ;;  %v6695_v3 = vpop.permute.xlu1 %1871 }
 0x15a   : > { %v6671_v16 = vadd.f32 %v6485_v25, %v596_v61  ;;  %v5590_v33 = vpop.eup %5589  ;;  %895 = vst.msk [vmem:[#allocation2 + $0x58] sm:$0xff] %vm848_vm0, %v824_v1  ;;  %v827_v8 = vmul.f32 %v5588_v2, %v6544_v42  ;;  %5615 = vpow2.f32 %v4657_v5  ;;  %v1947_v62 = vpack.c.bf16 %v1917_v56, %v1916_v49  ;;  %v5115_v17 = vpop.f32.mrf.mxu0  ;;  %v1236_v24 = vld [vmem:[#allocation2 + $0x50] sm:$0xff]  ;;  %5155 = vmatprep.subr.bf16.mxu1 %v5516_v51  ;;  %v1235_v42 = vld [vmem:[#allocation2 + $0x48] sm:$0xff]  ;;  %v6688_v49 = vld [vmem:[%s8402_s3 + $0x38] sm:$0xff]  }
 0x15b   : > { %v1919_v57 = vmul.f32 %v6445_v9, %v1727_v44  ;;  %v5592_v15 = vpop.eup %5591  ;;  %5617 = vrcp.f32 %v739_v4  ;;  %v737_v61 = vadd.f32 1.0, %v5590_v33  ;;  %v6683_v1 = vadd.f32 %v5115_v17, %v6485_v25  ;;  %8558 = vst [vmem:[#allocation54_spill] sm:$0xff] %v6695_v3  ;;  %v6697_v29 = vpop.permute.xlu0 %1866 }
 0x15c   : > { %v4658_v10 = vmul.f32 -1.442695, %v6671_v16  ;;  %v5594_v5 = vpop.eup %5593  ;;  %898 = vst.msk [vmem:[#allocation2 + $0x70] sm:$0xff] %vm848_vm0, %v827_v8  ;;  %v825_v56 = vmul.f32 %v5592_v15, %v6552_v55  ;;  %5619 = vpow2.f32 %v4660_v36  ;;  %5194 = vmatmul.mubr.msk.bf16.vlgmr.msra.gmra.mxu0 %vm848_vm0, %v1947_v62  ;;  %v609_v4 = vpop.f32.mrf.mxu0  ;;  %v1234_v2 = vld [vmem:[#allocation2 + $0x40] sm:$0xff]  ;;  %v6693_v33 = vpack.c.bf16 %v1236_v24, %v1235_v42  ;;  %8559 = vst [vmem:[#allocation55_spill] sm:$0xff] %v6697_v29  ;;  %v1233_v36 = vld [vmem:[#allocation2 + $0x38] sm:$0xff] }
 0x15d   : > { %v1948_v44 = vpack.c.bf16 %v1919_v57, %v1918_v54  ;;  %v1728_v17 = vld [vmem:[#allocation2 + $0x39] sm:$0xff]  ;;  %v5596_v9 = vpop.eup %5595  ;;  %5621 = vrcp.f32 %v737_v61  ;;  %v742_v38 = vadd.f32 1.0, %v5594_v5  ;;  %v4663_v8 = vmul.f32 -1.442695, %v6683_v1  ;;  %v1729_v62 = vld [vmem:[#allocation2 + $0x41] sm:$0xff]  ;;  %v1730_v15 = vld [vmem:[#allocation2 + $0x49] sm:$0xff]  ;;  %5156 = vmatpush3.bf16.msra.mxu1 %v5516_v51  ;;  %5262 = vmatpush3.bf16.msra.mxu0 %v6474_v20 }
 0x15e   : > { %v6701_v55 = vadd.f32 %v6485_v25, %v609_v4  ;;  %v5598_v54 = vpop.eup %5597  ;;  %896 = vst.msk [vmem:[#allocation2 + $0x60] sm:$0xff] %vm848_vm0, %v825_v56  ;;  %v830_v57 = vmul.f32 %v5596_v9, %v6556_v31  ;;  %5623 = vpow2.f32 %v4658_v10  ;;  %v5116_v24 = vpop.f32.mrf.mxu0  ;;  %v6707_v61 = vpack.c.bf16 %v1234_v2, %v1233_v36  ;;  %5263 = vmatprep.subr.bf16.mxu0 %v5518_v11  ;;  %v6713_v51 = vld [vmem:[%s8402_s3 + $0x68] sm:$0xff]  }
 0x15f   : > { %5197 = vmatprep.mubr.msk.bf16.mxu0 %vm848_vm0, %v1948_v44  ;;  %v1920_v42 = vmul.f32 %v6456_v13, %v1728_v17  ;;  %v5600_v20 = vpop.eup %5599  ;;  %5625 = vrcp.f32 %v742_v38  ;;  %v740_v5 = vadd.f32 1.0, %v5598_v54  ;;  %v6717_v9 = vadd.f32 %v5116_v24, %v6485_v25  ;;  %5225 = vmatprep.subr.bf16.mxu1 %v6688_v49 }
 0x160   : > { %v4661_v56 = vmul.f32 -1.442695, %v6701_v55  ;;  %v5602_v10 = vpop.eup %5601  ;;  %901 = vst.msk [vmem:[#allocation2 + $0x88] sm:$0xff] %vm848_vm0, %v830_v57  ;;  %v828_v31 = vmul.f32 %v5600_v20, %v6560_v47  ;;  %5627 = vpow2.f32 %v4663_v8  ;;  %5126 = vmatmul.mubr.msk.bf16.gmra.mxu1 %vm848_vm0, %v6707_v61  ;;  %v612_v4 = vpop.f32.mrf.mxu0  ;;  %v1921_v38 = vmul.f32 %v6454_v12, %v1729_v62 }
 0x161   : > { %v1922_v44 = vmul.f32 %v6469_v19, %v1730_v15  ;;  %v5604_v2 = vpop.eup %5603  ;;  %5629 = vrcp.f32 %v740_v5  ;;  %v743_v17 = vadd.f32 1.0, %v5602_v10  ;;  %v4664_v36 = vmul.f32 -1.442695, %v6717_v9  ;;  %5129 = vmatprep.mubr.msk.bf16.mxu1 %vm848_vm0, %v6693_v33  ;;  %v1731_v47 = vld [vmem:[#allocation2 + $0x51] sm:$0xff]  ;;  %5264 = vmatpush3.bf16.msra.mxu0 %v5518_v11  ;;  %v6736_v20 = vpop.permute.xlu1 %1142  ;;  %v8588_v19 = vld [vmem:[#allocation40_spill] sm:$0xff] }
 0x162   : > { %v6728_v54 = vadd.f32 %v6485_v25, %v612_v4  ;;  %v5606_v8 = vpop.eup %5605  ;;  %899 = vst.msk [vmem:[#allocation2 + $0x78] sm:$0xff] %vm848_vm0, %v828_v31  ;;  %v831_v62 = vmul.f32 %v5604_v2, %v6568_v53  ;;  %5631 = vpow2.f32 %v4661_v56  ;;  %v1949_v15 = vpack.c.bf16 %v1921_v38, %v1920_v42  ;;  %5333 = vmatprep.subr.bf16.mxu0 %v6713_v51  ;;  %v6738_v25 = vpop.permute.xlu0 %1137  ;;  %v1237_v56 = vld [vmem:[#allocation2 + $0x58] sm:$0xff] }
 0x163   : > { %v1923_v57 = vmul.f32 %v6467_v18, %v1731_v47  ;;  %v5608_v24 = vpop.eup %5607  ;;  %8560 = vst [vmem:[#allocation56_spill] sm:$0xff] %v6738_v25  ;;  %5633 = vrcp.f32 %v743_v17  ;;  %v741_v5 = vadd.f32 1.0, %v5606_v8  ;;  %v1240_v31 = vld [vmem:[#allocation2 + $0x70] sm:$0xff] }
 0x164   : > { %v4662_v11 = vmul.f32 -1.442695, %v6728_v54  ;;  %v5610_v10 = vpop.eup %5609  ;;  %902 = vst.msk [vmem:[#allocation2 + $0x90] sm:$0xff] %vm848_vm0, %v831_v62  ;;  %v829_v53 = vmul.f32 %v5608_v24, %v6572_v30  ;;  %5635 = vpow2.f32 %v4664_v36  ;;  %5198 = vmatmul.mubr.msk.bf16.gmra.mxu0 %vm848_vm0, %v1949_v15  ;;  %v1239_v36 = vld [vmem:[#allocation2 + $0x68] sm:$0xff] }
 0x165   : > { %v1950_v42 = vpack.c.bf16 %v1923_v57, %v1922_v44  ;;  %v5612_v4 = vpop.eup %5611  ;;  %v834_v38 = vmul.f32 %v5610_v10, %v6576_v41  ;;  %5637 = vrcp.f32 %v741_v5  ;;  %v1238_v2 = vld [vmem:[#allocation2 + $0x60] sm:$0xff]  ;;  %v6752_v15 = vpack.c.bf16 %v1240_v31, %v1239_v36  ;;  %v1734_v24 = vld [vmem:[#allocation2 + $0x69] sm:$0xff] }
 0x166   : > { %v1732_v17 = vld [vmem:[#allocation2 + $0x59] sm:$0xff]  ;;  %v1733_v47 = vld [vmem:[#allocation2 + $0x61] sm:$0xff]  ;;  %v5614_v8 = vpop.eup %5613  ;;  %900 = vst.msk [vmem:[#allocation2 + $0x80] sm:$0xff] %vm848_vm0, %v829_v53  ;;  %v746_v13 = vadd.f32 1.0, %v5612_v4  ;;  %5639 = vpow2.f32 %v4662_v11  ;;  %v6747_v30 = vpack.c.bf16 %v1238_v2, %v1237_v56  ;;  %v6757_v53 = vpop.permute.xlu1 %1152 }
 0x167   : > { %5201 = vmatprep.mubr.msk.bf16.mxu0 %vm848_vm0, %v1950_v42  ;;  %v1924_v44 = vmul.f32 %v6478_v22, %v1732_v17  ;;  %v5616_v62 = vpop.eup %5615  ;;  %905 = vst.msk [vmem:[#allocation2 + $0xa8] sm:$0xff] %vm848_vm0, %v834_v38  ;;  %v832_v41 = vmul.f32 %v5614_v8, %v6585_v27  ;;  %v1925_v57 = vmul.f32 %v6476_v21, %v1733_v47  ;;  %v6759_v42 = vpop.permute.xlu0 %1147 }
 0x168   : > { %v5618_v5 = vpop.eup %5617  ;;  %5641 = vrcp.f32 %v746_v13  ;;  %v744_v11 = vadd.f32 1.0, %v5616_v62  ;;  %5130 = vmatmul.mubr.msk.bf16.gmra.mxu1 %vm848_vm0, %v6747_v30  ;;  %v1926_v38 = vmul.f32 %v6500_v35, %v1734_v24 }
 0x169   : > { %v5620_v10 = vpop.eup %5619  ;;  %903 = vst.msk [vmem:[#allocation2 + $0x98] sm:$0xff] %vm848_vm0, %v832_v41  ;;  %v835_v27 = vmul.f32 %v5618_v5, %v6591_v26  ;;  %5133 = vmatprep.mubr.msk.bf16.mxu1 %vm848_vm0, %v6752_v15  ;;  %v1951_v56 = vpack.c.bf16 %v1925_v57, %v1924_v44  ;;  %v1735_v31 = vld [vmem:[#allocation2 + $0x71] sm:$0xff] }
 0x16a   : > { %v5622_v4 = vpop.eup %5621  ;;  %5643 = vrcp.f32 %v744_v11  ;;  %v747_v13 = vadd.f32 1.0, %v5620_v10  ;;  %v1927_v2 = vmul.f32 %v6498_v34, %v1735_v31  ;;  %v1241_v44 = vld [vmem:[#allocation2 + $0x78] sm:$0xff]  ;;  %v1243_v31 = vld [vmem:[#allocation2 + $0x88] sm:$0xff] }
 0x16b   : > { %v5624_v17 = vpop.eup %5623  ;;  %906 = vst.msk [vmem:[#allocation2 + $0xb0] sm:$0xff] %vm848_vm0, %v835_v27  ;;  %v833_v47 = vmul.f32 %v5622_v4, %v6597_v32  ;;  %v1244_v62 = vld [vmem:[#allocation2 + $0x90] sm:$0xff] }
 0x16c   : > { %v5626_v8 = vpop.eup %5625  ;;  %5645 = vrcp.f32 %v747_v13  ;;  %v745_v26 = vadd.f32 1.0, %v5624_v17  ;;  %5202 = vmatmul.mubr.msk.bf16.gmra.mxu0 %vm848_vm0, %v1951_v56  ;;  %v1952_v36 = vpack.c.bf16 %v1927_v2, %v1926_v38  ;;  %v1738_v4 = vld [vmem:[#allocation2 + $0x89] sm:$0xff]  ;;  %v6776_v38 = vpop.permute.xlu1 %1881  ;;  %v6782_v17 = vpack.c.bf16 %v1244_v62, %v1243_v31 }
 0x16d   : > { %v5628_v41 = vpop.eup %5627  ;;  %904 = vst.msk [vmem:[#allocation2 + $0xa0] sm:$0xff] %vm848_vm0, %v833_v47  ;;  %v838_v57 = vmul.f32 %v5626_v8, %v6607_v37  ;;  %v1242_v24 = vld [vmem:[#allocation2 + $0x80] sm:$0xff]  ;;  %8561 = vst [vmem:[#allocation57_spill] sm:$0xff] %v6776_v38  ;;  %v6778_v2 = vpop.permute.xlu0 %1876  ;;  %v1930_v62 = vmul.f32 %v6564_v60, %v1738_v4  ;;  %v6978_v34 = vld [vmem:[#allocation2 + $0x8f] sm:$0xff] }
 0x16e   : > { %v1736_v5 = vld [vmem:[#allocation2 + $0x79] sm:$0xff]  ;;  %v1737_v11 = vld [vmem:[#allocation2 + $0x81] sm:$0xff]  ;;  %v5630_v10 = vpop.eup %5629  ;;  %5647 = vrcp.f32 %v745_v26  ;;  %v750_v27 = vadd.f32 1.0, %v5628_v41  ;;  %5205 = vmatprep.mubr.msk.bf16.mxu0 %vm848_vm0, %v1952_v36  ;;  %v6773_v32 = vpack.c.bf16 %v1242_v24, %v1241_v44  ;;  %8562 = vst [vmem:[#allocation58_spill] sm:$0xff] %v6778_v2 }
 0x16f   : > { %v1928_v56 = vmul.f32 %v6516_v46, %v1736_v5  ;;  %v5632_v13 = vpop.eup %5631  ;;  %909 = vst.msk [vmem:[#allocation2 + $0xc8] sm:$0xff] %vm848_vm0, %v838_v57  ;;  %v836_v37 = vmul.f32 %v5630_v10, %v6613_v40  ;;  %v1929_v47 = vmul.f32 %v6514_v45, %v1737_v11  ;;  %v6971_v60 = vld [vmem:[#allocation2 + $0x87] sm:$0xff] }
 0x170   : > { %v5634_v8 = vpop.eup %5633  ;;  %5649 = vrcp.f32 %v750_v27  ;;  %v748_v26 = vadd.f32 1.0, %v5632_v13  ;;  %5134 = vmatmul.mubr.msk.bf16.gmra.mxu1 %vm848_vm0, %v6773_v32  ;;  %v1739_v36 = vld [vmem:[#allocation2 + $0x91] sm:$0xff]  ;;  %v8583_v45 = vld [vmem:[#allocation32_spill] sm:$0xff] }
 0x171   : > { %v5636_v44 = vpop.eup %5635  ;;  %907 = vst.msk [vmem:[#allocation2 + $0xb8] sm:$0xff] %vm848_vm0, %v836_v37  ;;  %v839_v41 = vmul.f32 %v5634_v8, %v6619_v43  ;;  %5137 = vmatprep.mubr.msk.bf16.mxu1 %vm848_vm0, %v6782_v17  ;;  %v1953_v40 = vpack.c.bf16 %v1929_v47, %v1928_v56  ;;  %v1931_v57 = vmul.f32 %v6562_v52, %v1739_v36  ;;  %v1245_v31 = vld [vmem:[#allocation2 + $0x98] sm:$0xff]  ;;  %v6796_v8 = vpop.permute.xlu1 %1891 }
 0x172   : > { %v5638_v24 = vpop.eup %5637  ;;  %5651 = vrcp.f32 %v748_v26  ;;  %v751_v5 = vadd.f32 1.0, %v5636_v44  ;;  %v1248_v13 = vld [vmem:[#allocation2 + $0xb0] sm:$0xff]  ;;  %8563 = vst [vmem:[#allocation59_spill] sm:$0xff] %v6796_v8  ;;  %v6798_v26 = vpop.permute.xlu0 %1886 }
 0x173   : > { %v5640_v11 = vpop.eup %5639  ;;  %910 = vst.msk [vmem:[#allocation2 + $0xd0] sm:$0xff] %vm848_vm0, %v839_v41  ;;  %v837_v10 = vmul.f32 %v5638_v24, %v6630_v39  ;;  %v1954_v27 = vpack.c.bf16 %v1931_v57, %v1930_v62  ;;  %8564 = vst [vmem:[#allocation60_spill] sm:$0xff] %v6798_v26  ;;  %v1742_v62 = vld [vmem:[#allocation2 + $0xa9] sm:$0xff] }
 0x174   : > { %5653 = vrcp.f32 %v751_v5  ;;  %v749_v43 = vadd.f32 1.0, %v5640_v11  ;;  %5206 = vmatmul.mubr.msk.bf16.gmra.mxu0 %vm848_vm0, %v1953_v40  ;;  %v1246_v56 = vld [vmem:[#allocation2 + $0xa0] sm:$0xff]  ;;  %v1247_v40 = vld [vmem:[#allocation2 + $0xa8] sm:$0xff] }
 0x175   : > { %v1740_v37 = vld [vmem:[#allocation2 + $0x99] sm:$0xff]  ;;  %v1741_v4 = vld [vmem:[#allocation2 + $0xa1] sm:$0xff]  ;;  %v5642_v47 = vpop.eup %5641  ;;  %908 = vst.msk [vmem:[#allocation2 + $0xc0] sm:$0xff] %vm848_vm0, %v837_v10  ;;  %5209 = vmatprep.mubr.msk.bf16.mxu0 %vm848_vm0, %v1954_v27  ;;  %v6802_v39 = vpack.c.bf16 %v1246_v56, %v1245_v31  ;;  %v6807_v24 = vpack.c.bf16 %v1248_v13, %v1247_v40  ;;  %v6819_v56 = vpop.permute.xlu1 %1162 }
 0x176   : > { %v1932_v36 = vmul.f32 %v6580_v23, %v1740_v37  ;;  %v1933_v44 = vmul.f32 %v6578_v28, %v1741_v4  ;;  %v842_v41 = vmul.f32 %v5642_v47, %v6637_v59  ;;  %5655 = vrcp.f32 %v749_v43  ;;  %v6990_v21 = vld [vmem:[#allocation2 + $0x9f] sm:$0xff]  ;;  %v6993_v18 = vld [vmem:[#allocation2 + $0xa7] sm:$0xff] }
 0x177   : > { %v5644_v57 = vpop.eup %5643  ;;  %v1934_v59 = vmul.f32 %v6656_v50, %v1742_v62  ;;  %v1194_v12 = vmul.f32 %v8588_v19, %v6990_v21 }
 0x178   : > { %913 = vst.msk [vmem:[#allocation2 + $0xe8] sm:$0xff] %vm848_vm0, %v842_v41  ;;  %v840_v5 = vmul.f32 %v5644_v57, %v6644_v48  ;;  %5138 = vmatmul.mubr.msk.bf16.gmra.mxu1 %vm848_vm0, %v6802_v39  ;;  %v1955_v11 = vpack.c.bf16 %v1933_v44, %v1932_v36  ;;  %v1743_v10 = vld [vmem:[#allocation2 + $0xb1] sm:$0xff]  ;;  %v6821_v48 = vpop.permute.xlu0 %1157 }
 0x179   : > { %v5646_v27 = vpop.eup %5645  ;;  %5141 = vmatprep.mubr.msk.bf16.mxu1 %vm848_vm0, %v6807_v24  ;;  %v1935_v31 = vmul.f32 %v6654_v14, %v1743_v10  ;;  %8565 = vst [vmem:[#allocation61_spill] sm:$0xff] %v6821_v48  ;;  %v1249_v4 = vld [vmem:[#allocation2 + $0xb8] sm:$0xff] }
 0x17a   : > { %911 = vst.msk [vmem:[#allocation2 + $0xd8] sm:$0xff] %vm848_vm0, %v840_v5  ;;  %v843_v13 = vmul.f32 %v5646_v27, %v6660_v7  ;;  %v1252_v47 = vld [vmem:[#allocation2 + $0xd0] sm:$0xff]  ;;  %v1251_v27 = vld [vmem:[#allocation2 + $0xc8] sm:$0xff]  ;;  %v6940_v14 = vld [vmem:[#allocation2 + $0x5f] sm:$0xff] }
 0x17b   : > { %v5648_v43 = vpop.eup %5647  ;;  %v1956_v37 = vpack.c.bf16 %v1935_v31, %v1934_v59  ;;  %v6833_v59 = vpack.c.bf16 %v1252_v47, %v1251_v27 }
 0x17c   : > { %914 = vst.msk [vmem:[#allocation2 + $0xf0] sm:$0xff] %vm848_vm0, %v843_v13  ;;  %v841_v36 = vmul.f32 %v5648_v43, %v6671_v16  ;;  %5210 = vmatmul.mubr.msk.bf16.gmra.mxu0 %vm848_vm0, %v1955_v11  ;;  %v1250_v44 = vld [vmem:[#allocation2 + $0xc0] sm:$0xff]  ;;  %v1746_v11 = vld [vmem:[#allocation2 + $0xc9] sm:$0xff] }
 0x17d   : > { %v1744_v41 = vld [vmem:[#allocation2 + $0xb9] sm:$0xff]  ;;  %v1745_v40 = vld [vmem:[#allocation2 + $0xc1] sm:$0xff]  ;;  %v5650_v62 = vpop.eup %5649  ;;  %5213 = vmatprep.mubr.msk.bf16.mxu0 %vm848_vm0, %v1956_v37  ;;  %v6827_v7 = vpack.c.bf16 %v1250_v44, %v1249_v4  ;;  %v6839_v37 = vpop.permute.xlu1 %1172 }
 0x17e   : > { %v1936_v57 = vmul.f32 %v6697_v29, %v1744_v41  ;;  %v1937_v5 = vmul.f32 %v6695_v3, %v1745_v40  ;;  %912 = vst.msk [vmem:[#allocation2 + $0xe0] sm:$0xff] %vm848_vm0, %v841_v36  ;;  %v846_v10 = vmul.f32 %v5650_v62, %v6683_v1  ;;  %8566 = vst [vmem:[#allocation62_spill] sm:$0xff] %v6839_v37  ;;  %v6841_v4 = vpop.permute.xlu0 %1167  ;;  %v7012_v19 = vld [vmem:[#allocation2 + $0xbf] sm:$0xff] }
 0x17f   : > { %v5652_v16 = vpop.eup %5651  ;;  %v1938_v36 = vmul.f32 %v6778_v2, %v1746_v11 }
 0x180   : > { %917 = vst.msk [vmem:[#allocation2 + $0x108] sm:$0xff] %vm848_vm0, %v846_v10  ;;  %v844_v31 = vmul.f32 %v5652_v16, %v6701_v55  ;;  %5142 = vmatmul.mubr.msk.bf16.gmra.mxu1 %vm848_vm0, %v6827_v7  ;;  %v1957_v13 = vpack.c.bf16 %v1937_v5, %v1936_v57  ;;  %v1255_v16 = vld [vmem:[#allocation2 + $0xe8] sm:$0xff] }
 0x181   : > { %v5654_v43 = vpop.eup %5653  ;;  %5145 = vmatprep.mubr.msk.bf16.mxu1 %vm848_vm0, %v6833_v59  ;;  %v1747_v1 = vld [vmem:[#allocation2 + $0xd1] sm:$0xff] }
 0x182   : > { %915 = vst.msk [vmem:[#allocation2 + $0xf8] sm:$0xff] %vm848_vm0, %v844_v31  ;;  %v847_v47 = vmul.f32 %v5654_v43, %v6717_v9  ;;  %v1939_v55 = vmul.f32 %v6776_v38, %v1747_v1  ;;  %v1253_v62 = vld [vmem:[#allocation2 + $0xd8] sm:$0xff] }
 0x183   : > { %v5656_v44 = vpop.eup %5655  ;;  %v1256_v57 = vld [vmem:[#allocation2 + $0xf0] sm:$0xff] }
 0x184   : > { %918 = vst.msk [vmem:[#allocation2 + $0x110] sm:$0xff] %vm848_vm0, %v847_v47  ;;  %v845_v41 = vmul.f32 %v5656_v44, %v6728_v54  ;;  %5214 = vmatmul.mubr.msk.bf16.gmra.mxu0 %vm848_vm0, %v1957_v13  ;;  %v1958_v40 = vpack.c.bf16 %v1939_v55, %v1938_v36  ;;  %v6858_v54 = vpop.permute.xlu1 %1901  ;;  %v6860_v13 = vpop.permute.xlu0 %1896  ;;  %v6862_v43 = vpack.c.bf16 %v1256_v57, %v1255_v16  ;;  %v1750_v1 = vld [vmem:[#allocation2 + $0xe9] sm:$0xff]  ;;  %v8578_v38 = vld [vmem:[#allocation22_spill] sm:$0xff] }
 0x185   : > { %v1254_v5 = vld [vmem:[#allocation2 + $0xe0] sm:$0xff]  ;;  %8567 = vst [vmem:[#allocation63_spill] sm:$0xff] %v6858_v54  ;;  %8568 = vst [vmem:[#allocation64_spill] sm:$0xff] %v6860_v13  ;;  %v984_v36 = vld [vmem:[#allocation2 + $0xf] sm:$0xff] }
 0x186   : > { %v1748_v10 = vld [vmem:[#allocation2 + $0xd9] sm:$0xff]  ;;  %v1749_v27 = vld [vmem:[#allocation2 + $0xe1] sm:$0xff]  ;;  %916 = vst.msk [vmem:[#allocation2 + $0x100] sm:$0xff] %vm848_vm0, %v845_v41  ;;  %5217 = vmatprep.mubr.msk.bf16.mxu0 %vm848_vm0, %v1958_v40  ;;  %v6854_v9 = vpack.c.bf16 %v1254_v5, %v1253_v62  ;;  %v1942_v41 = vmul.f32 %v6860_v13, %v1750_v1  ;;  %v1176_v57 = vmul.f32 %v6427_v0, %v984_v36 }
 0x187   : > { %v1940_v11 = vmul.f32 %v6798_v26, %v1748_v10  ;;  %v1941_v31 = vmul.f32 %v6796_v8, %v1749_v27  ;;  %v983_v47 = vld [vmem:[#allocation2 + $0x7] sm:$0xff] }
 0x188   : > { %5146 = vmatmul.mubr.msk.bf16.gmra.mxu1 %vm848_vm0, %v6854_v9  ;;  %v1175_v62 = vmul.f32 %v6419_v58, %v983_v47  ;;  %v6873_v27 = vpop.permute.xlu1 %1911  ;;  %v6875_v16 = vpop.permute.xlu0 %1906  ;;  %v8574_v13 = vld [vmem:[#allocation16_spill] sm:$0xff]  ;;  %v8577_v8 = vld [vmem:[#allocation17_spill] sm:$0xff] }
 0x189   : > { %v1959_v55 = vpack.c.bf16 %v1941_v31, %v1940_v11  ;;  %5149 = vmatprep.mubr.msk.bf16.mxu1 %vm848_vm0, %v6862_v43  ;;  %v1751_v44 = vld [vmem:[#allocation2 + $0xf1] sm:$0xff]  ;;  %8569 = vst [vmem:[#allocation65_spill] sm:$0xff] %v6873_v27  ;;  %8570 = vst [vmem:[#allocation66_spill] sm:$0xff] %v6875_v16 }
 0x18a   : > { %v1943_v40 = vmul.f32 %v6858_v54, %v1751_v44  ;;  %v1257_v10 = vld [vmem:[#allocation2 + $0xf8] sm:$0xff]  ;;  %v1207_v36 = vpack.c.bf16 %v1176_v57, %v1175_v62 }
 0x18b   : > { %v6882_v54 = vld [vmem:[#allocation2 + $0x1f] sm:$0xff]  ;;  %v8571_v62 = vld [vmem:[#allocation10_spill] sm:$0xff] }
 0x18c   : > { %5218 = vmatmul.mubr.msk.bf16.gmra.mxu0 %vm848_vm0, %v1959_v55  ;;  %v1960_v5 = vpack.c.bf16 %v1943_v40, %v1942_v41  ;;  %v6886_v41 = vld [vmem:[#allocation2 + $0x27] sm:$0xff]  ;;  %v6889_v40 = vld [vmem:[#allocation2 + $0x17] sm:$0xff]  ;;  %8587 = vst [vmem:[#allocation10_spill] sm:$0xff] %v6993_v18 }
 0x18d   : > { %v1258_v11 = vld [vmem:[#allocation2 + $0x100] sm:$0xff]  ;;  %v1177_v57 = vmul.f32 %v8571_v62, %v6889_v40 }
 0x18e   : > { %v1752_v31 = vld [vmem:[#allocation2 + $0xf9] sm:$0xff]  ;;  %v1753_v26 = vld [vmem:[#allocation2 + $0x101] sm:$0xff]  ;;  %5221 = vmatprep.mubr.msk.bf16.mxu0 %vm848_vm0, %v1960_v5  ;;  %v6878_v1 = vpack.c.bf16 %v1258_v11, %v1257_v10  ;;  %v1178_v5 = vmul.f32 %v6425_v63, %v6882_v54  ;;  %v6893_v10 = vld [vmem:[#allocation2 + $0x2f] sm:$0xff] }
 0x18f   : > { %v1944_v44 = vmul.f32 %v6875_v16, %v1752_v31  ;;  %v1945_v47 = vmul.f32 %v6873_v27, %v1753_v26  ;;  %v1179_v26 = vmul.f32 %v6439_v6, %v6886_v41  ;;  %v8572_v11 = vld [vmem:[#allocation51_spill] sm:$0xff] }
 0x190   : > { %5150 = vmatmul.mubr.msk.bf16.gmra.mxu1 %vm848_vm0, %v6878_v1  ;;  %v8573_v31 = vld [vmem:[#allocation15_spill] sm:$0xff] }
 0x191   : > { %v1961_v55 = vpack.c.bf16 %v1945_v47, %v1944_v44  ;;  %5157 = vmatprep.mubr.msk.bf16.mxu1 %vm848_vm0, %v1207_v36  ;;  %v1180_v44 = vmul.f32 %v8573_v31, %v6893_v10  ;;  %v1208_v47 = vpack.c.bf16 %v1178_v5, %v1177_v57  ;;  %v5520_v36 = vld [vmem:[%s8402_s3 + $0x30] sm:$0xff]   ;;  %v6907_v16 = vld [vmem:[#allocation2 + $0x3f] sm:$0xff] }
 0x192   : > { %v1182_v5 = vmul.f32 %v8574_v13, %v6907_v16  ;;  %v6918_v57 = vld [vmem:[#allocation2 + $0x4f] sm:$0xff] }
 0x193   : > { %v1209_v27 = vpack.c.bf16 %v1180_v44, %v1179_v26  ;;  %v6923_v26 = vld [vmem:[%s8402_s3 + $0x58] sm:$0xff]   ;;  %v1184_v2 = vmul.f32 %v8578_v38, %v6918_v57 }
 0x194   : > { %5222 = vmatmul.mubr.msk.bf16.gmra.mxu0 %vm848_vm0, %v1961_v55  ;;  %v6910_v55 = vld [vmem:[#allocation2 + $0x47] sm:$0xff]  ;;  %v8575_v44 = vld [vmem:[#allocation23_spill] sm:$0xff] }
 0x195   : > { %5265 = vmatprep.mubr.msk.bf16.mxu0 %vm848_vm0, %v8572_v11  ;;  %v6914_v11 = vld [vmem:[#allocation2 + $0x37] sm:$0xff] }
 0x196   : > { %v1181_v29 = vmul.f32 %v8577_v8, %v6914_v11 }
 0x198   : > { %5158 = vmatmul.mubr.msk.bf16.vlgmr.msra.gmra.mxu1 %vm848_vm0, %v1208_v47  ;;  %v1183_v47 = vmul.f32 %v8575_v44, %v6910_v55  ;;  %v1210_v3 = vpack.c.bf16 %v1182_v5, %v1181_v29  ;;  %v6951_v29 = vld [vmem:[#allocation2 + $0x57] sm:$0xff] }
 0x199   : > { %5226 = vmatpush3.bf16.msra.mxu1 %v6688_v49  ;;  %5161 = vmatprep.mubr.msk.bf16.mxu1 %vm848_vm0, %v1209_v27  ;;  %v5522_v49 = vld [vmem:[%s8402_s3 + $0x60] sm:$0xff]   ;;  %v8576_v27 = vld [vmem:[#allocation50_spill] sm:$0xff] }
 0x19a   : > { %5227 = vmatprep.subr.bf16.mxu1 %v5520_v36  ;;  %v1211_v23 = vpack.c.bf16 %v1184_v2, %v1183_v47  ;;  %v6955_v2 = vld [vmem:[#allocation2 + $0x6f] sm:$0xff]  ;;  %v8580_v5 = vld [vmem:[#allocation31_spill] sm:$0xff] }
 0x19c   : > { %5266 = vmatmul.mubr.msk.bf16.vlgmr.msra.gmra.mxu0 %vm848_vm0, %v8576_v27  ;;  %v6945_v27 = vld [vmem:[%s8402_s3 + $0x88] sm:$0xff]  }
 0x19d   : > { %5269 = vmatprep.mubr.msk.bf16.mxu0 %vm848_vm0, %v6707_v61  ;;  %5228 = vmatpush3.bf16.msra.mxu1 %v5520_v36  ;;  %v6948_v61 = vld [vmem:[#allocation2 + $0x67] sm:$0xff] }
 0x19e   : > { %5334 = vmatpush3.bf16.msra.mxu0 %v6713_v51  ;;  %5297 = vmatprep.subr.bf16.mxu1 %v6923_v26  ;;  %v8579_v51 = vld [vmem:[#allocation24_spill] sm:$0xff]  ;;  %v1187_v47 = vmul.f32 %v8580_v5, %v6948_v61 }
 0x19f   : > { %5335 = vmatprep.subr.bf16.mxu0 %v5522_v49  ;;  %v1186_v36 = vmul.f32 %v8579_v51, %v6940_v14 }
 0x1a0   : > { %5162 = vmatmul.mubr.msk.bf16.gmra.mxu1 %vm848_vm0, %v1210_v3  ;;  %v8581_v3 = vld [vmem:[#allocation25_spill] sm:$0xff] }
 0x1a1   : > { %5165 = vmatprep.mubr.msk.bf16.mxu1 %vm848_vm0, %v1211_v23  ;;  %v1185_v50 = vmul.f32 %v8581_v3, %v6951_v29  ;;  %v8582_v23 = vld [vmem:[#allocation30_spill] sm:$0xff] }
 0x1a2   : > { %5336 = vmatpush3.bf16.msra.mxu0 %v5522_v49  ;;  %v1188_v28 = vmul.f32 %v8582_v23, %v6955_v2  ;;  %v6968_v49 = vld [vmem:[#allocation2 + $0x7f] sm:$0xff] }
 0x1a3   : > { %5405 = vmatprep.subr.bf16.mxu0 %v6945_v27  ;;  %v1212_v46 = vpack.c.bf16 %v1186_v36, %v1185_v50  ;;  %v1190_v22 = vmul.f32 %v8583_v45, %v6968_v49 }
 0x1a4   : > { %5270 = vmatmul.mubr.msk.bf16.gmra.mxu0 %vm848_vm0, %v6693_v33  ;;  %v1213_v52 = vpack.c.bf16 %v1188_v28, %v1187_v47  ;;  %v6974_v33 = vld [vmem:[#allocation2 + $0x77] sm:$0xff]  ;;  %v8585_v28 = vld [vmem:[#allocation33_spill] sm:$0xff] }
 0x1a5   : > { %5273 = vmatprep.mubr.msk.bf16.mxu0 %vm848_vm0, %v6747_v30  ;;  %v8584_v30 = vld [vmem:[#allocation39_spill] sm:$0xff] }
 0x1a6   : > { %v1191_v35 = vmul.f32 %v8584_v30, %v6971_v60  ;;  %v7000_v30 = vld [vmem:[#allocation2 + $0xaf] sm:$0xff] }
 0x1a8   : > { %5166 = vmatmul.mubr.msk.bf16.gmra.mxu1 %vm848_vm0, %v1212_v46  ;;  %v1189_v46 = vmul.f32 %v8585_v28, %v6974_v33 }
 0x1a9   : > { %5169 = vmatprep.mubr.msk.bf16.mxu1 %vm848_vm0, %v1213_v52  ;;  %v8586_v52 = vld [vmem:[#allocation38_spill] sm:$0xff] }
 0x1aa   : > { %v1192_v50 = vmul.f32 %v8586_v52, %v6978_v34  ;;  %v1214_v36 = vpack.c.bf16 %v1190_v22, %v1189_v46  ;;  %v8590_v22 = vld [vmem:[#allocation41_spill] sm:$0xff]  ;;  %v8591_v46 = vld [vmem:[#allocation46_spill] sm:$0xff] }
 0x1ab   : > { %v7015_v52 = vld [vmem:[#allocation2 + $0xc7] sm:$0xff] }
 0x1ac   : > { %5274 = vmatmul.mubr.msk.bf16.gmra.mxu0 %vm848_vm0, %v6752_v15  ;;  %v1215_v47 = vpack.c.bf16 %v1192_v50, %v1191_v35  ;;  %v6996_v15 = vld [vmem:[#allocation2 + $0x97] sm:$0xff]  ;;  %v1196_v50 = vmul.f32 %v8591_v46, %v7000_v30 }
 0x1ad   : > { %5277 = vmatprep.mubr.msk.bf16.mxu0 %vm848_vm0, %v6773_v32  ;;  %v8589_v32 = vld [vmem:[#allocation47_spill] sm:$0xff]  ;;  %v1193_v35 = vmul.f32 %v8590_v22, %v6996_v15 }
 0x1ae   : > { %v1195_v45 = vmul.f32 %v8589_v32, %v6993_v18  ;;  %v8592_v32 = vld [vmem:[#allocation48_spill] sm:$0xff]  ;;  %v7022_v18 = vld [vmem:[#allocation2 + $0xcf] sm:$0xff] }
 0x1af   : > { %v1198_v22 = vmul.f32 %v8592_v32, %v7012_v19  ;;  %v7037_v32 = vld [vmem:[#allocation2 + $0xe7] sm:$0xff] }
 0x1b0   : > { %5170 = vmatmul.mubr.msk.bf16.gmra.mxu1 %vm848_vm0, %v1214_v36  ;;  %v1216_v36 = vpack.c.bf16 %v1194_v12, %v1193_v35  ;;  %v8593_v12 = vld [vmem:[#allocation49_spill] sm:$0xff]  ;;  %v1200_v35 = vmul.f32 %v6736_v20, %v7022_v18 }
 0x1b1   : > { %5173 = vmatprep.mubr.msk.bf16.mxu1 %vm848_vm0, %v1215_v47  ;;  %v1217_v47 = vpack.c.bf16 %v1196_v50, %v1195_v45 }
 0x1b4   : > { %5278 = vmatmul.mubr.msk.bf16.gmra.mxu0 %vm848_vm0, %v6782_v17  ;;  %v7018_v17 = vld [vmem:[#allocation2 + $0xb7] sm:$0xff] }
 0x1b5   : > { %5281 = vmatprep.mubr.msk.bf16.mxu0 %vm848_vm0, %v6802_v39  ;;  %v1199_v39 = vmul.f32 %v6738_v25, %v7015_v52  ;;  %v1197_v45 = vmul.f32 %v8593_v12, %v7018_v17  ;;  %v7044_v12 = vld [vmem:[#allocation2 + $0xef] sm:$0xff] }
 0x1b7   : > { %v1218_v50 = vpack.c.bf16 %v1198_v22, %v1197_v45 }
 0x1b8   : > { %5174 = vmatmul.mubr.msk.bf16.gmra.mxu1 %vm848_vm0, %v1216_v36  ;;  %v1219_v36 = vpack.c.bf16 %v1200_v35, %v1199_v39  ;;  %v1204_v39 = vmul.f32 %v6819_v56, %v7044_v12 }
 0x1b9   : > { %5177 = vmatprep.mubr.msk.bf16.mxu1 %vm848_vm0, %v1217_v47  ;;  %v7034_v47 = vld [vmem:[#allocation2 + $0xdf] sm:$0xff] }
 0x1ba   : > { %v1202_v25 = vmul.f32 %v6757_v53, %v7034_v47 }
 0x1bc   : > { %5282 = vmatmul.mubr.msk.bf16.gmra.mxu0 %vm848_vm0, %v6807_v24  ;;  %v7040_v24 = vld [vmem:[#allocation2 + $0xd7] sm:$0xff] }
 0x1bd   : > { %5285 = vmatprep.mubr.msk.bf16.mxu0 %vm848_vm0, %v6827_v7  ;;  %v1203_v7 = vmul.f32 %v6821_v48, %v7037_v32  ;;  %v1201_v22 = vmul.f32 %v6759_v42, %v7040_v24  ;;  %v2253_v48 = vmul.f32 %v6427_v0, %v6882_v54  ;;  %v2588_v54 = vld [vmem:[#allocation2 + $0x108] sm:$0xff] }
 0x1bf   : > { %v1220_v45 = vpack.c.bf16 %v1202_v25, %v1201_v22  ;;  %v1221_v35 = vpack.c.bf16 %v1204_v39, %v1203_v7  ;;  %v2589_v39 = vld [vmem:[#allocation2 + $0x110] sm:$0xff] }
 0x1c0   : > { %5178 = vmatmul.mubr.msk.bf16.gmra.mxu1 %vm848_vm0, %v1218_v50  ;;  %v7056_v50 = vld [vmem:[#allocation2 + $0xff] sm:$0xff] }
 0x1c1   : > { %5181 = vmatprep.mubr.msk.bf16.mxu1 %vm848_vm0, %v1219_v36  ;;  %v7060_v36 = vld [vmem:[#allocation2 + $0xf7] sm:$0xff] }
 0x1c2   : > { %v1205_v25 = vmul.f32 %v6841_v4, %v7060_v36 }
 0x1c4   : > { %5286 = vmatmul.mubr.msk.bf16.gmra.mxu0 %vm848_vm0, %v6833_v59  ;;  %v1206_v59 = vmul.f32 %v6839_v37, %v7056_v50 }
 0x1c5   : > { %5289 = vmatprep.mubr.msk.bf16.mxu0 %vm848_vm0, %v6854_v9  ;;  %v2252_v9 = vmul.f32 %v6419_v58, %v6889_v40  ;;  %v2256_v40 = vmul.f32 %v6439_v6, %v6914_v11 }
 0x1c6   : > { %v1222_v7 = vpack.c.bf16 %v1206_v59, %v1205_v25 }
 0x1c7   : > { %v2284_v22 = vpack.c.bf16 %v2253_v48, %v2252_v9  ;;  %v2257_v48 = vmul.f32 %v8573_v31, %v6907_v16  ;;  %v3238_v9 = vmul.f32 %v6439_v6, %v6910_v55  ;;  %v7109_v6 = vld [vmem:[%s8402_s3 + $0x78] sm:$0xff]  }
 0x1c8   : > { %5182 = vmatmul.mubr.msk.bf16.gmra.mxu1 %vm848_vm0, %v1220_v45  ;;  %v3234_v45 = vmul.f32 %v6419_v58, %v6886_v41  ;;  %v2255_v58 = vmul.f32 %v6425_v63, %v6893_v10 }
 0x1c9   : > { %5185 = vmatprep.mubr.msk.bf16.mxu1 %vm848_vm0, %v1221_v35  ;;  %v2605_v35 = vpack.c.bf16 %v2589_v39, %v2588_v54  ;;  %v2286_v25 = vpack.c.bf16 %v2257_v48, %v2256_v40  ;;  %v3243_v54 = vmul.f32 %v8578_v38, %v6955_v2 }
 0x1cc   : > { %5290 = vmatmul.mubr.msk.bf16.gmra.mxu0 %vm848_vm0, %v6862_v43  ;;  %v3235_v43 = vmul.f32 %v6427_v0, %v6893_v10  ;;  %v3237_v0 = vmul.f32 %v6425_v63, %v6907_v16  ;;  %v3239_v63 = vmul.f32 %v8573_v31, %v6918_v57  ;;  %v2258_v10 = vmul.f32 %v8577_v8, %v6910_v55 }
 0x1cd   : > { %5293 = vmatprep.mubr.msk.bf16.mxu0 %vm848_vm0, %v6878_v1  ;;  %v2254_v1 = vmul.f32 %v8571_v62, %v6886_v41  ;;  %v5524_v41 = vld [vmem:[%s8402_s3 + $0x50] sm:$0xff]   ;;  %v2259_v31 = vmul.f32 %v8574_v13, %v6918_v57  ;;  %v2260_v55 = vmul.f32 %v8575_v44, %v6951_v29  ;;  %v3240_v57 = vmul.f32 %v8577_v8, %v6951_v29 }
 0x1ce   : > { %v3266_v37 = vpack.c.bf16 %v3235_v43, %v3234_v45  ;;  %v3242_v45 = vmul.f32 %v8575_v44, %v6948_v61  ;;  %v2265_v44 = vmul.f32 %v8582_v23, %v6968_v49  ;;  %v2263_v43 = vmul.f32 %v8579_v51, %v6955_v2 }
 0x1cf   : > { %v2285_v59 = vpack.c.bf16 %v2255_v58, %v2254_v1  ;;  %v2264_v8 = vmul.f32 %v8580_v5, %v6974_v33  ;;  %v3245_v29 = vmul.f32 %v8579_v51, %v6968_v49  ;;  %v3244_v1 = vmul.f32 %v8581_v3, %v6974_v33  ;;  %v8594_v51 = vld [vmem:[#allocation38_spill] sm:$0xff] }
 0x1d0   : > { %5186 = vmatmul.mubr.msk.bf16.gmra.mxu1 %vm848_vm0, %v1222_v7  ;;  %v3268_v7 = vpack.c.bf16 %v3239_v63, %v3238_v9  ;;  %v3247_v2 = vmul.f32 %v8582_v23, %v6978_v34  ;;  %v2266_v58 = vmul.f32 %v8585_v28, %v6971_v60  ;;  %v2269_v49 = vmul.f32 %v8594_v51, %v6990_v21  ;;  %v8598_v63 = vld [vmem:[#allocation41_spill] sm:$0xff] }
 0x1d1   : > { %5229 = vmatprep.mubr.msk.bf16.mxu1 %vm848_vm0, %v2284_v22  ;;  %v3241_v22 = vmul.f32 %v8574_v13, %v6940_v14  ;;  %v2262_v13 = vmul.f32 %v8581_v3, %v6948_v61  ;;  %v2290_v61 = vpack.c.bf16 %v2265_v44, %v2264_v8  ;;  %v3271_v48 = vpack.c.bf16 %v3245_v29, %v3244_v1  ;;  %v8596_v3 = vld [vmem:[#allocation39_spill] sm:$0xff]  ;;  %v3230_v1 = vld [vmem:[#allocation2 + $0x107] sm:$0xff] }
 0x1d2   : > { %v2268_v33 = vmul.f32 %v8596_v3, %v6996_v15  ;;  %v3248_v9 = vmul.f32 %v8585_v28, %v6996_v15  ;;  %v8600_v28 = vld [vmem:[#allocation47_spill] sm:$0xff]  ;;  %v2278_v29 = vmul.f32 %v6759_v42, %v7037_v32 }
 0x1d3   : > { %v2272_v15 = vmul.f32 %v8600_v28, %v7018_v17 }
 0x1d4   : > { %5294 = vmatmul.mubr.msk.bf16.gmra.mxu0 %vm848_vm0, %v2605_v35  ;;  %v3246_v35 = vmul.f32 %v8580_v5, %v6971_v60  ;;  %v8595_v5 = vld [vmem:[#allocation32_spill] sm:$0xff]  ;;  %v8597_v60 = vld [vmem:[#allocation10_spill] sm:$0xff] }
 0x1d5   : > { %5337 = vmatprep.mubr.msk.bf16.mxu0 %vm848_vm0, %v3266_v37  ;;  %v3236_v37 = vmul.f32 %v8571_v62, %v6914_v11  ;;  %v2261_v62 = vmul.f32 %v8578_v38, %v6940_v14  ;;  %v5526_v11 = vld [vmem:[%s8402_s3 + $0x80] sm:$0xff]   ;;  %v3269_v14 = vpack.c.bf16 %v3241_v22, %v3240_v57  ;;  %v2289_v38 = vpack.c.bf16 %v2263_v43, %v2262_v13 }
 0x1d6   : > { %v3272_v40 = vpack.c.bf16 %v3247_v2, %v3246_v35  ;;  %v3249_v23 = vmul.f32 %v8595_v5, %v6990_v21  ;;  %v2273_v21 = vmul.f32 %v8591_v46, %v7012_v19  ;;  %v3252_v22 = vmul.f32 %v8598_v63, %v7018_v17  ;;  %v8603_v17 = vld [vmem:[#allocation56_spill] sm:$0xff] }
 0x1d7   : > { %v3267_v16 = vpack.c.bf16 %v3237_v0, %v3236_v37  ;;  %v2288_v39 = vpack.c.bf16 %v2261_v62, %v2260_v55  ;;  %v2279_v35 = vmul.f32 %v6757_v53, %v7044_v12 }
 0x1d8   : > { %5230 = vmatmul.mubr.msk.bf16.vlgmr.msra.gmra.mxu1 %vm848_vm0, %v2285_v59  ;;  %v2267_v59 = vmul.f32 %v8595_v5, %v6978_v34  ;;  %v3251_v34 = vmul.f32 %v8594_v51, %v7000_v30  ;;  %v3273_v37 = vpack.c.bf16 %v3249_v23, %v3248_v9  ;;  %v2294_v55 = vpack.c.bf16 %v2273_v21, %v2272_v15  ;;  %v2869_v21 = vld [vmem:[#allocation2 + $0x41] sm:$0xff] }
 0x1d9   : > { %5298 = vmatpush3.bf16.msra.mxu1 %v6923_v26  ;;  %5233 = vmatprep.mubr.msk.bf16.mxu1 %vm848_vm0, %v2286_v25  ;;  %v2287_v26 = vpack.c.bf16 %v2259_v31, %v2258_v10  ;;  %v3250_v25 = vmul.f32 %v8596_v3, %v8597_v60  ;;  %v3260_v51 = vmul.f32 %v6759_v42, %v7060_v36  ;;  %v3847_v42 = vld [vmem:[#allocation2 + $0x31] sm:$0xff] }
 0x1da   : > { %5299 = vmatprep.subr.bf16.mxu1 %v5524_v41  ;;  %v2291_v0 = vpack.c.bf16 %v2267_v59, %v2266_v58  ;;  %v2282_v3 = vmul.f32 %v3230_v1, %v6841_v4 }
 0x1db   : > { %v3274_v10 = vpack.c.bf16 %v3251_v34, %v3250_v25  ;;  %v3846_v34 = vld [vmem:[#allocation2 + $0x29] sm:$0xff] }
 0x1dc   : > { %5338 = vmatmul.mubr.msk.bf16.vlgmr.msra.gmra.mxu0 %vm848_vm0, %v3267_v16  ;;  %v2270_v16 = vmul.f32 %v8598_v63, %v8597_v60  ;;  %v8607_v60 = vld [vmem:[#allocation62_spill] sm:$0xff] }
 0x1dd   : > { %5341 = vmatprep.mubr.msk.bf16.mxu0 %vm848_vm0, %v3268_v7  ;;  %5300 = vmatpush3.bf16.msra.mxu1 %v5524_v41  ;;  %v2292_v41 = vpack.c.bf16 %v2269_v49, %v2268_v33  ;;  %v8599_v7 = vld [vmem:[#allocation40_spill] sm:$0xff] }
 0x1de   : > { %5406 = vmatpush3.bf16.msra.mxu0 %v6945_v27  ;;  %5369 = vmatprep.subr.bf16.mxu1 %v7109_v6  ;;  %v3270_v27 = vpack.c.bf16 %v3243_v54, %v3242_v45  ;;  %v2271_v62 = vmul.f32 %v8599_v7, %v7000_v30  ;;  %v3253_v31 = vmul.f32 %v8599_v7, %v7012_v19  ;;  %v8601_v45 = vld [vmem:[#allocation49_spill] sm:$0xff]  ;;  %v2865_v49 = vld [vmem:[#allocation2 + $0x21] sm:$0xff] }
 0x1df   : > { %5407 = vmatprep.subr.bf16.mxu0 %v5526_v11  ;;  %v3255_v30 = vmul.f32 %v8591_v46, %v7022_v18  ;;  %v2274_v57 = vmul.f32 %v8601_v45, %v7015_v52  ;;  %v2277_v19 = vmul.f32 %v6736_v20, %v7034_v47  ;;  %v3256_v8 = vmul.f32 %v8601_v45, %v7040_v24 }
 0x1e0   : > { %5234 = vmatmul.mubr.msk.bf16.gmra.mxu1 %vm848_vm0, %v2287_v26  ;;  %v3254_v26 = vmul.f32 %v8600_v28, %v7015_v52  ;;  %v3258_v52 = vmul.f32 %v8603_v17, %v7037_v32  ;;  %v3231_v32 = vld [vmem:[#allocation2 + $0x10f] sm:$0xff] }
 0x1e1   : > { %5237 = vmatprep.mubr.msk.bf16.mxu1 %vm848_vm0, %v2288_v39  ;;  %v3275_v39 = vpack.c.bf16 %v3253_v31, %v3252_v22  ;;  %v3263_v5 = vmul.f32 %v3231_v32, %v6819_v56  ;;  %v2283_v25 = vmul.f32 %v3231_v32, %v8607_v60  ;;  %v8608_v28 = vld [vmem:[#allocation13_spill] sm:$0xff]  ;;  %v8609_v31 = vld [vmem:[#allocation19_spill] sm:$0xff]  ;;  %v8611_v22 = vld [vmem:[#allocation14_spill] sm:$0xff] }
 0x1e2   : > { %5408 = vmatpush3.bf16.msra.mxu0 %v5526_v11  ;;  %v2293_v11 = vpack.c.bf16 %v2271_v62, %v2270_v16  ;;  %v3276_v54 = vpack.c.bf16 %v3255_v30, %v3254_v26  ;;  %v2899_v15 = vmul.f32 %v3847_v42, %v8608_v28  ;;  %v2898_v30 = vmul.f32 %v3846_v34, %v8611_v22 }
 0x1e3   : > { %v2299_v9 = vpack.c.bf16 %v2283_v25, %v2282_v3  ;;  %v8616_v25 = vld [vmem:[#allocation28_spill] sm:$0xff] }
 0x1e4   : > { %5342 = vmatmul.mubr.msk.bf16.gmra.mxu0 %vm848_vm0, %v3269_v14  ;;  %v8602_v14 = vld [vmem:[#allocation48_spill] sm:$0xff]  ;;  %v2929_v45 = vpack.c.bf16 %v2899_v15, %v2898_v30 }
 0x1e5   : > { %5345 = vmatprep.mubr.msk.bf16.mxu0 %vm848_vm0, %v3270_v27  ;;  %v2275_v13 = vmul.f32 %v8602_v14, %v7022_v18  ;;  %v2276_v27 = vmul.f32 %v8603_v17, %v7040_v24  ;;  %v3257_v46 = vmul.f32 %v8602_v14, %v7034_v47  ;;  %v3259_v18 = vmul.f32 %v6736_v20, %v7044_v12  ;;  %v8604_v24 = vld [vmem:[#allocation61_spill] sm:$0xff]  ;;  %v2864_v12 = vld [vmem:[#allocation2 + $0x19] sm:$0xff] }
 0x1e6   : > { %v2281_v47 = vmul.f32 %v6819_v56, %v7056_v50  ;;  %v2280_v2 = vmul.f32 %v8604_v24, %v7060_v36  ;;  %v2297_v20 = vpack.c.bf16 %v2279_v35, %v2278_v29  ;;  %v3233_v36 = vld [vmem:[#allocation2 + $0x11f] sm:$0xff]  ;;  %v5528_v14 = vld [vmem:[%s8402_s3 + $0x70] sm:$0xff]  }
 0x1e7   : > { %v2295_v44 = vpack.c.bf16 %v2275_v13, %v2274_v57  ;;  %v2296_v43 = vpack.c.bf16 %v2277_v19, %v2276_v27  ;;  %v3265_v16 = vmul.f32 %v3233_v36, %v8607_v60  ;;  %v3850_v19 = vld [vmem:[#allocation2 + $0x49] sm:$0xff]  ;;  %v8614_v35 = vld [vmem:[#allocation26_spill] sm:$0xff] }
 0x1e8   : > { %5238 = vmatmul.mubr.msk.bf16.gmra.mxu1 %vm848_vm0, %v2289_v38  ;;  %v3277_v38 = vpack.c.bf16 %v3257_v46, %v3256_v8  ;;  %v2298_v58 = vpack.c.bf16 %v2281_v47, %v2280_v2  ;;  %v2873_v46 = vld [vmem:[#allocation2 + $0x61] sm:$0xff]  ;;  %v8615_v2 = vld [vmem:[#allocation21_spill] sm:$0xff] }
 0x1e9   : > { %5241 = vmatprep.mubr.msk.bf16.mxu1 %vm848_vm0, %v2290_v61  ;;  %v3278_v61 = vpack.c.bf16 %v3259_v18, %v3258_v52  ;;  %v8612_v18 = vld [vmem:[#allocation20_spill] sm:$0xff] }
 0x1ec   : > { %5346 = vmatmul.mubr.msk.bf16.gmra.mxu0 %vm848_vm0, %v3271_v48  ;;  %v3261_v48 = vmul.f32 %v6757_v53, %v7056_v50  ;;  %v8605_v53 = vld [vmem:[#allocation12_spill] sm:$0xff] }
 0x1ed   : > { %5349 = vmatprep.mubr.msk.bf16.mxu0 %vm848_vm0, %v3272_v40  ;;  %v3262_v40 = vmul.f32 %v3230_v1, %v8604_v24  ;;  %v2896_v50 = vmul.f32 %v2864_v12, %v8605_v53  ;;  %v3878_v7 = vmul.f32 %v3846_v34, %v8605_v53  ;;  %v2905_v1 = vmul.f32 %v2873_v46, %v8614_v35  ;;  %v2876_v53 = vld [vmem:[#allocation2 + $0x79] sm:$0xff] }
 0x1ee   : > { %v3279_v59 = vpack.c.bf16 %v3261_v48, %v3260_v51  ;;  %v3855_v48 = vld [vmem:[#allocation2 + $0x71] sm:$0xff]  ;;  %v3885_v12 = vmul.f32 %v2873_v46, %v8612_v18  ;;  %v8621_v46 = vld [vmem:[#allocation43_spill] sm:$0xff] }
 0x1ef   : > { %v3280_v33 = vpack.c.bf16 %v3263_v5, %v3262_v40  ;;  %v8618_v34 = vld [vmem:[#allocation34_spill] sm:$0xff] }
 0x1f0   : > { %5242 = vmatmul.mubr.msk.bf16.gmra.mxu1 %vm848_vm0, %v2291_v0  ;;  %v8606_v0 = vld [vmem:[#allocation11_spill] sm:$0xff] }
 0x1f1   : > { %5245 = vmatprep.mubr.msk.bf16.mxu1 %vm848_vm0, %v2292_v41  ;;  %v2897_v23 = vmul.f32 %v2865_v49, %v8606_v0  ;;  %v3232_v41 = vld [vmem:[#allocation2 + $0x117] sm:$0xff]  ;;  %v3879_v63 = vmul.f32 %v3847_v42, %v8606_v0  ;;  %v3854_v49 = vld [vmem:[#allocation2 + $0x69] sm:$0xff]  ;;  %v2907_v42 = vmul.f32 %v3855_v48, %v8616_v25 }
 0x1f2   : > { %v3264_v56 = vmul.f32 %v3232_v41, %v6841_v4 }
 0x1f4   : > { %5350 = vmatmul.mubr.msk.bf16.gmra.mxu0 %vm848_vm0, %v3273_v37  ;;  %v2928_v37 = vpack.c.bf16 %v2897_v23, %v2896_v50  ;;  %v3281_v62 = vpack.c.bf16 %v3265_v16, %v3264_v56  ;;  %v2877_v50 = vld [vmem:[#allocation2 + $0x81] sm:$0xff] }
 0x1f5   : > { %5353 = vmatprep.mubr.msk.bf16.mxu0 %vm848_vm0, %v3274_v10  ;;  %v2868_v10 = vld [vmem:[#allocation2 + $0x39] sm:$0xff] }
 0x1f6   : > { %v2900_v4 = vmul.f32 %v2868_v10, %v8609_v31  ;;  %v3880_v57 = vmul.f32 %v2868_v10, %v8611_v22  ;;  %v8619_v10 = vld [vmem:[#allocation29_spill] sm:$0xff] }
 0x1f8   : > { %5246 = vmatmul.mubr.msk.bf16.gmra.mxu1 %vm848_vm0, %v2293_v11  ;;  %v3910_v11 = vpack.c.bf16 %v3879_v63, %v3878_v7  ;;  %v3859_v7 = vld [vmem:[#allocation2 + $0x91] sm:$0xff] }
 0x1f9   : > { %5249 = vmatprep.mubr.msk.bf16.mxu1 %vm848_vm0, %v2294_v55  ;;  %v8610_v55 = vld [vmem:[#allocation18_spill] sm:$0xff] }
 0x1fa   : > { %v2901_v26 = vmul.f32 %v2869_v21, %v8610_v55 }
 0x1fc   : > { %5354 = vmatmul.mubr.msk.bf16.gmra.mxu0 %vm848_vm0, %v3275_v39  ;;  %v3851_v39 = vld [vmem:[#allocation2 + $0x51] sm:$0xff]  ;;  %v2930_v13 = vpack.c.bf16 %v2901_v26, %v2900_v4  ;;  %v3858_v4 = vld [vmem:[#allocation2 + $0x89] sm:$0xff]  ;;  %v3891_v26 = vmul.f32 %v3859_v7, %v8618_v34 }
 0x1fd   : > { %5357 = vmatprep.mubr.msk.bf16.mxu0 %vm848_vm0, %v3276_v54  ;;  %v3881_v54 = vmul.f32 %v2869_v21, %v8608_v28  ;;  %v3883_v17 = vmul.f32 %v3851_v39, %v8610_v55  ;;  %v2906_v21 = vmul.f32 %v3854_v49, %v8619_v10 }
 0x1ff   : > { %v3911_v8 = vpack.c.bf16 %v3881_v54, %v3880_v57  ;;  %v2933_v15 = vpack.c.bf16 %v2907_v42, %v2906_v21 }
 0x200   : > { %5250 = vmatmul.mubr.msk.bf16.gmra.mxu1 %vm848_vm0, %v2295_v44  ;;  %v2872_v44 = vld [vmem:[#allocation2 + $0x59] sm:$0xff] }
 0x201   : > { %5253 = vmatprep.mubr.msk.bf16.mxu1 %vm848_vm0, %v2296_v43  ;;  %v3882_v43 = vmul.f32 %v3850_v19, %v8609_v31  ;;  %v3884_v51 = vmul.f32 %v2872_v44, %v8615_v2  ;;  %v3889_v31 = vmul.f32 %v2877_v50, %v8616_v25 }
 0x203   : > { %v3912_v29 = vpack.c.bf16 %v3883_v17, %v3882_v43  ;;  %v3913_v60 = vpack.c.bf16 %v3885_v12, %v3884_v51  ;;  %v3862_v51 = vld [vmem:[#allocation2 + $0xa9] sm:$0xff] }
 0x204   : > { %5358 = vmatmul.mubr.msk.bf16.gmra.mxu0 %vm848_vm0, %v3277_v38  ;;  %v2903_v38 = vmul.f32 %v3851_v39, %v8612_v18  ;;  %v2880_v39 = vld [vmem:[#allocation2 + $0x99] sm:$0xff] }
 0x205   : > { %5361 = vmatprep.mubr.msk.bf16.mxu0 %vm848_vm0, %v3278_v61  ;;  %v8613_v61 = vld [vmem:[#allocation27_spill] sm:$0xff]  ;;  %v2912_v43 = vmul.f32 %v2880_v39, %v8621_v46 }
 0x206   : > { %v2904_v47 = vmul.f32 %v2872_v44, %v8613_v61  ;;  %v3886_v0 = vmul.f32 %v3854_v49, %v8613_v61  ;;  %v8623_v61 = vld [vmem:[#allocation37_spill] sm:$0xff] }
 0x208   : > { %5254 = vmatmul.mubr.msk.bf16.gmra.mxu1 %vm848_vm0, %v2297_v20  ;;  %v2902_v20 = vmul.f32 %v3850_v19, %v8615_v2  ;;  %v2932_v5 = vpack.c.bf16 %v2905_v1, %v2904_v47  ;;  %v2910_v47 = vmul.f32 %v3858_v4, %v8623_v61 }
 0x209   : > { %5257 = vmatprep.mubr.msk.bf16.mxu1 %vm848_vm0, %v2298_v58 }
 0x20a   : > { %v2931_v40 = vpack.c.bf16 %v2903_v38, %v2902_v20 }
 0x20c   : > { %5362 = vmatmul.mubr.msk.bf16.gmra.mxu0 %vm848_vm0, %v3279_v59  ;;  %v3887_v59 = vmul.f32 %v3855_v48, %v8614_v35  ;;  %v3863_v35 = vld [vmem:[#allocation2 + $0xb1] sm:$0xff]  ;;  %v3892_v48 = vmul.f32 %v2880_v39, %v8623_v61 }
 0x20d   : > { %5365 = vmatprep.mubr.msk.bf16.mxu0 %vm848_vm0, %v3280_v33 }
 0x20e   : > { %v3914_v36 = vpack.c.bf16 %v3887_v59, %v3886_v0  ;;  %v3894_v0 = vmul.f32 %v3862_v51, %v8621_v46 }
 0x210   : > { %5258 = vmatmul.mubr.msk.bf16.gmra.mxu1 %vm848_vm0, %v2299_v9  ;;  %v8617_v9 = vld [vmem:[#allocation35_spill] sm:$0xff] }
 0x211   : > { %5301 = vmatprep.mubr.msk.bf16.mxu1 %vm848_vm0, %v2928_v37  ;;  %v2908_v56 = vmul.f32 %v2876_v53, %v8617_v9  ;;  %v2909_v37 = vmul.f32 %v2877_v50, %v8618_v34  ;;  %v3890_v57 = vmul.f32 %v3858_v4, %v8617_v9  ;;  %v2885_v50 = vld [vmem:[#allocation2 + $0xc1] sm:$0xff]  ;;  %v8625_v34 = vld [vmem:[#allocation53_spill] sm:$0xff] }
 0x212   : > { %v3867_v4 = vld [vmem:[#allocation2 + $0xd1] sm:$0xff] }
 0x213   : > { %v2934_v55 = vpack.c.bf16 %v2909_v37, %v2908_v56  ;;  %v3916_v44 = vpack.c.bf16 %v3891_v26, %v3890_v57 }
 0x214   : > { %5366 = vmatmul.mubr.msk.bf16.gmra.mxu0 %vm848_vm0, %v3281_v62 }
 0x215   : > { %5409 = vmatprep.mubr.msk.bf16.mxu0 %vm848_vm0, %v3910_v11  ;;  %v3888_v11 = vmul.f32 %v2876_v53, %v8619_v10  ;;  %v2884_v53 = vld [vmem:[#allocation2 + $0xb9] sm:$0xff]  ;;  %v8626_v10 = vld [vmem:[#allocation52_spill] sm:$0xff] }
 0x216   : > { %v2916_v37 = vmul.f32 %v2884_v53, %v8625_v34  ;;  %v2917_v21 = vmul.f32 %v2885_v50, %v8626_v10 }
 0x218   : > { %v7256_v27 = vpop.f32.mrf.mxu1  ;;  %5302 = vmatmul.mubr.msk.bf16.vlgmr.msra.gmra.mxu1 %vm848_vm0, %v2929_v45  ;;  %v2881_v45 = vld [vmem:[#allocation2 + $0xa1] sm:$0xff] }
 0x219   : > { %5370 = vmatpush3.bf16.msra.mxu1 %v7109_v6  ;;  %5305 = vmatprep.mubr.msk.bf16.mxu1 %vm848_vm0, %v2930_v13  ;;  %v8620_v13 = vld [vmem:[#allocation36_spill] sm:$0xff] }
 0x21a   : > { %v7262_v52 = vpop.f32.mrf.mxu1  ;;  %5371 = vmatprep.subr.bf16.mxu1 %v5528_v14  ;;  %v2911_v17 = vmul.f32 %v3859_v7, %v8620_v13 }
 0x21c   : > { %v7267_v24 = vpop.f32.mrf.mxu0  ;;  %5410 = vmatmul.mubr.msk.bf16.vlgmr.msra.gmra.mxu0 %vm848_vm0, %v3911_v8  ;;  %v7270_v6 = vpop.f32.mrf.mxu1  ;;  %v8622_v8 = vld [vmem:[#allocation42_spill] sm:$0xff]  ;;  %v2935_v20 = vpack.c.bf16 %v2911_v17, %v2910_v47  ;;  %v3899_v17 = vmul.f32 %v3867_v4, %v8626_v10 }
 0x21d   : > { %5413 = vmatprep.mubr.msk.bf16.mxu0 %vm848_vm0, %v3912_v29  ;;  %5372 = vmatpush3.bf16.msra.mxu1 %v5528_v14  ;;  %v3915_v14 = vpack.c.bf16 %v3889_v31, %v3888_v11  ;;  %v2913_v18 = vmul.f32 %v2881_v45, %v8622_v8  ;;  %v3895_v49 = vmul.f32 %v3863_v35, %v8622_v8  ;;  %v8627_v11 = vld [vmem:[#allocation45_spill] sm:$0xff]  ;;  %v2889_v8 = vld [vmem:[#allocation2 + $0xe1] sm:$0xff] }
 0x21e   : > { %v7274_v32 = vpop.f32.mrf.mxu0  ;;  %v7276_v58 = vpop.f32.mrf.mxu1  ;;  %v2914_v31 = vmul.f32 %v3862_v51, %v8627_v11  ;;  %v8629_v51 = vld [vmem:[#allocation58_spill] sm:$0xff] }
 0x21f   : > { %v2936_v12 = vpack.c.bf16 %v2913_v18, %v2912_v43  ;;  %v3918_v56 = vpack.c.bf16 %v3895_v49, %v3894_v0  ;;  %v2888_v43 = vld [vmem:[#allocation2 + $0xd9] sm:$0xff]  ;;  %v8630_v49 = vld [vmem:[#allocation57_spill] sm:$0xff] }
 0x220   : > { %v7281_v3 = vpop.f32.mrf.mxu0  ;;  %v7283_v33 = vpop.f32.mrf.mxu1  ;;  %5306 = vmatmul.mubr.msk.bf16.gmra.mxu1 %vm848_vm0, %v2931_v40  ;;  %v3893_v40 = vmul.f32 %v2881_v45, %v8620_v13  ;;  %v3896_v45 = vmul.f32 %v2884_v53, %v8627_v11  ;;  %v2938_v13 = vpack.c.bf16 %v2917_v21, %v2916_v37  ;;  %v2921_v53 = vmul.f32 %v2889_v8, %v8630_v49  ;;  %v3870_v11 = vld [vmem:[#allocation2 + $0xe9] sm:$0xff] }
 0x221   : > { %5309 = vmatprep.mubr.msk.bf16.mxu1 %vm848_vm0, %v2932_v5 }
 0x222   : > { %v7288_v23 = vpop.f32.mrf.mxu0  ;;  %v7290_v41 = vpop.f32.mrf.mxu1  ;;  %v3917_v42 = vpack.c.bf16 %v3893_v40, %v3892_v48 }
 0x224   : > { %v7295_v63 = vpop.f32.mrf.mxu0  ;;  %5414 = vmatmul.mubr.msk.bf16.gmra.mxu0 %vm848_vm0, %v3913_v60  ;;  %v7298_v16 = vpop.f32.mrf.mxu1 }
 0x225   : > { %5417 = vmatprep.mubr.msk.bf16.mxu0 %vm848_vm0, %v3914_v36  ;;  %v8624_v36 = vld [vmem:[#allocation44_spill] sm:$0xff] }
 0x226   : > { %v7302_v62 = vpop.f32.mrf.mxu0  ;;  %v7304_v28 = vpop.f32.mrf.mxu1  ;;  %v2915_v9 = vmul.f32 %v3863_v35, %v8624_v36  ;;  %v3897_v57 = vmul.f32 %v2885_v50, %v8624_v36 }
 0x228   : > { %v7309_v22 = vpop.f32.mrf.mxu0  ;;  %v7311_v30 = vpop.f32.mrf.mxu1  ;;  %5310 = vmatmul.mubr.msk.bf16.gmra.mxu1 %vm848_vm0, %v2933_v15  ;;  %v2937_v39 = vpack.c.bf16 %v2915_v9, %v2914_v31  ;;  %v3919_v35 = vpack.c.bf16 %v3897_v57, %v3896_v45  ;;  %v3871_v9 = vld [vmem:[#allocation2 + $0xf1] sm:$0xff]  ;;  %v2892_v57 = vld [vmem:[#allocation2 + $0xf9] sm:$0xff] }
 0x229   : > { %5313 = vmatprep.mubr.msk.bf16.mxu1 %vm848_vm0, %v2934_v55 }
 0x22a   : > { %v7316_v54 = vpop.f32.mrf.mxu0  ;;  %v7318_v19 = vpop.f32.mrf.mxu1 }
 0x22c   : > { %v7323_v38 = vpop.f32.mrf.mxu0  ;;  %5418 = vmatmul.mubr.msk.bf16.gmra.mxu0 %vm848_vm0, %v3915_v14  ;;  %v7326_v29 = vpop.f32.mrf.mxu1  ;;  %v3866_v14 = vld [vmem:[#allocation2 + $0xc9] sm:$0xff] }
 0x22d   : > { %5421 = vmatprep.mubr.msk.bf16.mxu0 %vm848_vm0, %v3916_v44  ;;  %v3898_v18 = vmul.f32 %v3866_v14, %v8625_v34 }
 0x22e   : > { %v7330_v1 = vpop.f32.mrf.mxu0  ;;  %v7332_v2 = vpop.f32.mrf.mxu1 }
 0x22f   : > { %v3920_v40 = vpack.c.bf16 %v3899_v17, %v3898_v18  ;;  %v8633_v18 = vld [vmem:[#allocation59_spill] sm:$0xff] }
 0x230   : > { %v7337_v5 = vpop.f32.mrf.mxu0  ;;  %v7339_v59 = vpop.f32.mrf.mxu1  ;;  %5314 = vmatmul.mubr.msk.bf16.gmra.mxu1 %vm848_vm0, %v2935_v20  ;;  %v8628_v20 = vld [vmem:[#allocation54_spill] sm:$0xff] }
 0x231   : > { %5317 = vmatprep.mubr.msk.bf16.mxu1 %vm848_vm0, %v2936_v12  ;;  %v2919_v48 = vmul.f32 %v3867_v4, %v8628_v20  ;;  %v2920_v12 = vmul.f32 %v2888_v43, %v8629_v51  ;;  %v3901_v21 = vmul.f32 %v2889_v8, %v8628_v20  ;;  %v3903_v4 = vmul.f32 %v3871_v9, %v8630_v49 }
 0x232   : > { %v7344_v60 = vpop.f32.mrf.mxu0  ;;  %v7346_v25 = vpop.f32.mrf.mxu1 }
 0x233   : > { %v2940_v31 = vpack.c.bf16 %v2921_v53, %v2920_v12  ;;  %v8635_v12 = vld [vmem:[#allocation63_spill] sm:$0xff] }
 0x234   : > { %v7351_v7 = vpop.f32.mrf.mxu0  ;;  %5422 = vmatmul.mubr.msk.bf16.gmra.mxu0 %vm848_vm0, %v3917_v42  ;;  %v7354_v15 = vpop.f32.mrf.mxu1  ;;  %v8631_v42 = vld [vmem:[#allocation55_spill] sm:$0xff] }
 0x235   : > { %5425 = vmatprep.mubr.msk.bf16.mxu0 %vm848_vm0, %v3918_v56  ;;  %v2918_v36 = vmul.f32 %v3866_v14, %v8631_v42  ;;  %v3900_v10 = vmul.f32 %v2888_v43, %v8631_v42  ;;  %v2893_v14 = vld [vmem:[#allocation2 + $0x101] sm:$0xff] }
 0x236   : > { %v7358_v55 = vpop.f32.mrf.mxu0  ;;  %v7360_v26 = vpop.f32.mrf.mxu1  ;;  %v2925_v49 = vmul.f32 %v2893_v14, %v8635_v12 }
 0x237   : > { %v2939_v37 = vpack.c.bf16 %v2919_v48, %v2918_v36  ;;  %v3921_v8 = vpack.c.bf16 %v3901_v21, %v3900_v10  ;;  %v8634_v48 = vld [vmem:[#allocation64_spill] sm:$0xff] }
 0x238   : > { %v7365_v44 = vpop.f32.mrf.mxu0  ;;  %v7367_v46 = vpop.f32.mrf.mxu1  ;;  %5318 = vmatmul.mubr.msk.bf16.gmra.mxu1 %vm848_vm0, %v2937_v39  ;;  %v8638_v36 = vld [vmem:[#allocation60_spill] sm:$0xff] }
 0x239   : > { %5321 = vmatprep.mubr.msk.bf16.mxu1 %vm848_vm0, %v2938_v13  ;;  %v3902_v13 = vmul.f32 %v3870_v11, %v8629_v51  ;;  %v2922_v51 = vmul.f32 %v3870_v11, %v8638_v36 }
 0x23a   : > { %v7372_v61 = vpop.f32.mrf.mxu0  ;;  %v7374_v47 = vpop.f32.mrf.mxu1 }
 0x23b   : > { %v3922_v20 = vpack.c.bf16 %v3903_v4, %v3902_v13  ;;  %v3904_v4 = vmul.f32 %v2892_v57, %v8638_v36  ;;  %v3905_v13 = vmul.f32 %v2893_v14, %v8633_v18  ;;  %v8641_v36 = vld [vmem:[#allocation66_spill] sm:$0xff] }
 0x23c   : > { %v7379_v50 = vpop.f32.mrf.mxu0  ;;  %5426 = vmatmul.mubr.msk.bf16.gmra.mxu0 %vm848_vm0, %v3919_v35  ;;  %v7382_v0 = vpop.f32.mrf.mxu1  ;;  %v2923_v35 = vmul.f32 %v3871_v9, %v8633_v18  ;;  %v8642_v18 = vld [vmem:[#allocation65_spill] sm:$0xff] }
 0x23d   : > { %5429 = vmatprep.mubr.msk.bf16.mxu0 %vm848_vm0, %v3920_v40  ;;  %v2924_v40 = vmul.f32 %v2892_v57, %v8634_v48  ;;  %v3923_v57 = vpack.c.bf16 %v3905_v13, %v3904_v4 }
 0x23e   : > { %v7386_v56 = vpop.f32.mrf.mxu0  ;;  %v7388_v34 = vpop.f32.mrf.mxu1  ;;  %v2941_v21 = vpack.c.bf16 %v2923_v35, %v2922_v51 }
 0x240   : > { %v7393_v39 = vpop.f32.mrf.mxu0  ;;  %v7395_v45 = vpop.f32.mrf.mxu1  ;;  %5322 = vmatmul.mubr.msk.bf16.gmra.mxu1 %vm848_vm0, %v2939_v37  ;;  %v3874_v37 = vld [vmem:[#allocation2 + $0x109] sm:$0xff] }
 0x241   : > { %5325 = vmatprep.mubr.msk.bf16.mxu1 %vm848_vm0, %v2940_v31  ;;  %v3875_v31 = vld [vmem:[#allocation2 + $0x111] sm:$0xff]  ;;  %v2926_v14 = vmul.f32 %v3874_v37, %v8641_v36 }
 0x242   : > { %v7400_v17 = vpop.f32.mrf.mxu0  ;;  %v7402_v43 = vpop.f32.mrf.mxu1 }
 0x243   : > { %8632 = vst [vmem:[#allocation51_spill] sm:$0xff] %v7402_v43 }
 0x244   : > { %v7407_v53 = vpop.f32.mrf.mxu0  ;;  %5430 = vmatmul.mubr.msk.bf16.gmra.mxu0 %vm848_vm0, %v3921_v8  ;;  %v7410_v42 = vpop.f32.mrf.mxu1  ;;  %v3906_v8 = vmul.f32 %v3874_v37, %v8634_v48  ;;  %v3877_v48 = vld [vmem:[#allocation2 + $0x121] sm:$0xff] }
 0x245   : > { %8636 = vst [vmem:[#allocation15_spill] sm:$0xff] %v7407_v53  ;;  %8637 = vst [vmem:[#allocation16_spill] sm:$0xff] %v7410_v42  ;;  %5433 = vmatprep.mubr.msk.bf16.mxu0 %vm848_vm0, %v3922_v20  ;;  %v2942_v53 = vpack.c.bf16 %v2925_v49, %v2924_v40  ;;  %v3907_v42 = vmul.f32 %v3875_v31, %v8635_v12  ;;  %v2927_v40 = vmul.f32 %v3875_v31, %v8642_v18  ;;  %v3876_v49 = vld [vmem:[#allocation2 + $0x119] sm:$0xff] }
 0x246   : > { %v7414_v10 = vpop.f32.mrf.mxu0  ;;  %v7416_v9 = vpop.f32.mrf.mxu1  ;;  %v3908_v4 = vmul.f32 %v3876_v49, %v8641_v36  ;;  %v3543_v36 = vld [vmem:[#allocation2 + $0x40] sm:$0xff] }
 0x247   : > { %v3924_v12 = vpack.c.bf16 %v3907_v42, %v3906_v8  ;;  %v2943_v31 = vpack.c.bf16 %v2927_v40, %v2926_v14  ;;  %v3542_v40 = vld [vmem:[#allocation2 + $0x38] sm:$0xff] }
 0x248   : > { %v7422_v43 = vpop.f32.mrf.mxu0  ;;  %v7424_v11 = vpop.f32.mrf.mxu1  ;;  %5326 = vmatmul.mubr.msk.bf16.gmra.mxu1 %vm848_vm0, %v2941_v21  ;;  %v3541_v21 = vld [vmem:[#allocation2 + $0x30] sm:$0xff] }
 0x249   : > { %8639 = vst [vmem:[#allocation23_spill] sm:$0xff] %v7424_v11  ;;  %5329 = vmatprep.mubr.msk.bf16.mxu1 %vm848_vm0, %v2942_v53  ;;  %v3909_v53 = vmul.f32 %v3877_v48, %v8642_v18 }
 0x24a   : > { %v7428_v20 = vpop.f32.mrf.mxu0  ;;  %v7430_v35 = vpop.f32.mrf.mxu1 }
 0x24b   : > { %8640 = vst [vmem:[#allocation50_spill] sm:$0xff] %v7430_v35  ;;  %v3540_v35 = vld [vmem:[#allocation2 + $0x28] sm:$0xff] }
 0x24c   : > { %v7434_v51 = vpop.f32.mrf.mxu0  ;;  %5434 = vmatmul.mubr.msk.bf16.gmra.mxu0 %vm848_vm0, %v3923_v57  ;;  %v7437_v11 = vpop.f32.mrf.mxu1  ;;  %v3572_v42 = vpack.c.bf16 %v3541_v21, %v3540_v35  ;;  %v3925_v57 = vpack.c.bf16 %v3909_v53, %v3908_v4  ;;  %v3545_v35 = vld [vmem:[#allocation2 + $0x50] sm:$0xff] }
 0x24d   : > { %8643 = vst [vmem:[#allocation17_spill] sm:$0xff] %v7434_v51  ;;  %5437 = vmatprep.mubr.msk.bf16.mxu0 %vm848_vm0, %v3924_v12 }
 0x24e   : > { %v7442_v13 = vpop.f32.mrf.mxu0  ;;  %v7444_v37 = vpop.f32.mrf.mxu1 }
 0x250   : > { %v7446_v8 = vpop.f32.mrf.mxu0  ;;  %v7448_v51 = vpop.f32.mrf.mxu1  ;;  %5330 = vmatmul.mubr.msk.bf16.gmra.mxu1 %vm848_vm0, %v2943_v31  ;;  %v3573_v31 = vpack.c.bf16 %v3543_v36, %v3542_v40  ;;  %v3549_v40 = vld [vmem:[#allocation2 + $0x70] sm:$0xff] }
 0x251   : > { %5373 = vmatprep.mubr.msk.bf16.mxu1 %vm848_vm0, %v3572_v42  ;;  %v3544_v42 = vld [vmem:[#allocation2 + $0x48] sm:$0xff] }
 0x252   : > { %v7452_v12 = vpop.f32.mrf.mxu0  ;;  %v7454_v18 = vpop.f32.mrf.mxu1  ;;  %v3574_v53 = vpack.c.bf16 %v3545_v35, %v3544_v42 }
 0x253   : > { %8644 = vst [vmem:[#allocation22_spill] sm:$0xff] %v7452_v12  ;;  %8645 = vst [vmem:[#allocation24_spill] sm:$0xff] %v7454_v18 }
 0x254   : > { %v7456_v48 = vpop.f32.mrf.mxu0  ;;  %5438 = vmatmul.mubr.msk.bf16.gmra.mxu0 %vm848_vm0, %v3925_v57  ;;  %v7459_v14 = vpop.f32.mrf.mxu1 }
 0x255   : > { %8646 = vst [vmem:[#allocation31_spill] sm:$0xff] %v7456_v48  ;;  %8647 = vst [vmem:[#allocation25_spill] sm:$0xff] %v7459_v14 }
 0x256   : > { %v7461_v49 = vpop.f32.mrf.mxu0  ;;  %v7463_v21 = vpop.f32.mrf.mxu1 }
 0x257   : > { %8648 = vst [vmem:[#allocation30_spill] sm:$0xff] %v7461_v49  ;;  %8649 = vst [vmem:[#allocation33_spill] sm:$0xff] %v7463_v21  ;;  %v3547_v49 = vld [vmem:[#allocation2 + $0x60] sm:$0xff] }
 0x258   : > { %v7465_v4 = vpop.f32.mrf.mxu0  ;;  %v5159_v12 = vpop.f32.mrf.mxu1  ;;  %5374 = vmatmul.mubr.msk.bf16.vlgmr.msra.gmra.mxu1 %vm848_vm0, %v3573_v31  ;;  %v3546_v31 = vld [vmem:[#allocation2 + $0x58] sm:$0xff] }
 0x259   : > { %8650 = vst [vmem:[#allocation46_spill] sm:$0xff] %v7465_v4  ;;  %v1604_v48 = vadd.f32 %v5159_v12, %v7256_v27  ;;  %5377 = vmatprep.mubr.msk.bf16.mxu1 %vm848_vm0, %v3574_v53  ;;  %v3548_v4 = vld [vmem:[#allocation2 + $0x68] sm:$0xff] }
 0x25a   : > { %v7470_v57 = vpop.f32.mrf.mxu0  ;;  %v1595_v14 = vpop.f32.mrf.mxu1 }
 0x25b   : > { %8651 = vst [vmem:[#allocation38_spill] sm:$0xff] %v7470_v57  ;;  %v1596_v18 = vadd.f32 %v1595_v14, %v7262_v52  ;;  %v7474_v21 = vadd.f32 %v7267_v24, %v1604_v48  ;;  %v3575_v57 = vpack.c.bf16 %v3547_v49, %v3546_v31  ;;  %v3576_v14 = vpack.c.bf16 %v3549_v40, %v3548_v4  ;;  %v3551_v4 = vld [vmem:[#allocation2 + $0x80] sm:$0xff] }
 0x25c   : > { %v7476_v36 = vpop.f32.mrf.mxu0  ;;  %v5160_v35 = vpop.f32.mrf.mxu1 }
 0x25d   : > { %8652 = vst [vmem:[#allocation32_spill] sm:$0xff] %v7476_v36  ;;  %v1607_v42 = vadd.f32 %v5160_v35, %v7270_v6  ;;  %v7480_v27 = vadd.f32 %v7274_v32, %v1596_v18 }
 0x25e   : > { %v7482_v12 = vpop.f32.mrf.mxu0  ;;  %v1598_v53 = vpop.f32.mrf.mxu1 }
 0x25f   : > { %v1599_v52 = vadd.f32 %v1598_v53, %v7276_v58  ;;  %v7486_v24 = vadd.f32 %v7281_v3, %v1607_v42 }
 0x260   : > { %v7488_v48 = vpop.f32.mrf.mxu0  ;;  %v5163_v36 = vpop.f32.mrf.mxu1  ;;  %5378 = vmatmul.mubr.msk.bf16.gmra.mxu1 %vm848_vm0, %v3575_v57  ;;  %v3553_v57 = vld [vmem:[#allocation2 + $0x90] sm:$0xff] }
 0x261   : > { %v1620_v6 = vadd.f32 %v5163_v36, %v7283_v33  ;;  %5381 = vmatprep.mubr.msk.bf16.mxu1 %vm848_vm0, %v3576_v14  ;;  %v7494_v32 = vadd.f32 %v7288_v23, %v1599_v52  ;;  %v3550_v36 = vld [vmem:[#allocation2 + $0x78] sm:$0xff]  ;;  %v3552_v52 = vld [vmem:[#allocation2 + $0x88] sm:$0xff] }
 0x262   : > { %v7496_v18 = vpop.f32.mrf.mxu0  ;;  %v1611_v49 = vpop.f32.mrf.mxu1  ;;  %v3577_v53 = vpack.c.bf16 %v3551_v4, %v3550_v36  ;;  %v3578_v14 = vpack.c.bf16 %v3553_v57, %v3552_v52  ;;  %v3557_v36 = vld [vmem:[#allocation2 + $0xb0] sm:$0xff] }
 0x263   : > { %v1612_v58 = vadd.f32 %v1611_v49, %v7290_v41  ;;  %v7500_v3 = vadd.f32 %v7295_v63, %v1620_v6 }
 0x264   : > { %v7502_v35 = vpop.f32.mrf.mxu0  ;;  %v5164_v40 = vpop.f32.mrf.mxu1 }
 0x265   : > { %v1623_v33 = vadd.f32 %v5164_v40, %v7298_v16  ;;  %v7506_v42 = vadd.f32 %v7302_v62, %v1612_v58  ;;  %v3555_v40 = vld [vmem:[#allocation2 + $0xa0] sm:$0xff] }
 0x266   : > { %v7508_v23 = vpop.f32.mrf.mxu0  ;;  %v1614_v31 = vpop.f32.mrf.mxu1 }
 0x267   : > { %v1615_v41 = vadd.f32 %v1614_v31, %v7304_v28  ;;  %v7512_v63 = vadd.f32 %v7309_v22, %v1623_v33  ;;  %v3554_v31 = vld [vmem:[#allocation2 + $0x98] sm:$0xff] }
 0x268   : > { %v7514_v6 = vpop.f32.mrf.mxu0  ;;  %v5167_v49 = vpop.f32.mrf.mxu1  ;;  %5382 = vmatmul.mubr.msk.bf16.gmra.mxu1 %vm848_vm0, %v3577_v53 }
 0x269   : > { %v1636_v16 = vadd.f32 %v5167_v49, %v7311_v30  ;;  %5385 = vmatprep.mubr.msk.bf16.mxu1 %vm848_vm0, %v3578_v14  ;;  %v7520_v62 = vadd.f32 %v7316_v54, %v1615_v41  ;;  %v3579_v41 = vpack.c.bf16 %v3555_v40, %v3554_v31  ;;  %v3556_v14 = vld [vmem:[#allocation2 + $0xa8] sm:$0xff]  ;;  %v3561_v31 = vld [vmem:[#allocation2 + $0xd0] sm:$0xff] }
 0x26a   : > { %v7522_v58 = vpop.f32.mrf.mxu0  ;;  %v1627_v4 = vpop.f32.mrf.mxu1  ;;  %v3580_v49 = vpack.c.bf16 %v3557_v36, %v3556_v14 }
 0x26b   : > { %v1628_v28 = vadd.f32 %v1627_v4, %v7318_v19  ;;  %v7526_v22 = vadd.f32 %v7323_v38, %v1636_v16 }
 0x26c   : > { %v7528_v57 = vpop.f32.mrf.mxu0  ;;  %v5168_v33 = vpop.f32.mrf.mxu1 }
 0x26d   : > { %v1639_v30 = vadd.f32 %v5168_v33, %v7326_v29  ;;  %v7532_v53 = vadd.f32 %v7330_v1, %v1628_v28  ;;  %v3559_v33 = vld [vmem:[#allocation2 + $0xc0] sm:$0xff] }
 0x26e   : > { %v7534_v54 = vpop.f32.mrf.mxu0  ;;  %v1630_v52 = vpop.f32.mrf.mxu1 }
 0x26f   : > { %v1631_v19 = vadd.f32 %v1630_v52, %v7332_v2  ;;  %v7538_v38 = vadd.f32 %v7337_v5, %v1639_v30  ;;  %v3558_v52 = vld [vmem:[#allocation2 + $0xb8] sm:$0xff] }
 0x270   : > { %v7540_v16 = vpop.f32.mrf.mxu0  ;;  %v5171_v4 = vpop.f32.mrf.mxu1  ;;  %5386 = vmatmul.mubr.msk.bf16.gmra.mxu1 %vm848_vm0, %v3579_v41 }
 0x271   : > { %v1652_v29 = vadd.f32 %v5171_v4, %v7339_v59  ;;  %5389 = vmatprep.mubr.msk.bf16.mxu1 %vm848_vm0, %v3580_v49  ;;  %v7546_v1 = vadd.f32 %v7344_v60, %v1631_v19  ;;  %v3581_v19 = vpack.c.bf16 %v3559_v33, %v3558_v52  ;;  %v3560_v49 = vld [vmem:[#allocation2 + $0xc8] sm:$0xff]  ;;  %v3565_v52 = vld [vmem:[#allocation2 + $0xf0] sm:$0xff] }
 0x272   : > { %v7548_v28 = vpop.f32.mrf.mxu0  ;;  %v1643_v40 = vpop.f32.mrf.mxu1  ;;  %v3582_v4 = vpack.c.bf16 %v3561_v31, %v3560_v49 }
 0x273   : > { %v1644_v2 = vadd.f32 %v1643_v40, %v7346_v25  ;;  %v7552_v5 = vadd.f32 %v7351_v7, %v1652_v29 }
 0x274   : > { %v7554_v36 = vpop.f32.mrf.mxu0  ;;  %v5172_v30 = vpop.f32.mrf.mxu1 }
 0x275   : > { %v1655_v59 = vadd.f32 %v5172_v30, %v7354_v15  ;;  %v7558_v41 = vadd.f32 %v7358_v55, %v1644_v2  ;;  %v3563_v30 = vld [vmem:[#allocation2 + $0xe0] sm:$0xff] }
 0x276   : > { %v7560_v60 = vpop.f32.mrf.mxu0  ;;  %v1646_v14 = vpop.f32.mrf.mxu1 }
 0x277   : > { %v1647_v25 = vadd.f32 %v1646_v14, %v7360_v26  ;;  %v7564_v7 = vadd.f32 %v7365_v44, %v1655_v59  ;;  %v3562_v14 = vld [vmem:[#allocation2 + $0xd8] sm:$0xff] }
 0x278   : > { %v7566_v29 = vpop.f32.mrf.mxu0  ;;  %v5175_v40 = vpop.f32.mrf.mxu1  ;;  %5390 = vmatmul.mubr.msk.bf16.gmra.mxu1 %vm848_vm0, %v3581_v19 }
 0x279   : > { %v1668_v15 = vadd.f32 %v5175_v40, %v7367_v46  ;;  %5393 = vmatprep.mubr.msk.bf16.mxu1 %vm848_vm0, %v3582_v4  ;;  %v7572_v55 = vadd.f32 %v7372_v61, %v1647_v25  ;;  %v3583_v25 = vpack.c.bf16 %v3563_v30, %v3562_v14  ;;  %v3564_v4 = vld [vmem:[#allocation2 + $0xe8] sm:$0xff] }
 0x27a   : > { %v7574_v2 = vpop.f32.mrf.mxu0  ;;  %v1659_v33 = vpop.f32.mrf.mxu1  ;;  %v3584_v40 = vpack.c.bf16 %v3565_v52, %v3564_v4  ;;  %v3567_v52 = vld [vmem:[#allocation2 + $0x100] sm:$0xff] }
 0x27b   : > { %v1660_v26 = vadd.f32 %v1659_v33, %v7374_v47  ;;  %v7578_v44 = vadd.f32 %v7379_v50, %v1668_v15  ;;  %v8658_v4 = vld [vmem:[#allocation16_spill] sm:$0xff] }
 0x27c   : > { %v7580_v31 = vpop.f32.mrf.mxu0  ;;  %v5176_v59 = vpop.f32.mrf.mxu1 }
 0x27d   : > { %v1671_v46 = vadd.f32 %v5176_v59, %v7382_v0  ;;  %v7584_v19 = vadd.f32 %v7386_v56, %v1660_v26 }
 0x27e   : > { %v7586_v61 = vpop.f32.mrf.mxu0  ;;  %v1662_v49 = vpop.f32.mrf.mxu1 }
 0x27f   : > { %v1663_v47 = vadd.f32 %v1662_v49, %v7388_v34  ;;  %v7590_v50 = vadd.f32 %v7393_v39, %v1671_v46  ;;  %v8655_v34 = vld [vmem:[#allocation51_spill] sm:$0xff] }
 0x280   : > { %v7592_v15 = vpop.f32.mrf.mxu0  ;;  %v5179_v33 = vpop.f32.mrf.mxu1  ;;  %5394 = vmatmul.mubr.msk.bf16.gmra.mxu1 %vm848_vm0, %v3583_v25  ;;  %v8656_v39 = vld [vmem:[#allocation15_spill] sm:$0xff]  ;;  %v3569_v25 = vld [vmem:[#allocation2 + $0x110] sm:$0xff] }
 0x281   : > { %8653 = vst [vmem:[#allocation39_spill] sm:$0xff] %v7592_v15  ;;  %v1684_v0 = vadd.f32 %v5179_v33, %v7395_v45  ;;  %5397 = vmatprep.mubr.msk.bf16.mxu1 %vm848_vm0, %v3584_v40  ;;  %v7598_v56 = vadd.f32 %v7400_v17, %v1663_v47  ;;  %v3566_v33 = vld [vmem:[#allocation2 + $0xf8] sm:$0xff]  ;;  %v3568_v15 = vld [vmem:[#allocation2 + $0x108] sm:$0xff] }
 0x282   : > { %v7600_v26 = vpop.f32.mrf.mxu0  ;;  %v1675_v30 = vpop.f32.mrf.mxu1 }
 0x283   : > { %8654 = vst [vmem:[#allocation10_spill] sm:$0xff] %v7600_v26  ;;  %v1676_v59 = vadd.f32 %v1675_v30, %v8655_v34  ;;  %v7604_v46 = vadd.f32 %v8656_v39, %v1684_v0  ;;  %v3585_v26 = vpack.c.bf16 %v3567_v52, %v3566_v33  ;;  %v3586_v34 = vpack.c.bf16 %v3569_v25, %v3568_v15  ;;  %v8662_v15 = vld [vmem:[#allocation50_spill] sm:$0xff]  ;;  %v8663_v25 = vld [vmem:[#allocation17_spill] sm:$0xff] }
 0x284   : > { %v7606_v14 = vpop.f32.mrf.mxu0  ;;  %v5180_v49 = vpop.f32.mrf.mxu1 }
 0x285   : > { %8657 = vst [vmem:[#allocation41_spill] sm:$0xff] %v7606_v14  ;;  %v1687_v45 = vadd.f32 %v5180_v49, %v8658_v4  ;;  %v7610_v40 = vadd.f32 %v7414_v10, %v1676_v59  ;;  %v8660_v49 = vld [vmem:[#allocation23_spill] sm:$0xff] }
 0x286   : > { %v7612_v17 = vpop.f32.mrf.mxu0  ;;  %v1678_v47 = vpop.f32.mrf.mxu1  ;;  %v3570_v10 = vld [vmem:[#allocation2 + $0x118] sm:$0xff]  ;;  %v3571_v59 = vld [vmem:[#allocation2 + $0x120] sm:$0xff] }
 0x287   : > { %v1679_v30 = vadd.f32 %v1678_v47, %v7416_v9  ;;  %v7616_v0 = vadd.f32 %v7422_v43, %v1687_v45 }
 0x288   : > { %v7618_v39 = vpop.f32.mrf.mxu0  ;;  %v5183_v14 = vpop.f32.mrf.mxu1  ;;  %5398 = vmatmul.mubr.msk.bf16.gmra.mxu1 %vm848_vm0, %v3585_v26 }
 0x289   : > { %8659 = vst [vmem:[#allocation40_spill] sm:$0xff] %v7618_v39  ;;  %v1700_v4 = vadd.f32 %v5183_v14, %v8660_v49  ;;  %5401 = vmatprep.mubr.msk.bf16.mxu1 %vm848_vm0, %v3586_v34  ;;  %v7624_v52 = vadd.f32 %v7428_v20, %v1679_v30  ;;  %v3587_v39 = vpack.c.bf16 %v3571_v59, %v3570_v10  ;;  %v8666_v59 = vld [vmem:[#allocation22_spill] sm:$0xff] }
 0x28a   : > { %v7626_v33 = vpop.f32.mrf.mxu0  ;;  %v1691_v9 = vpop.f32.mrf.mxu1 }
 0x28b   : > { %8661 = vst [vmem:[#allocation47_spill] sm:$0xff] %v7626_v33  ;;  %v1692_v43 = vadd.f32 %v1691_v9, %v8662_v15  ;;  %v7630_v45 = vadd.f32 %v8663_v25, %v1700_v4 }
 0x28c   : > { %v7632_v47 = vpop.f32.mrf.mxu0  ;;  %v5184_v26 = vpop.f32.mrf.mxu1 }
 0x28d   : > { %v1703_v14 = vadd.f32 %v5184_v26, %v7437_v11  ;;  %v7636_v34 = vadd.f32 %v7442_v13, %v1692_v43  ;;  %v8669_v43 = vld [vmem:[#allocation24_spill] sm:$0xff]  ;;  %v8670_v26 = vld [vmem:[#allocation31_spill] sm:$0xff] }
 0x28e   : > { %v7638_v49 = vpop.f32.mrf.mxu0  ;;  %v1694_v20 = vpop.f32.mrf.mxu1 }
 0x28f   : > { %8664 = vst [vmem:[#allocation49_spill] sm:$0xff] %v7638_v49  ;;  %v1695_v30 = vadd.f32 %v1694_v20, %v7444_v37  ;;  %v7642_v33 = vadd.f32 %v7446_v8, %v1703_v14  ;;  %v8672_v20 = vld [vmem:[#allocation25_spill] sm:$0xff]  ;;  %v8673_v49 = vld [vmem:[#allocation30_spill] sm:$0xff] }
 0x290   : > { %v7644_v9 = vpop.f32.mrf.mxu0  ;;  %v5187_v4 = vpop.f32.mrf.mxu1  ;;  %5402 = vmatmul.mubr.msk.bf16.gmra.mxu1 %vm848_vm0, %v3587_v39 }
 0x291   : > { %8665 = vst [vmem:[#allocation48_spill] sm:$0xff] %v7644_v9  ;;  %v1716_v10 = vadd.f32 %v5187_v4, %v7448_v51  ;;  %v7649_v11 = vadd.f32 %v8666_v59, %v1695_v30  ;;  %v8675_v4 = vld [vmem:[#allocation33_spill] sm:$0xff] }
 0x292   : > { %v7651_v13 = vpop.f32.mrf.mxu0  ;;  %v1707_v15 = vpop.f32.mrf.mxu1 }
 0x293   : > { %8667 = vst [vmem:[#allocation56_spill] sm:$0xff] %v7649_v11  ;;  %8668 = vst [vmem:[#allocation61_spill] sm:$0xff] %v7651_v13  ;;  %v1708_v25 = vadd.f32 %v1707_v15, %v8669_v43  ;;  %v7655_v37 = vadd.f32 %v8670_v26, %v1716_v10  ;;  %v8676_v13 = vld [vmem:[#allocation46_spill] sm:$0xff] }
 0x294   : > { %v7657_v8 = vpop.f32.mrf.mxu0  ;;  %v5188_v14 = vpop.f32.mrf.mxu1  ;;  %v8677_v26 = vld [vmem:[#allocation38_spill] sm:$0xff] }
 0x295   : > { %8671 = vst [vmem:[#allocation12_spill] sm:$0xff] %v7657_v8  ;;  %v1719_v9 = vadd.f32 %v5188_v14, %v8672_v20  ;;  %v7661_v39 = vadd.f32 %v8673_v49, %v1708_v25  ;;  %v8678_v20 = vld [vmem:[#allocation32_spill] sm:$0xff] }
 0x296   : > { %v7663_v51 = vpop.f32.mrf.mxu0  ;;  %v1710_v30 = vpop.f32.mrf.mxu1 }
 0x297   : > { %8674 = vst [vmem:[#allocation11_spill] sm:$0xff] %v7663_v51  ;;  %v1711_v59 = vadd.f32 %v1710_v30, %v8675_v4  ;;  %v7667_v11 = vadd.f32 %v8676_v13, %v1719_v9 }
 0x298   : > { %v7669_v15 = vpop.f32.mrf.mxu0  ;;  %v5231_v10 = vpop.f32.mrf.mxu1 }
 0x299   : > { %v2528_v43 = vadd.f32 %v5231_v10, %v7474_v21  ;;  %v7673_v8 = vadd.f32 %v8677_v26, %v1711_v59 }
 0x29a   : > { %v7675_v14 = vpop.f32.mrf.mxu0  ;;  %v2399_v49 = vpop.f32.mrf.mxu1 }
 0x29b   : > { %v2526_v25 = vadd.f32 %v2399_v49, %v7480_v27  ;;  %v7679_v51 = vadd.f32 %v8678_v20, %v2528_v43 }
 0x29c   : > { %v7681_v30 = vpop.f32.mrf.mxu0  ;;  %v5232_v9 = vpop.f32.mrf.mxu1 }
 0x29d   : > { %v2529_v13 = vadd.f32 %v5232_v9, %v7486_v24  ;;  %v7685_v4 = vadd.f32 %v7482_v12, %v2526_v25 }
 0x29e   : > { %v7687_v21 = vpop.f32.mrf.mxu0  ;;  %v2402_v59 = vpop.f32.mrf.mxu1 }
 0x29f   : > { %v2527_v10 = vadd.f32 %v2402_v59, %v7494_v32  ;;  %v7691_v26 = vadd.f32 %v7488_v48, %v2529_v13 }
 0x2a0   : > { %v7693_v27 = vpop.f32.mrf.mxu0  ;;  %v5235_v43 = vpop.f32.mrf.mxu1 }
 0x2a1   : > { %v2532_v49 = vadd.f32 %v5235_v43, %v7500_v3  ;;  %v7697_v20 = vadd.f32 %v7496_v18, %v2527_v10 }
 0x2a2   : > { %v7699_v24 = vpop.f32.mrf.mxu0  ;;  %v2415_v12 = vpop.f32.mrf.mxu1 }
 0x2a3   : > { %v2530_v25 = vadd.f32 %v2415_v12, %v7506_v42  ;;  %v7703_v9 = vadd.f32 %v7502_v35, %v2532_v49 }
 0x2a4   : > { %v7705_v32 = vpop.f32.mrf.mxu0  ;;  %v5236_v48 = vpop.f32.mrf.mxu1 }
 0x2a5   : > { %v2533_v13 = vadd.f32 %v5236_v48, %v7512_v63  ;;  %v7709_v59 = vadd.f32 %v7508_v23, %v2530_v25 }
 0x2a6   : > { %v7711_v3 = vpop.f32.mrf.mxu0  ;;  %v2418_v18 = vpop.f32.mrf.mxu1 }
 0x2a7   : > { %v2531_v10 = vadd.f32 %v2418_v18, %v7520_v62  ;;  %v7715_v43 = vadd.f32 %v7514_v6, %v2533_v13 }
 0x2a8   : > { %v7717_v42 = vpop.f32.mrf.mxu0  ;;  %v5239_v35 = vpop.f32.mrf.mxu1 }
 0x2a9   : > { %v2536_v49 = vadd.f32 %v5239_v35, %v7526_v22  ;;  %v7721_v12 = vadd.f32 %v7522_v58, %v2531_v10 }
 0x2aa   : > { %v7723_v63 = vpop.f32.mrf.mxu0  ;;  %v2431_v23 = vpop.f32.mrf.mxu1 }
 0x2ab   : > { %8679 = vst [vmem:[#allocation62_spill] sm:$0xff] %v7723_v63  ;;  %v2534_v25 = vadd.f32 %v2431_v23, %v7532_v53  ;;  %v7727_v48 = vadd.f32 %v7528_v57, %v2536_v49 }
 0x2ac   : > { %v7729_v62 = vpop.f32.mrf.mxu0  ;;  %v5240_v6 = vpop.f32.mrf.mxu1 }
 0x2ad   : > { %8680 = vst [vmem:[#allocation13_spill] sm:$0xff] %v7729_v62  ;;  %v2537_v13 = vadd.f32 %v5240_v6, %v7538_v38  ;;  %v7733_v18 = vadd.f32 %v7534_v54, %v2534_v25 }
 0x2ae   : > { %v7735_v22 = vpop.f32.mrf.mxu0  ;;  %v2434_v58 = vpop.f32.mrf.mxu1 }
 0x2af   : > { %8681 = vst [vmem:[#allocation19_spill] sm:$0xff] %v7735_v22  ;;  %v2535_v10 = vadd.f32 %v2434_v58, %v7546_v1  ;;  %v7739_v35 = vadd.f32 %v7540_v16, %v2537_v13 }
 0x2b0   : > { %v7741_v53 = vpop.f32.mrf.mxu0  ;;  %v5243_v57 = vpop.f32.mrf.mxu1 }
 0x2b1   : > { %8682 = vst [vmem:[#allocation18_spill] sm:$0xff] %v7741_v53  ;;  %v2540_v49 = vadd.f32 %v5243_v57, %v7552_v5  ;;  %v7745_v23 = vadd.f32 %v7548_v28, %v2535_v10 }
 0x2b2   : > { %v7747_v38 = vpop.f32.mrf.mxu0  ;;  %v2447_v54 = vpop.f32.mrf.mxu1 }
 0x2b3   : > { %8683 = vst [vmem:[#allocation14_spill] sm:$0xff] %v7747_v38  ;;  %v2538_v25 = vadd.f32 %v2447_v54, %v7558_v41  ;;  %v7751_v6 = vadd.f32 %v7554_v36, %v2540_v49 }
 0x2b4   : > { %v7753_v1 = vpop.f32.mrf.mxu0  ;;  %v5244_v16 = vpop.f32.mrf.mxu1 }
 0x2b5   : > { %8684 = vst [vmem:[#allocation20_spill] sm:$0xff] %v7751_v6  ;;  %8685 = vst [vmem:[#allocation27_spill] sm:$0xff] %v7753_v1  ;;  %v2541_v13 = vadd.f32 %v5244_v16, %v7564_v7  ;;  %v7757_v58 = vadd.f32 %v7560_v60, %v2538_v25 }
 0x2b6   : > { %v7759_v5 = vpop.f32.mrf.mxu0  ;;  %v2450_v28 = vpop.f32.mrf.mxu1 }
 0x2b7   : > { %8686 = vst [vmem:[#allocation26_spill] sm:$0xff] %v7757_v58  ;;  %8687 = vst [vmem:[#allocation21_spill] sm:$0xff] %v7759_v5  ;;  %v2539_v10 = vadd.f32 %v2450_v28, %v7572_v55  ;;  %v7763_v57 = vadd.f32 %v7566_v29, %v2541_v13 }
 0x2b8   : > { %v7765_v41 = vpop.f32.mrf.mxu0  ;;  %v5247_v36 = vpop.f32.mrf.mxu1 }
 0x2b9   : > { %8688 = vst [vmem:[#allocation28_spill] sm:$0xff] %v7763_v57  ;;  %8689 = vst [vmem:[#allocation35_spill] sm:$0xff] %v7765_v41  ;;  %v2544_v49 = vadd.f32 %v5247_v36, %v7578_v44  ;;  %v7769_v54 = vadd.f32 %v7574_v2, %v2539_v10  ;;  %v8696_v36 = vld [vmem:[#allocation39_spill] sm:$0xff] }
 0x2ba   : > { %v7771_v7 = vpop.f32.mrf.mxu0  ;;  %v2463_v60 = vpop.f32.mrf.mxu1 }
 0x2bb   : > { %8690 = vst [vmem:[#allocation34_spill] sm:$0xff] %v7769_v54  ;;  %8691 = vst [vmem:[#allocation29_spill] sm:$0xff] %v7771_v7  ;;  %v2542_v25 = vadd.f32 %v2463_v60, %v7584_v19  ;;  %v7775_v16 = vadd.f32 %v7580_v31, %v2544_v49  ;;  %v8699_v60 = vld [vmem:[#allocation10_spill] sm:$0xff] }
 0x2bc   : > { %v7777_v55 = vpop.f32.mrf.mxu0  ;;  %v5248_v29 = vpop.f32.mrf.mxu1 }
 0x2bd   : > { %8692 = vst [vmem:[#allocation36_spill] sm:$0xff] %v7775_v16  ;;  %8693 = vst [vmem:[#allocation43_spill] sm:$0xff] %v7777_v55  ;;  %v2545_v13 = vadd.f32 %v5248_v29, %v7590_v50  ;;  %v7781_v28 = vadd.f32 %v7586_v61, %v2542_v25  ;;  %v8702_v29 = vld [vmem:[#allocation41_spill] sm:$0xff] }
 0x2be   : > { %v7783_v44 = vpop.f32.mrf.mxu0  ;;  %v2466_v2 = vpop.f32.mrf.mxu1 }
 0x2bf   : > { %8694 = vst [vmem:[#allocation42_spill] sm:$0xff] %v7781_v28  ;;  %8695 = vst [vmem:[#allocation37_spill] sm:$0xff] %v7783_v44  ;;  %v2543_v10 = vadd.f32 %v2466_v2, %v7598_v56  ;;  %v7787_v7 = vadd.f32 %v8696_v36, %v2545_v13 }
 0x2c0   : > { %v7789_v19 = vpop.f32.mrf.mxu0  ;;  %v5251_v31 = vpop.f32.mrf.mxu1 }
 0x2c1   : > { %8697 = vst [vmem:[#allocation44_spill] sm:$0xff] %v7787_v7  ;;  %8698 = vst [vmem:[#allocation53_spill] sm:$0xff] %v7789_v19  ;;  %v2548_v49 = vadd.f32 %v5251_v31, %v7604_v46  ;;  %v7793_v55 = vadd.f32 %v8699_v60, %v2543_v10  ;;  %v8707_v60 = vld [vmem:[#allocation40_spill] sm:$0xff] }
 0x2c2   : > { %v7795_v50 = vpop.f32.mrf.mxu0  ;;  %v2479_v61 = vpop.f32.mrf.mxu1 }
 0x2c3   : > { %8700 = vst [vmem:[#allocation52_spill] sm:$0xff] %v7793_v55  ;;  %8701 = vst [vmem:[#allocation45_spill] sm:$0xff] %v7795_v50  ;;  %v2546_v25 = vadd.f32 %v2479_v61, %v7610_v40  ;;  %v7799_v44 = vadd.f32 %v8702_v29, %v2548_v49  ;;  %v8708_v29 = vld [vmem:[#allocation47_spill] sm:$0xff] }
 0x2c4   : > { %v7801_v56 = vpop.f32.mrf.mxu0  ;;  %v5252_v13 = vpop.f32.mrf.mxu1 }
 0x2c5   : > { %8703 = vst [vmem:[#allocation54_spill] sm:$0xff] %v7799_v44  ;;  %8704 = vst [vmem:[#allocation58_spill] sm:$0xff] %v7801_v56  ;;  %v2549_v2 = vadd.f32 %v5252_v13, %v7616_v0  ;;  %v7805_v36 = vadd.f32 %v7612_v17, %v2546_v25 }
 0x2c6   : > { %v7807_v46 = vpop.f32.mrf.mxu0  ;;  %v2482_v10 = vpop.f32.mrf.mxu1 }
 0x2c7   : > { %8705 = vst [vmem:[#allocation57_spill] sm:$0xff] %v7805_v36  ;;  %8706 = vst [vmem:[#allocation55_spill] sm:$0xff] %v7807_v46  ;;  %v2547_v31 = vadd.f32 %v2482_v10, %v7624_v52  ;;  %v7811_v50 = vadd.f32 %v8707_v60, %v2549_v2  ;;  %v8711_v60 = vld [vmem:[#allocation49_spill] sm:$0xff] }
 0x2c8   : > { %v7813_v40 = vpop.f32.mrf.mxu0  ;;  %v5255_v49 = vpop.f32.mrf.mxu1 }
 0x2c9   : > { %v2552_v61 = vadd.f32 %v5255_v49, %v7630_v45  ;;  %v7817_v56 = vadd.f32 %v8708_v29, %v2547_v31  ;;  %v8712_v49 = vld [vmem:[#allocation56_spill] sm:$0xff] }
 0x2ca   : > { %v7819_v0 = vpop.f32.mrf.mxu0  ;;  %v2495_v17 = vpop.f32.mrf.mxu1 }
 0x2cb   : > { %8709 = vst [vmem:[#allocation59_spill] sm:$0xff] %v7817_v56  ;;  %8710 = vst [vmem:[#allocation64_spill] sm:$0xff] %v7819_v0  ;;  %v2550_v25 = vadd.f32 %v2495_v17, %v7636_v34  ;;  %v7823_v13 = vadd.f32 %v7632_v47, %v2552_v61  ;;  %v8713_v0 = vld [vmem:[#allocation48_spill] sm:$0xff]  ;;  %v8714_v17 = vld [vmem:[#allocation61_spill] sm:$0xff] }
 0x2cc   : > { %v7825_v52 = vpop.f32.mrf.mxu0  ;;  %v5256_v2 = vpop.f32.mrf.mxu1 }
 0x2cd   : > { %v2553_v10 = vadd.f32 %v5256_v2, %v7642_v33  ;;  %v7829_v46 = vadd.f32 %v8711_v60, %v2550_v25  ;;  %v8715_v60 = vld [vmem:[#allocation12_spill] sm:$0xff] }
 0x2ce   : > { %v7831_v45 = vpop.f32.mrf.mxu0  ;;  %v2498_v31 = vpop.f32.mrf.mxu1 }
 0x2cf   : > { %v2551_v29 = vadd.f32 %v2498_v31, %v8712_v49  ;;  %v7835_v56 = vadd.f32 %v8713_v0, %v2553_v10  ;;  %v8716_v49 = vld [vmem:[#allocation11_spill] sm:$0xff] }
 0x2d0   : > { %v7837_v34 = vpop.f32.mrf.mxu0  ;;  %v5259_v47 = vpop.f32.mrf.mxu1 }
 0x2d1   : > { %v2556_v61 = vadd.f32 %v5259_v47, %v7655_v37  ;;  %v7841_v36 = vadd.f32 %v8714_v17, %v2551_v29 }
 0x2d2   : > { %v7843_v33 = vpop.f32.mrf.mxu0  ;;  %v2511_v25 = vpop.f32.mrf.mxu1 }
 0x2d3   : > { %v2554_v2 = vadd.f32 %v2511_v25, %v7661_v39  ;;  %v7847_v44 = vadd.f32 %v8715_v60, %v2556_v61 }
 0x2d4   : > { %v7849_v31 = vpop.f32.mrf.mxu0  ;;  %v5260_v0 = vpop.f32.mrf.mxu1 }
 0x2d5   : > { %v2557_v10 = vadd.f32 %v5260_v0, %v7667_v11  ;;  %v7853_v19 = vadd.f32 %v8716_v49, %v2554_v2 }
 0x2d6   : > { %v7855_v37 = vpop.f32.mrf.mxu0  ;;  %v2514_v29 = vpop.f32.mrf.mxu1 }
 0x2d7   : > { %v2555_v47 = vadd.f32 %v2514_v29, %v7673_v8  ;;  %v7859_v17 = vadd.f32 %v7669_v15, %v2557_v10 }
 0x2d8   : > { %v7861_v39 = vpop.f32.mrf.mxu0  ;;  %v5303_v61 = vpop.f32.mrf.mxu1 }
 0x2d9   : > { %v7864_v25 = vadd.f32 %v7675_v14, %v2555_v47 }
 0x2da   : > { %v3043_v60 = vpop.f32.mrf.mxu1  ;;  %v7866_v55 = vpop.f32.mrf.mxu0 }
 0x2dc   : > { %v5304_v11 = vpop.f32.mrf.mxu1  ;;  %v7870_v0 = vpop.f32.mrf.mxu0 }
 0x2de   : > { %v7868_v2 = vpop.f32.mrf.mxu1  ;;  %v7876_v15 = vpop.f32.mrf.mxu0 }
 0x2e0   : > { %v7872_v49 = vpop.f32.mrf.mxu1  ;;  %v7882_v14 = vpop.f32.mrf.mxu0 }
 0x2e2   : > { %v7874_v8 = vpop.f32.mrf.mxu1  ;;  %v7888_v5 = vpop.f32.mrf.mxu0 }
 0x2e4   : > { %v7878_v10 = vpop.f32.mrf.mxu1  ;;  %v7894_v16 = vpop.f32.mrf.mxu0 }
 0x2e5   : > { %8718 = vst [vmem:[#allocation60_spill] sm:$0xff] %v7894_v16 }
 0x2e6   : > { %v7880_v29 = vpop.f32.mrf.mxu1  ;;  %v7900_v57 = vpop.f32.mrf.mxu0 }
 0x2e7   : > { %8721 = vst [vmem:[#allocation51_spill] sm:$0xff] %v7900_v57 }
 0x2e8   : > { %v7884_v47 = vpop.f32.mrf.mxu1  ;;  %v7906_v53 = vpop.f32.mrf.mxu0 }
 0x2e9   : > { %8724 = vst [vmem:[#allocation23_spill] sm:$0xff] %v7906_v53 }
 0x2ea   : > { %v7886_v41 = vpop.f32.mrf.mxu1  ;;  %v7912_v63 = vpop.f32.mrf.mxu0 }
 0x2eb   : > { %8727 = vst [vmem:[#allocation22_spill] sm:$0xff] %v7912_v63 }
 0x2ec   : > { %v7890_v7 = vpop.f32.mrf.mxu1 }
 0x2ee   : > { %v7892_v28 = vpop.f32.mrf.mxu1 }
 0x2ef   : > { %8717 = vst [vmem:[#allocation63_spill] sm:$0xff] %v7892_v28 }
 0x2f0   : > { %v7896_v54 = vpop.f32.mrf.mxu1 }
 0x2f1   : > { %8719 = vst [vmem:[#allocation66_spill] sm:$0xff] %v7896_v54  ;;  %v7918_v54 = vpop.f32.mrf.mxu0 }
 0x2f2   : > { %v7898_v1 = vpop.f32.mrf.mxu1  ;;  %8730 = vst [vmem:[#allocation25_spill] sm:$0xff] %v7918_v54 }
 0x2f3   : > { %8720 = vst [vmem:[#allocation65_spill] sm:$0xff] %v7898_v1 }
 0x2f4   : > { %v7902_v58 = vpop.f32.mrf.mxu1 }
 0x2f5   : > { %8722 = vst [vmem:[#allocation15_spill] sm:$0xff] %v7902_v58  ;;  %v7924_v58 = vpop.f32.mrf.mxu0 }
 0x2f6   : > { %v7904_v38 = vpop.f32.mrf.mxu1  ;;  %8733 = vst [vmem:[#allocation46_spill] sm:$0xff] %v7924_v58 }
 0x2f7   : > { %8723 = vst [vmem:[#allocation16_spill] sm:$0xff] %v7904_v38  ;;  %v7932_v63 = vpop.f32.mrf.mxu0 }
 0x2f8   : > { %v7908_v22 = vpop.f32.mrf.mxu1 }
 0x2f9   : > { %8725 = vst [vmem:[#allocation50_spill] sm:$0xff] %v7908_v22  ;;  %v7939_v58 = vpop.f32.mrf.mxu0 }
 0x2fa   : > { %v7910_v62 = vpop.f32.mrf.mxu1 }
 0x2fb   : > { %8726 = vst [vmem:[#allocation17_spill] sm:$0xff] %v7910_v62 }
 0x2fc   : > { %v7914_v6 = vpop.f32.mrf.mxu1 }
 0x2fd   : > { %8728 = vst [vmem:[#allocation24_spill] sm:$0xff] %v7914_v6 }
 0x2fe   : > { %v7916_v16 = vpop.f32.mrf.mxu1 }
 0x2ff   : > { %8729 = vst [vmem:[#allocation31_spill] sm:$0xff] %v7916_v16 }
 0x300   : > { %v7920_v1 = vpop.f32.mrf.mxu1 }
 0x301   : > { %8731 = vst [vmem:[#allocation30_spill] sm:$0xff] %v7920_v1 }
 0x302   : > { %v7922_v57 = vpop.f32.mrf.mxu1 }
 0x303   : > { %8732 = vst [vmem:[#allocation33_spill] sm:$0xff] %v7922_v57 }
 0x304   : > { %v5324_v38 = vpop.f32.mrf.mxu1 }
 0x305   : > { %v3193_v53 = vadd.f32 %v5324_v38, %v7811_v50 }
 0x306   : > { %v7927_v22 = vpop.f32.mrf.mxu1 }
 0x307   : > { %v7930_v62 = vadd.f32 %v7813_v40, %v3193_v53 }
 0x308   : > { %v5327_v6 = vpop.f32.mrf.mxu1 }
 0x309   : > { %8734 = vst [vmem:[#allocation38_spill] sm:$0xff] %v7930_v62  ;;  %v3196_v16 = vadd.f32 %v5327_v6, %v7823_v13  ;;  %v7949_v6 = vpop.f32.mrf.mxu0 }
 0x30a   : > { %v3139_v54 = vpop.f32.mrf.mxu1 }
 0x30b   : > { %v3194_v1 = vadd.f32 %v3139_v54, %v7829_v46  ;;  %v7937_v57 = vadd.f32 %v7825_v52, %v3196_v16 }
 0x30c   : > { %v5328_v28 = vpop.f32.mrf.mxu1 }
 0x30d   : > { %v3197_v38 = vadd.f32 %v5328_v28, %v7835_v56  ;;  %v7943_v50 = vadd.f32 %v7831_v45, %v3194_v1  ;;  %v3172_v28 = vadd.f32 %v5303_v61, %v7679_v51  ;;  %v3170_v45 = vadd.f32 %v3043_v60, %v7685_v4 }
 0x30e   : > { %v3142_v53 = vpop.f32.mrf.mxu1  ;;  %v3171_v4 = vadd.f32 %v7868_v2, %v7697_v20  ;;  %v3174_v20 = vadd.f32 %v7874_v8, %v7709_v59 }
 0x30f   : > { %v3195_v40 = vadd.f32 %v3142_v53, %v7841_v36  ;;  %v7947_v62 = vadd.f32 %v7837_v34, %v3197_v38  ;;  %v7960_v36 = vpop.f32.mrf.mxu0  ;;  %v3173_v38 = vadd.f32 %v5304_v11, %v7691_v26  ;;  %v3176_v26 = vadd.f32 %v7872_v49, %v7703_v9 }
 0x310   : > { %v5331_v54 = vpop.f32.mrf.mxu1 }
 0x311   : > { %v3200_v16 = vadd.f32 %v5331_v54, %v7847_v44  ;;  %v7953_v46 = vadd.f32 %v7843_v33, %v3195_v40  ;;  %v7973_v61 = vpop.f32.mrf.mxu0  ;;  %v3511_v40 = vadd.f32 %v7693_v27, %v3173_v38  ;;  %v3514_v27 = vadd.f32 %v7705_v32, %v3176_v26  ;;  %v8741_v26 = vld [vmem:[#allocation51_spill] sm:$0xff] }
 0x312   : > { %v3155_v13 = vpop.f32.mrf.mxu1 }
 0x313   : > { %v3198_v1 = vadd.f32 %v3155_v13, %v7853_v19  ;;  %v7958_v56 = vadd.f32 %v7849_v31, %v3200_v16  ;;  %v3510_v19 = vadd.f32 %v7681_v30, %v3172_v28  ;;  %v7991_v2 = vpop.f32.mrf.mxu0 }
 0x314   : > { %v5332_v52 = vpop.f32.mrf.mxu1 }
 0x315   : > { %v3201_v34 = vadd.f32 %v5332_v52, %v7859_v17  ;;  %v7965_v44 = vadd.f32 %v7855_v37, %v3198_v1  ;;  %v3508_v37 = vadd.f32 %v7687_v21, %v3170_v45  ;;  %v3177_v21 = vadd.f32 %v7878_v10, %v7715_v43  ;;  %v8008_v28 = vpop.f32.mrf.mxu0 }
 0x316   : > { %v3158_v33 = vpop.f32.mrf.mxu1  ;;  %v3175_v10 = vadd.f32 %v7880_v29, %v7721_v12  ;;  %v3512_v1 = vadd.f32 %v7711_v3, %v3174_v20  ;;  %v3178_v12 = vadd.f32 %v7886_v41, %v7733_v18  ;;  %v8735_v29 = vld [vmem:[#allocation63_spill] sm:$0xff]  ;;  %v8738_v18 = vld [vmem:[#allocation60_spill] sm:$0xff] }
 0x317   : > { %v3199_v51 = vadd.f32 %v3158_v33, %v7864_v25  ;;  %v7971_v31 = vadd.f32 %v7861_v39, %v3201_v34  ;;  %v7983_v25 = vld [vmem:[#allocation7] ss:$0 sm:$0xff]  ;;  %v3515_v32 = vadd.f32 %v7717_v42, %v3177_v21  ;;  %v8742_v20 = vld [vmem:[#allocation19_spill] sm:$0xff] }
 0x318   : > { %v5375_v53 = vpop.f32.mrf.mxu1  ;;  %v3516_v21 = vadd.f32 %v8742_v20, %v3178_v12  ;;  %v8760_v20 = vld [vmem:[#allocation24_spill] sm:$0xff] }
 0x319   : > { %v3816_v17 = vadd.f32 %v5375_v53, %v3510_v19  ;;  %v7979_v60 = vadd.f32 %v7866_v55, %v3199_v51  ;;  %v8736_v51 = vld [vmem:[#allocation20_spill] sm:$0xff]  ;;  %v8029_v53 = vpop.f32.mrf.mxu0 }
 0x31a   : > { %v3687_v30 = vpop.f32.mrf.mxu1 }
 0x31b   : > { %v4154_v39 = vadd.f32 %v7870_v0, %v3816_v17  ;;  %v3814_v11 = vadd.f32 %v3687_v30, %v3508_v37  ;;  %v3509_v0 = vadd.f32 %v7699_v24, %v3171_v4 }
 0x31c   : > { %v5376_v55 = vpop.f32.mrf.mxu1 }
 0x31d   : > { %v7994_v54 = vadd.f32 %v7983_v25, %v4154_v39  ;;  %v4152_v9 = vadd.f32 %v7876_v15, %v3814_v11  ;;  %v3817_v49 = vadd.f32 %v5376_v55, %v3511_v40  ;;  %v3180_v15 = vadd.f32 %v7884_v47, %v7727_v48  ;;  %v8743_v55 = vld [vmem:[#allocation18_spill] sm:$0xff] }
 0x31e   : > { %v3690_v16 = vpop.f32.mrf.mxu1  ;;  %v3181_v48 = vadd.f32 %v7890_v7, %v7739_v35  ;;  %v3179_v47 = vadd.f32 %v8735_v29, %v7745_v23  ;;  %v8739_v7 = vld [vmem:[#allocation62_spill] sm:$0xff]  ;;  %v8740_v23 = vld [vmem:[#allocation13_spill] sm:$0xff] }
 0x31f   : > { %v4862_v13 = vmul.f32 -1.442695, %v7994_v54  ;;  %v8001_v59 = vadd.f32 %v7983_v25, %v4152_v9  ;;  %v4155_v43 = vadd.f32 %v7882_v14, %v3817_v49  ;;  %v3815_v8 = vadd.f32 %v3690_v16, %v3509_v0  ;;  %v8744_v49 = vld [vmem:[#allocation14_spill] sm:$0xff] }
 0x320   : > { %v5379_v24 = vpop.f32.mrf.mxu1  ;;  %v3513_v4 = vadd.f32 %v8739_v7, %v3175_v10  ;;  %v3518_v17 = vadd.f32 %v8740_v23, %v3180_v15  ;;  %v3519_v9 = vadd.f32 %v8743_v55, %v3181_v48  ;;  %v3517_v0 = vadd.f32 %v8744_v49, %v3179_v47  ;;  %v8747_v10 = vld [vmem:[#allocation65_spill] sm:$0xff]  ;;  %v8750_v48 = vld [vmem:[#allocation27_spill] sm:$0xff] }
 0x321   : > { %5657 = vpow2.f32 %v4862_v13  ;;  %v4860_v52 = vmul.f32 -1.442695, %v8001_v59  ;;  %v8014_v45 = vadd.f32 %v7983_v25, %v4155_v43  ;;  %v4153_v14 = vadd.f32 %v7888_v5, %v3815_v8  ;;  %v8737_v5 = vld [vmem:[#allocation66_spill] sm:$0xff]  ;;  %v8757_v23 = vld [vmem:[#allocation17_spill] sm:$0xff] }
 0x322   : > { %v3820_v3 = vadd.f32 %v5379_v24, %v3514_v27  ;;  %v3703_v34 = vpop.f32.mrf.mxu1  ;;  %v3184_v19 = vadd.f32 %v8737_v5, %v8736_v51  ;;  %v8745_v27 = vld [vmem:[#allocation23_spill] sm:$0xff]  ;;  %v8746_v8 = vld [vmem:[#allocation26_spill] sm:$0xff]  ;;  %v8748_v24 = vld [vmem:[#allocation28_spill] sm:$0xff] }
 0x323   : > { %5659 = vpow2.f32 %v4860_v52  ;;  %v4863_v42 = vmul.f32 -1.442695, %v8014_v45  ;;  %v8025_v33 = vadd.f32 %v7983_v25, %v4153_v14  ;;  %v3818_v38 = vadd.f32 %v3703_v34, %v3512_v1  ;;  %v8749_v1 = vld [vmem:[#allocation15_spill] sm:$0xff]  ;;  %v8050_v52 = vpop.f32.mrf.mxu0  ;;  %v8751_v34 = vld [vmem:[#allocation22_spill] sm:$0xff]  ;;  %v8753_v5 = vld [vmem:[#allocation16_spill] sm:$0xff] }
 0x324   : > { %v4158_v41 = vadd.f32 %v8738_v18, %v3820_v3  ;;  %v5380_v35 = vpop.f32.mrf.mxu1  ;;  %v3182_v15 = vadd.f32 %v8747_v10, %v8746_v8  ;;  %v3522_v29 = vadd.f32 %v8750_v48, %v3184_v19  ;;  %v8752_v51 = vld [vmem:[#allocation34_spill] sm:$0xff]  ;;  %v8762_v10 = vld [vmem:[#allocation35_spill] sm:$0xff] }
 0x325   : > { %5661 = vpow2.f32 %v4863_v42  ;;  %v4861_v37 = vmul.f32 -1.442695, %v8025_v33  ;;  %v4156_v30 = vadd.f32 %v8741_v26, %v3818_v38  ;;  %v3821_v39 = vadd.f32 %v5380_v35, %v3515_v32  ;;  %v8755_v35 = vld [vmem:[#allocation50_spill] sm:$0xff]  ;;  %v8072_v49 = vpop.f32.mrf.mxu0 }
 0x326   : > { %v8037_v11 = vadd.f32 %v7983_v25, %v4158_v41  ;;  %v3706_v40 = vpop.f32.mrf.mxu1  ;;  %v3185_v32 = vadd.f32 %v8749_v1, %v8748_v24  ;;  %v3183_v18 = vadd.f32 %v8753_v5, %v8752_v51  ;;  %v8754_v41 = vld [vmem:[#allocation36_spill] sm:$0xff]  ;;  %v8765_v5 = vld [vmem:[#allocation43_spill] sm:$0xff] }
 0x327   : > { %5663 = vpow2.f32 %v4861_v37  ;;  %v8043_v16 = vadd.f32 %v7983_v25, %v4156_v30  ;;  %v4159_v13 = vadd.f32 %v8745_v27, %v3821_v39  ;;  %v3819_v43 = vadd.f32 %v3706_v40, %v3513_v4  ;;  %v8756_v4 = vld [vmem:[#allocation42_spill] sm:$0xff]  ;;  %v8758_v39 = vld [vmem:[#allocation25_spill] sm:$0xff] }
 0x328   : > { %v4866_v14 = vmul.f32 -1.442695, %v8037_v11  ;;  %v5383_v12 = vpop.f32.mrf.mxu1  ;;  %v3188_v7 = vadd.f32 %v8755_v35, %v8754_v41  ;;  %v3186_v37 = vadd.f32 %v8757_v23, %v8756_v4  ;;  %v3523_v24 = vadd.f32 %v8762_v10, %v3185_v32  ;;  %v8766_v41 = vld [vmem:[#allocation37_spill] sm:$0xff]  ;;  %v8767_v23 = vld [vmem:[#allocation52_spill] sm:$0xff]  ;;  %v8771_v10 = vld [vmem:[#allocation30_spill] sm:$0xff] }
 0x329   : > { %v4864_v47 = vmul.f32 -1.442695, %v8043_v16  ;;  %v8056_v3 = vadd.f32 %v7983_v25, %v4159_v13  ;;  %v4157_v42 = vadd.f32 %v8751_v34, %v3819_v43  ;;  %v3824_v38 = vadd.f32 %v5383_v12, %v3518_v17  ;;  %v8759_v17 = vld [vmem:[#allocation44_spill] sm:$0xff]  ;;  %v8761_v43 = vld [vmem:[#allocation21_spill] sm:$0xff] }
 0x32a   : > { %5665 = vpow2.f32 %v4866_v14  ;;  %v3719_v26 = vpop.f32.mrf.mxu1  ;;  %v3189_v55 = vadd.f32 %v8760_v20, %v8759_v17  ;;  %v3520_v8 = vadd.f32 %v8761_v43, %v3182_v15  ;;  %v8086_v15 = vadd.f32 %v8766_v41, %v3186_v37  ;;  %v8769_v37 = vld [vmem:[#allocation53_spill] sm:$0xff]  ;;  %v8770_v43 = vld [vmem:[#allocation54_spill] sm:$0xff] }
 0x32b   : > { %5667 = vpow2.f32 %v4864_v47  ;;  %v4867_v19 = vmul.f32 -1.442695, %v8056_v3  ;;  %v8067_v30 = vadd.f32 %v7983_v25, %v4157_v42  ;;  %v4162_v40 = vadd.f32 %v8758_v39, %v3824_v38  ;;  %v8763_v47 = vld [vmem:[#allocation46_spill] sm:$0xff]  ;;  %v8764_v38 = vld [vmem:[#allocation29_spill] sm:$0xff]  ;;  %v8092_v39 = vpop.f32.mrf.mxu0 }
 0x32c   : > { %v3822_v27 = vadd.f32 %v3719_v26, %v3516_v21  ;;  %v5384_v13 = vpop.f32.mrf.mxu1  ;;  %v3521_v51 = vadd.f32 %v8764_v38, %v3183_v18  ;;  %v8083_v21 = vadd.f32 %v8765_v5, %v3188_v7  ;;  %v8768_v26 = vld [vmem:[#allocation31_spill] sm:$0xff]  ;;  %v8098_v17 = vadd.f32 %v8769_v37, %v3189_v55 }
 0x32d   : > { %5669 = vpow2.f32 %v4867_v19  ;;  %v4865_v1 = vmul.f32 -1.442695, %v8067_v30  ;;  %v8078_v14 = vadd.f32 %v7983_v25, %v4162_v40  ;;  %v3825_v12 = vadd.f32 %v5384_v13, %v3519_v9 }
 0x32e   : > { %v5658_v48 = vpop.eup %5657  ;;  %v4160_v34 = vadd.f32 %v8763_v47, %v3822_v27  ;;  %v3722_v42 = vpop.f32.mrf.mxu1  ;;  %v3187_v19 = vadd.f32 %v8768_v26, %v8767_v23  ;;  %v8773_v23 = vld [vmem:[#allocation57_spill] sm:$0xff] }
 0x32f   : > { %v4321_v32 = vadd.f32 1.0, %v5658_v48  ;;  %5671 = vpow2.f32 %v4865_v1  ;;  %v4870_v35 = vmul.f32 -1.442695, %v8078_v14  ;;  %v4163_v4 = vadd.f32 %v7932_v63, %v3825_v12 }
 0x330   : > { %v5660_v9 = vpop.eup %5659  ;;  %v8095_v18 = vadd.f32 %v7983_v25, %v4160_v34  ;;  %v3823_v7 = vadd.f32 %v3722_v42, %v3517_v0  ;;  %v5387_v40 = vpop.f32.mrf.mxu1  ;;  %v3192_v1 = vadd.f32 %v8771_v10, %v8770_v43 }
 0x331   : > { %5673 = vrcp.f32 %v4321_v32  ;;  %v4319_v20 = vadd.f32 1.0, %v5660_v9  ;;  %v8101_v27 = vadd.f32 %v7983_v25, %v4163_v4  ;;  %v3828_v63 = vadd.f32 %v5387_v40, %v3522_v29  ;;  %v8113_v42 = vpop.f32.mrf.mxu0  ;;  %v8772_v32 = vld [vmem:[#allocation45_spill] sm:$0xff] }
 0x332   : > { %v5662_v13 = vpop.eup %5661  ;;  %5675 = vpow2.f32 %v4870_v35  ;;  %v4868_v0 = vmul.f32 -1.442695, %v8095_v18  ;;  %v4161_v55 = vadd.f32 %v7939_v58, %v3823_v7  ;;  %v3735_v12 = vpop.f32.mrf.mxu1  ;;  %v3525_v35 = vadd.f32 %v8772_v32, %v3187_v19 }
 0x333   : > { %5677 = vrcp.f32 %v4319_v20  ;;  %v4322_v48 = vadd.f32 1.0, %v5662_v13  ;;  %v4871_v47 = vmul.f32 -1.442695, %v8101_v27  ;;  %v4166_v29 = vadd.f32 %v7949_v6, %v3828_v63  ;;  %v8774_v6 = vld [vmem:[#allocation33_spill] sm:$0xff] }
 0x334   : > { %v5664_v34 = vpop.eup %5663  ;;  %5679 = vpow2.f32 %v4868_v0  ;;  %v8116_v38 = vadd.f32 %v7983_v25, %v4161_v55  ;;  %v3826_v5 = vadd.f32 %v3735_v12, %v3520_v8  ;;  %v5388_v41 = vpop.f32.mrf.mxu1  ;;  %v3190_v26 = vadd.f32 %v8774_v6, %v8773_v23  ;;  %v8775_v55 = vld [vmem:[#allocation58_spill] sm:$0xff] }
 0x335   : > { %5681 = vrcp.f32 %v4322_v48  ;;  %v4320_v58 = vadd.f32 1.0, %v5664_v34  ;;  %v8121_v4 = vadd.f32 %v7983_v25, %v4166_v29  ;;  %v3829_v9 = vadd.f32 %v5388_v41, %v3523_v24  ;;  %v8129_v24 = vpop.f32.mrf.mxu0 }
 0x336   : > { %5683 = vpow2.f32 %v4871_v47  ;;  %v4869_v7 = vmul.f32 -1.442695, %v8116_v38  ;;  %v4164_v8 = vadd.f32 %v7960_v36, %v3826_v5  ;;  %v3738_v40 = vpop.f32.mrf.mxu1  ;;  %v3530_v12 = vadd.f32 %v8775_v55, %v3192_v1  ;;  %v8776_v47 = vld [vmem:[#allocation59_spill] sm:$0xff] }
 0x337   : > { %v5666_v37 = vpop.eup %5665  ;;  %5685 = vrcp.f32 %v4320_v58  ;;  %v4874_v19 = vmul.f32 -1.442695, %v8121_v4  ;;  %v4167_v20 = vadd.f32 %v7973_v61, %v3829_v9  ;;  %v3827_v63 = vadd.f32 %v3738_v40, %v3521_v51 }
 0x338   : > { %v5668_v13 = vpop.eup %5667  ;;  %v4325_v43 = vadd.f32 1.0, %v5666_v37  ;;  %5687 = vpow2.f32 %v4869_v7  ;;  %v8132_v10 = vadd.f32 %v7983_v25, %v4164_v8  ;;  %v5391_v0 = vpop.f32.mrf.mxu1  ;;  %v3191_v29 = vadd.f32 %v7927_v22, %v8776_v47  ;;  %v8777_v7 = vld [vmem:[#allocation55_spill] sm:$0xff] }
 0x339   : > { %v4323_v36 = vadd.f32 1.0, %v5668_v13  ;;  %5689 = vpow2.f32 %v4874_v19  ;;  %v8141_v48 = vadd.f32 %v7983_v25, %v4167_v20  ;;  %v4165_v61 = vadd.f32 %v7991_v2, %v3827_v63  ;;  %v8152_v2 = vpop.f32.mrf.mxu0  ;;  %v8778_v13 = vld [vmem:[#allocation64_spill] sm:$0xff] }
 0x33a   : > { %v5670_v51 = vpop.eup %5669  ;;  %5691 = vrcp.f32 %v4325_v43  ;;  %v4872_v34 = vmul.f32 -1.442695, %v8132_v10  ;;  %v3832_v1 = vadd.f32 %v5391_v0, %v8083_v21  ;;  %v3751_v5 = vpop.f32.mrf.mxu1  ;;  %v3528_v8 = vadd.f32 %v8777_v7, %v3190_v26 }
 0x33b   : > { %5693 = vrcp.f32 %v4323_v36  ;;  %v4326_v41 = vadd.f32 1.0, %v5670_v51  ;;  %v4875_v32 = vmul.f32 -1.442695, %v8141_v48  ;;  %v8150_v58 = vadd.f32 %v7983_v25, %v4165_v61  ;;  %v8169_v36 = vpop.f32.mrf.mxu0 }
 0x33c   : > { %v5672_v9 = vpop.eup %5671  ;;  %5695 = vpow2.f32 %v4872_v34  ;;  %v4170_v22 = vadd.f32 %v8008_v28, %v3832_v1  ;;  %v3830_v23 = vadd.f32 %v3751_v5, %v8086_v15  ;;  %v5392_v6 = vpop.f32.mrf.mxu1  ;;  %v8165_v15 = vadd.f32 %v8778_v13, %v3191_v29 }
 0x33d   : > { %5697 = vrcp.f32 %v4326_v41  ;;  %v4324_v21 = vadd.f32 1.0, %v5672_v9  ;;  %v4873_v40 = vmul.f32 -1.442695, %v8150_v58  ;;  %v3833_v37 = vadd.f32 %v5392_v6, %v8098_v17  ;;  %v5786_v6 = vld [vmem:[%s6108_s21] sm:$0xff] }
 0x33e   : > { %v5674_v19 = vpop.eup %5673  ;;  %5699 = vpow2.f32 %v4875_v32  ;;  %v8161_v20 = vadd.f32 %v7983_v25, %v4170_v22  ;;  %v4168_v63 = vadd.f32 %v8029_v53, %v3830_v23  ;;  %v3754_v28 = vpop.f32.mrf.mxu1 }
 0x33f   : > { %v5676_v26 = vpop.eup %5675  ;;  %v4417_v43 = vmul.f32 %v5674_v19, %v7994_v54  ;;  %5701 = vrcp.f32 %v4324_v21  ;;  %v4171_v0 = vadd.f32 %v8050_v52, %v3833_v37  ;;  %v3831_v55 = vadd.f32 %v3754_v28, %v3525_v35  ;;  %v5785_v35 = vld [vmem:[%s6108_s21 + $0x10] sm:$0xff] }
 0x340   : > { %v5678_v17 = vpop.eup %5677  ;;  %v4329_v53 = vadd.f32 1.0, %v5676_v26  ;;  %5703 = vpow2.f32 %v4873_v40  ;;  %v4878_v61 = vmul.f32 -1.442695, %v8161_v20  ;;  %v8178_v51 = vadd.f32 %v7983_v25, %v4168_v63  ;;  %v5395_v54 = vpop.f32.mrf.mxu1 }
 0x341   : > { %v5680_v52 = vpop.eup %5679  ;;  %v4449_v47 = vadd.f32 %v5785_v35, %v4417_v43  ;;  %v4415_v29 = vmul.f32 %v5678_v17, %v8001_v59  ;;  %v8183_v34 = vadd.f32 %v7983_v25, %v4171_v0  ;;  %v4169_v1 = vadd.f32 %v8072_v49, %v3831_v55  ;;  %v8192_v40 = vpop.f32.mrf.mxu0 }
 0x342   : > { %v5682_v5 = vpop.eup %5681  ;;  %5705 = vrcp.f32 %v4329_v53  ;;  %v4327_v41 = vadd.f32 1.0, %v5680_v52  ;;  %v4876_v32 = vmul.f32 -1.442695, %v8178_v51  ;;  %v3836_v9 = vadd.f32 %v5395_v54, %v3530_v12  ;;  %v3767_v22 = vpop.f32.mrf.mxu1  ;;  %v5788_v54 = vld [vmem:[%s6108_s21 + $0x8] sm:$0xff] }
 0x343   : > { %v5684_v23 = vpop.eup %5683  ;;  %4481 = vst.msk [vmem:[%s8174_s14 + $0x10] sm:$0xff] %vm414_vm1, %v4449_v47  ;;  %v4447_v7 = vadd.f32 %v5786_v6, %v4415_v29  ;;  %v4418_v59 = vmul.f32 %v5682_v5, %v8014_v45  ;;  %5707 = vpow2.f32 %v4878_v61  ;;  %v4879_v21 = vmul.f32 -1.442695, %v8183_v34  ;;  %v5787_v45 = vld [vmem:[%s6108_s21 + $0x18] sm:$0xff]  ;;  %v8210_v47 = vpop.f32.mrf.mxu0  ;;  %v8779_v5 = vld [vmem:[#allocation38_spill] sm:$0xff]  ;;  %v5789_v6 = vld [vmem:[%s6108_s21 + $0x30] sm:$0xff] }
 0x344   : > { %v5686_v49 = vpop.eup %5685  ;;  %5709 = vrcp.f32 %v4327_v41  ;;  %v4330_v37 = vadd.f32 1.0, %v5684_v23  ;;  %v8195_v12 = vadd.f32 %v7983_v25, %v4169_v1  ;;  %v4174_v19 = vadd.f32 %v8092_v39, %v3836_v9  ;;  %v5396_v63 = vpop.f32.mrf.mxu1 }
 0x345   : > { %v5688_v28 = vpop.eup %5687  ;;  %4479 = vst.msk [vmem:[%s8174_s14] sm:$0xff] %vm414_vm1, %v4447_v7  ;;  %v4450_v13 = vadd.f32 %v5787_v45, %v4418_v59  ;;  %v4416_v26 = vmul.f32 %v5686_v49, %v8025_v33  ;;  %5711 = vpow2.f32 %v4876_v32  ;;  %v3834_v43 = vadd.f32 %v3767_v22, %v3528_v8  ;;  %v4124_v45 = vpop.f32.mrf.mxu0 }
 0x346   : > { %v5690_v0 = vpop.eup %5689  ;;  %5713 = vrcp.f32 %v4330_v37  ;;  %v4328_v55 = vadd.f32 1.0, %v5688_v28  ;;  %v4877_v17 = vmul.f32 -1.442695, %v8195_v12  ;;  %v8204_v53 = vadd.f32 %v7983_v25, %v4174_v19  ;;  %v3770_v39 = vpop.f32.mrf.mxu1  ;;  %v5790_v19 = vld [vmem:[%s6108_s21 + $0x20] sm:$0xff] }
 0x347   : > { %v5692_v61 = vpop.eup %5691  ;;  %4482 = vst.msk [vmem:[%s8174_s14 + $0x18] sm:$0xff] %vm414_vm1, %v4450_v13  ;;  %v4448_v52 = vadd.f32 %v5788_v54, %v4416_v26  ;;  %v4333_v35 = vadd.f32 1.0, %v5690_v0  ;;  %5715 = vpow2.f32 %v4879_v21  ;;  %v4172_v33 = vadd.f32 %v8113_v42, %v3834_v43 }
 0x348   : > { %v5694_v8 = vpop.eup %5693  ;;  %v4421_v29 = vmul.f32 %v5692_v61, %v8037_v11  ;;  %5717 = vrcp.f32 %v4328_v55  ;;  %v4882_v1 = vmul.f32 -1.442695, %v8204_v53  ;;  %v3837_v41 = vadd.f32 %v5396_v63, %v8779_v5  ;;  %v5399_v32 = vpop.f32.mrf.mxu1 }
 0x349   : > { %v5696_v9 = vpop.eup %5695  ;;  %4480 = vst.msk [vmem:[%s8174_s14 + $0x8] sm:$0xff] %vm414_vm1, %v4448_v52  ;;  %v4419_v22 = vmul.f32 %v5694_v8, %v8043_v16  ;;  %5719 = vrcp.f32 %v4333_v35  ;;  %v8219_v42 = vadd.f32 %v7983_v25, %v4172_v33  ;;  %v3835_v23 = vadd.f32 %v3770_v39, %v8165_v15  ;;  %v5792_v33 = vld [vmem:[%s6108_s21 + $0x28] sm:$0xff]  ;;  %v5439_v5 = vpop.f32.mrf.mxu0 }
 0x34a   : > { %v5698_v11 = vpop.eup %5697  ;;  %v4453_v7 = vadd.f32 %v5789_v6, %v4421_v29  ;;  %v4331_v59 = vadd.f32 1.0, %v5696_v9  ;;  %5721 = vpow2.f32 %v4877_v17  ;;  %v4175_v21 = vadd.f32 %v8129_v24, %v3837_v41  ;;  %v3783_v49 = vpop.f32.mrf.mxu1 }
 0x34b   : > { %v5700_v37 = vpop.eup %5699  ;;  %v4451_v16 = vadd.f32 %v5790_v19, %v4419_v22  ;;  %v4422_v63 = vmul.f32 %v5698_v11, %v8056_v3  ;;  %5723 = vpow2.f32 %v4882_v1  ;;  %v4880_v28 = vmul.f32 -1.442695, %v8219_v42  ;;  %v5791_v3 = vld [vmem:[%s6108_s21 + $0x38] sm:$0xff] }
 0x34c   : > { %v5702_v15 = vpop.eup %5701  ;;  %4485 = vst.msk [vmem:[%s8174_s14 + $0x30] sm:$0xff] %vm414_vm1, %v4453_v7  ;;  %5725 = vrcp.f32 %v4331_v59  ;;  %v4334_v13 = vadd.f32 1.0, %v5700_v37  ;;  %v8230_v26 = vadd.f32 %v7983_v25, %v4175_v21  ;;  %v4173_v24 = vadd.f32 %v8152_v2, %v3835_v23  ;;  %v5400_v43 = vpop.f32.mrf.mxu1 }
 0x34d   : > { %v5704_v0 = vpop.eup %5703  ;;  %4483 = vst.msk [vmem:[%s8174_s14 + $0x20] sm:$0xff] %vm414_vm1, %v4451_v16  ;;  %v4454_v55 = vadd.f32 %v5791_v3, %v4422_v63  ;;  %v4420_v17 = vmul.f32 %v5702_v15, %v8067_v30  ;;  %5727 = vpow2.f32 %v4880_v28  ;;  %v3840_v39 = vadd.f32 %v5399_v32, %v7937_v57  ;;  %v4137_v16 = vpop.f32.mrf.mxu0  ;;  %v5794_v63 = vld [vmem:[%s6108_s21 + $0x40] sm:$0xff] }
 0x34e   : > { %5729 = vrcp.f32 %v4334_v13  ;;  %v4332_v61 = vadd.f32 1.0, %v5704_v0  ;;  %v4883_v54 = vmul.f32 -1.442695, %v8230_v26  ;;  %v8240_v52 = vadd.f32 %v7983_v25, %v4173_v24  ;;  %v3786_v2 = vpop.f32.mrf.mxu1 }
 0x34f   : > { %v5706_v35 = vpop.eup %5705  ;;  %4486 = vst.msk [vmem:[%s8174_s14 + $0x38] sm:$0xff] %vm414_vm1, %v4454_v55  ;;  %v4452_v8 = vadd.f32 %v5792_v33, %v4420_v17  ;;  %v4178_v29 = vadd.f32 %v8169_v36, %v3840_v39  ;;  %v3838_v30 = vadd.f32 %v3783_v49, %v7943_v50  ;;  %v3841_v57 = vadd.f32 %v5400_v43, %v7947_v62  ;;  %v5795_v17 = vld [vmem:[%s6108_s21 + $0x58] sm:$0xff]  ;;  %v5440_v33 = vpop.f32.mrf.mxu0 }
 0x350   : > { %v5708_v1 = vpop.eup %5707  ;;  %v4425_v41 = vmul.f32 %v5706_v35, %v8078_v14  ;;  %5731 = vrcp.f32 %v4332_v61  ;;  %v4881_v32 = vmul.f32 -1.442695, %v8240_v52  ;;  %v3839_v9 = vadd.f32 %v3786_v2, %v7953_v46  ;;  %v5403_v22 = vpop.f32.mrf.mxu1  ;;  %v5793_v14 = vld [vmem:[%s6108_s21 + $0x50] sm:$0xff] }
 0x351   : > { %v5710_v23 = vpop.eup %5709  ;;  %4484 = vst.msk [vmem:[%s8174_s14 + $0x28] sm:$0xff] %vm414_vm1, %v4452_v8  ;;  %v4337_v11 = vadd.f32 1.0, %v5708_v1  ;;  %5733 = vpow2.f32 %v4883_v54  ;;  %v8254_v50 = vadd.f32 %v7983_v25, %v4178_v29  ;;  %v4176_v62 = vadd.f32 %v8192_v40, %v3838_v30  ;;  %v5796_v8 = vld [vmem:[%s6108_s21 + $0x48] sm:$0xff] }
 0x352   : > { %v5712_v36 = vpop.eup %5711  ;;  %v4457_v6 = vadd.f32 %v5793_v14, %v4425_v41  ;;  %v4423_v7 = vmul.f32 %v5710_v23, %v8095_v18  ;;  %5735 = vpow2.f32 %v4881_v32  ;;  %v4179_v46 = vadd.f32 %v8210_v47, %v3841_v57  ;;  %v3799_v59 = vpop.f32.mrf.mxu1 }
 0x353   : > { %v5714_v21 = vpop.eup %5713  ;;  %5737 = vrcp.f32 %v4337_v11  ;;  %v4335_v49 = vadd.f32 1.0, %v5712_v36  ;;  %v4886_v37 = vmul.f32 -1.442695, %v8254_v50  ;;  %v8262_v19 = vadd.f32 %v7983_v25, %v4176_v62 }
 0x354   : > { %v5716_v40 = vpop.eup %5715  ;;  %4489 = vst.msk [vmem:[%s8174_s14 + $0x50] sm:$0xff] %vm414_vm1, %v4457_v6  ;;  %v4455_v18 = vadd.f32 %v5794_v63, %v4423_v7  ;;  %v4426_v28 = vmul.f32 %v5714_v21, %v8101_v27  ;;  %v8269_v47 = vadd.f32 %v7983_v25, %v4179_v46  ;;  %v4177_v15 = vadd.f32 %v4124_v45, %v3839_v9  ;;  %v5404_v13 = vpop.f32.mrf.mxu1  ;;  %v5798_v7 = vld [vmem:[%s6108_s21 + $0x60] sm:$0xff] }
 0x355   : > { %v5718_v24 = vpop.eup %5717  ;;  %5739 = vrcp.f32 %v4335_v49  ;;  %v4338_v43 = vadd.f32 1.0, %v5716_v40  ;;  %v4884_v0 = vmul.f32 -1.442695, %v8262_v19  ;;  %v3844_v3 = vadd.f32 %v5403_v22, %v7958_v56  ;;  %v4140_v6 = vpop.f32.mrf.mxu0 }
 0x356   : > { %v5720_v55 = vpop.eup %5719  ;;  %4487 = vst.msk [vmem:[%s8174_s14 + $0x40] sm:$0xff] %vm414_vm1, %v4455_v18  ;;  %v4458_v39 = vadd.f32 %v5795_v17, %v4426_v28  ;;  %v4424_v27 = vmul.f32 %v5718_v24, %v8116_v38  ;;  %5741 = vpow2.f32 %v4886_v37  ;;  %v4887_v45 = vmul.f32 -1.442695, %v8269_v47  ;;  %v3802_v57 = vpop.f32.mrf.mxu1 }
 0x357   : > { %v5722_v61 = vpop.eup %5721  ;;  %v4429_v54 = vmul.f32 %v5720_v55, %v8121_v4  ;;  %5743 = vrcp.f32 %v4338_v43  ;;  %v8280_v2 = vadd.f32 %v7983_v25, %v4177_v15  ;;  %v4182_v56 = vadd.f32 %v5439_v5, %v3844_v3  ;;  %v5797_v4 = vld [vmem:[%s6108_s21 + $0x70] sm:$0xff]  ;;  %v5800_v43 = vld [vmem:[%s6108_s21 + $0x68] sm:$0xff] }
 0x358   : > { %v5724_v35 = vpop.eup %5723  ;;  %4490 = vst.msk [vmem:[%s8174_s14 + $0x58] sm:$0xff] %vm414_vm1, %v4458_v39  ;;  %v4456_v29 = vadd.f32 %v5796_v8, %v4424_v27  ;;  %v4336_v38 = vadd.f32 1.0, %v5722_v61  ;;  %5745 = vpow2.f32 %v4884_v0  ;;  %v3842_v30 = vadd.f32 %v3799_v59, %v7965_v44  ;;  %v5801_v27 = vld [vmem:[%s6108_s21 + $0x90] sm:$0xff] }
 0x359   : > { %v5726_v1 = vpop.eup %5725  ;;  %v4461_v41 = vadd.f32 %v5797_v4, %v4429_v54  ;;  %v4341_v32 = vadd.f32 1.0, %v5724_v35  ;;  %5747 = vpow2.f32 %v4887_v45  ;;  %v4885_v5 = vmul.f32 -1.442695, %v8280_v2  ;;  %v5802_v35 = vld [vmem:[%s6108_s21 + $0x80] sm:$0xff] }
 0x35a   : > { %v5728_v9 = vpop.eup %5727  ;;  %4488 = vst.msk [vmem:[%s8174_s14 + $0x48] sm:$0xff] %vm414_vm1, %v4456_v29  ;;  %v4427_v22 = vmul.f32 %v5726_v1, %v8132_v10  ;;  %5749 = vrcp.f32 %v4336_v38  ;;  %v8292_v23 = vadd.f32 %v7983_v25, %v4182_v56  ;;  %v4180_v11 = vadd.f32 %v4137_v16, %v3842_v30 }
 0x35b   : > { %v5730_v44 = vpop.eup %5729  ;;  %4493 = vst.msk [vmem:[%s8174_s14 + $0x70] sm:$0xff] %vm414_vm1, %v4461_v41  ;;  %5751 = vrcp.f32 %v4341_v32  ;;  %v4339_v62 = vadd.f32 1.0, %v5728_v9  ;;  %v3845_v36 = vadd.f32 %v5404_v13, %v7971_v31  ;;  %v3843_v14 = vadd.f32 %v3802_v57, %v7979_v60  ;;  %v5799_v60 = vld [vmem:[%s6108_s21 + $0x78] sm:$0xff]  ;;  %v5804_v9 = vld [vmem:[%s6108_s21 + $0x88] sm:$0xff] }
 0x35c   : > { %v4459_v46 = vadd.f32 %v5798_v7, %v4427_v22  ;;  %v4430_v10 = vmul.f32 %v5730_v44, %v8141_v48  ;;  %5753 = vpow2.f32 %v4885_v5  ;;  %v4890_v59 = vmul.f32 -1.442695, %v8292_v23 }
 0x35d   : > { %v5732_v21 = vpop.eup %5731  ;;  %5755 = vrcp.f32 %v4339_v62  ;;  %v8302_v49 = vadd.f32 %v7983_v25, %v4180_v11  ;;  %v4183_v37 = vadd.f32 %v5440_v33, %v3845_v36  ;;  %v4181_v40 = vadd.f32 %v4140_v6, %v3843_v14  ;;  %v5805_v62 = vld [vmem:[%s6108_s21 + $0xb0] sm:$0xff] }
 0x35e   : > { %v5734_v31 = vpop.eup %5733  ;;  %4491 = vst.msk [vmem:[%s8174_s14 + $0x60] sm:$0xff] %vm414_vm1, %v4459_v46  ;;  %v4462_v16 = vadd.f32 %v5799_v60, %v4430_v10  ;;  %v4428_v63 = vmul.f32 %v5732_v21, %v8150_v58  ;;  %5757 = vpow2.f32 %v4890_v59 }
 0x35f   : > { %v5736_v48 = vpop.eup %5735  ;;  %v4342_v18 = vadd.f32 1.0, %v5734_v31  ;;  %v4888_v28 = vmul.f32 -1.442695, %v8302_v49  ;;  %v8310_v15 = vadd.f32 %v7983_v25, %v4183_v37  ;;  %v8313_v13 = vadd.f32 %v7983_v25, %v4181_v40  ;;  %v5807_v37 = vld [vmem:[%s6108_s21 + $0xb8] sm:$0xff] }
 0x360   : > { %v5738_v24 = vpop.eup %5737  ;;  %4494 = vst.msk [vmem:[%s8174_s14 + $0x78] sm:$0xff] %vm414_vm1, %v4462_v16  ;;  %v4460_v0 = vadd.f32 %v5800_v43, %v4428_v63  ;;  %v4340_v3 = vadd.f32 1.0, %v5736_v48  ;;  %v5808_v16 = vld [vmem:[%s6108_s21 + $0xa8] sm:$0xff]  ;;  %v5809_v43 = vld [vmem:[%s6108_s21 + $0xd0] sm:$0xff] }
 0x361   : > { %v4433_v58 = vmul.f32 %v5738_v24, %v8161_v20  ;;  %5759 = vrcp.f32 %v4342_v18  ;;  %v4891_v55 = vmul.f32 -1.442695, %v8310_v15  ;;  %v4889_v17 = vmul.f32 -1.442695, %v8313_v13 }
 0x362   : > { %v5740_v39 = vpop.eup %5739  ;;  %4492 = vst.msk [vmem:[%s8174_s14 + $0x68] sm:$0xff] %vm414_vm1, %v4460_v0  ;;  %5761 = vrcp.f32 %v4340_v3 }
 0x363   : > { %v5742_v25 = vpop.eup %5741  ;;  %v4465_v45 = vadd.f32 %v5801_v27, %v4433_v58  ;;  %v4431_v61 = vmul.f32 %v5740_v39, %v8178_v51  ;;  %5763 = vpow2.f32 %v4888_v28  ;;  %v5803_v51 = vld [vmem:[%s6108_s21 + $0x98] sm:$0xff] }
 0x364   : > { %v5744_v20 = vpop.eup %5743  ;;  %v4345_v54 = vadd.f32 1.0, %v5742_v25  ;;  %5765 = vpow2.f32 %v4891_v55  ;;  %v5810_v55 = vld [vmem:[%s6108_s21 + $0xc0] sm:$0xff]  ;;  %v5811_v39 = vld [vmem:[%s6108_s21 + $0xd8] sm:$0xff] }
 0x365   : > { %v5746_v56 = vpop.eup %5745  ;;  %4497 = vst.msk [vmem:[%s8174_s14 + $0x90] sm:$0xff] %vm414_vm1, %v4465_v45  ;;  %v4463_v33 = vadd.f32 %v5802_v35, %v4431_v61  ;;  %v4434_v8 = vmul.f32 %v5744_v20, %v8183_v34  ;;  %5767 = vpow2.f32 %v4889_v17  ;;  %v5813_v20 = vld [vmem:[%s6108_s21 + $0xf0] sm:$0xff] }
 0x366   : > { %v5748_v29 = vpop.eup %5747  ;;  %5769 = vrcp.f32 %v4345_v54  ;;  %v4343_v38 = vadd.f32 1.0, %v5746_v56 }
 0x367   : > { %v5750_v30 = vpop.eup %5749  ;;  %4495 = vst.msk [vmem:[%s8174_s14 + $0x80] sm:$0xff] %vm414_vm1, %v4463_v33  ;;  %v4466_v57 = vadd.f32 %v5803_v51, %v4434_v8  ;;  %v4346_v1 = vadd.f32 1.0, %v5748_v29  ;;  %v5814_v29 = vld [vmem:[%s6108_s21 + $0xe0] sm:$0xff] }
 0x368   : > { %v5752_v4 = vpop.eup %5751  ;;  %v4432_v41 = vmul.f32 %v5750_v30, %v8195_v12  ;;  %5771 = vrcp.f32 %v4343_v38  ;;  %v5815_v30 = vld [vmem:[%s6108_s21 + $0xf8] sm:$0xff] }
 0x369   : > { %v5754_v32 = vpop.eup %5753  ;;  %4498 = vst.msk [vmem:[%s8174_s14 + $0x98] sm:$0xff] %vm414_vm1, %v4466_v57  ;;  %v4437_v34 = vmul.f32 %v5752_v4, %v8204_v53  ;;  %5773 = vrcp.f32 %v4346_v1  ;;  %v5806_v53 = vld [vmem:[%s6108_s21 + $0xa0] sm:$0xff]  ;;  %v5816_v57 = vld [vmem:[%s6108_s21 + $0xe8] sm:$0xff] }
 0x36a   : > { %v5756_v5 = vpop.eup %5755  ;;  %v4464_v22 = vadd.f32 %v5804_v9, %v4432_v41  ;;  %v4344_v11 = vadd.f32 1.0, %v5754_v32 }
 0x36b   : > { %v5758_v44 = vpop.eup %5757  ;;  %v4469_v36 = vadd.f32 %v5805_v62, %v4437_v34  ;;  %v4435_v12 = vmul.f32 %v5756_v5, %v8219_v42 }
 0x36c   : > { %4496 = vst.msk [vmem:[%s8174_s14 + $0x88] sm:$0xff] %vm414_vm1, %v4464_v22  ;;  %5775 = vrcp.f32 %v4344_v11  ;;  %v4349_v14 = vadd.f32 1.0, %v5758_v44 }
 0x36d   : > { %4501 = vst.msk [vmem:[%s8174_s14 + $0xb0] sm:$0xff] %vm414_vm1, %v4469_v36  ;;  %v4467_v6 = vadd.f32 %v5806_v53, %v4435_v12 }
 0x36e   : > { %v5760_v7 = vpop.eup %5759  ;;  %5777 = vrcp.f32 %v4349_v14 }
 0x36f   : > { %v5762_v46 = vpop.eup %5761  ;;  %4499 = vst.msk [vmem:[%s8174_s14 + $0xa0] sm:$0xff] %vm414_vm1, %v4467_v6  ;;  %v4438_v10 = vmul.f32 %v5760_v7, %v8230_v26 }
 0x370   : > { %v5764_v59 = vpop.eup %5763  ;;  %v4436_v42 = vmul.f32 %v5762_v46, %v8240_v52 }
 0x371   : > { %v5766_v21 = vpop.eup %5765  ;;  %v4470_v40 = vadd.f32 %v5807_v37, %v4438_v10  ;;  %v4347_v31 = vadd.f32 1.0, %v5764_v59 }
 0x372   : > { %v5768_v60 = vpop.eup %5767  ;;  %v4468_v63 = vadd.f32 %v5808_v16, %v4436_v42  ;;  %v4350_v48 = vadd.f32 1.0, %v5766_v21 }
 0x373   : > { %v5770_v18 = vpop.eup %5769  ;;  %4502 = vst.msk [vmem:[%s8174_s14 + $0xb8] sm:$0xff] %vm414_vm1, %v4470_v40  ;;  %5779 = vrcp.f32 %v4347_v31  ;;  %v4348_v26 = vadd.f32 1.0, %v5768_v60 }
 0x374   : > { %4500 = vst.msk [vmem:[%s8174_s14 + $0xa8] sm:$0xff] %vm414_vm1, %v4468_v63  ;;  %v4441_v52 = vmul.f32 %v5770_v18, %v8254_v50  ;;  %5781 = vrcp.f32 %v4350_v48 }
 0x375   : > { %v5772_v28 = vpop.eup %5771  ;;  %5783 = vrcp.f32 %v4348_v26 }
 0x376   : > { %v5774_v24 = vpop.eup %5773  ;;  %v4473_v0 = vadd.f32 %v5809_v43, %v4441_v52  ;;  %v4439_v3 = vmul.f32 %v5772_v28, %v8262_v19  ;;  %v5812_v19 = vld [vmem:[%s6108_s21 + $0xc8] sm:$0xff] }
 0x377   : > { %v4442_v58 = vmul.f32 %v5774_v24, %v8269_v47 }
 0x378   : > { %4505 = vst.msk [vmem:[%s8174_s14 + $0xd0] sm:$0xff] %vm414_vm1, %v4473_v0  ;;  %v4471_v17 = vadd.f32 %v5810_v55, %v4439_v3 }
 0x379   : > { %v5776_v50 = vpop.eup %5775  ;;  %v4474_v25 = vadd.f32 %v5811_v39, %v4442_v58 }
 0x37a   : > { %4503 = vst.msk [vmem:[%s8174_s14 + $0xc0] sm:$0xff] %vm414_vm1, %v4471_v17  ;;  %v4440_v27 = vmul.f32 %v5776_v50, %v8280_v2 }
 0x37b   : > { %v5778_v45 = vpop.eup %5777  ;;  %4506 = vst.msk [vmem:[%s8174_s14 + $0xd8] sm:$0xff] %vm414_vm1, %v4474_v25 }
 0x37c   : > { %v4472_v61 = vadd.f32 %v5812_v19, %v4440_v27  ;;  %v4445_v47 = vmul.f32 %v5778_v45, %v8292_v23 }
 0x37e   : > { %4504 = vst.msk [vmem:[%s8174_s14 + $0xc8] sm:$0xff] %vm414_vm1, %v4472_v61  ;;  %v4477_v54 = vadd.f32 %v5813_v20, %v4445_v47 }
 0x380   : > { %v5780_v56 = vpop.eup %5779  ;;  %4509 = vst.msk [vmem:[%s8174_s14 + $0xf0] sm:$0xff] %vm414_vm1, %v4477_v54 }
 0x381   : > { %v5782_v2 = vpop.eup %5781  ;;  %v4443_v35 = vmul.f32 %v5780_v56, %v8302_v49 }
 0x382   : > { %v5784_v33 = vpop.eup %5783  ;;  %v4446_v8 = vmul.f32 %v5782_v2, %v8310_v15 }
 0x383   : > { %v4475_v38 = vadd.f32 %v5814_v29, %v4443_v35  ;;  %v4444_v23 = vmul.f32 %v5784_v33, %v8313_v13 }
 0x384   : > { %v4478_v51 = vadd.f32 %v5815_v30, %v4446_v8 }
 0x385   : > { %4507 = vst.msk [vmem:[%s8174_s14 + $0xe0] sm:$0xff] %vm414_vm1, %v4475_v38  ;;  %v4476_v1 = vadd.f32 %v5816_v57, %v4444_v23 }
 0x386   : > { %4510 = vst.msk [vmem:[%s8174_s14 + $0xf8] sm:$0xff] %vm414_vm1, %v4478_v51 }
 0x387   : > { %4508 = vst.msk [vmem:[%s8174_s14 + $0xe8] sm:$0xff] %vm414_vm1, %v4476_v1 }
 0x388 PF: > { %p18_p3 = scmp.ge.s32.totalorder %s6004_s29, 4   ;;  %s8780_s24 = smov %s5927_s25 }
 0x389   : > { %s8781_s25 = smov %s5931_s26  ;;  %s8782_s26 = smov %s6014_s9 }
 0x38a   : > { %s8783_s27 = smov %s6004_s29  ;;  %20 = sbr.rel (!%p18_p3) target bundleno = 4 (0x4), region = 104 }
 0x38f   :  { %4533 = vsyncpa [#allocation4], 1 }
 0x390   :  { %4535 = vsyncpa [#allocation4 + $0x1], 1 }
 0x391   :  { %4536 = vsyncpa [#allocation6], 1 }

</bundles_post_ra>
